<compile_context>
chip_gen: v7x
topology: tpu7x:2x2x1
jax: 0.10.0
libtpu: 0.0.40
codegen_flags: <defaults>
</compile_context>

<pallas_src>
import jax
import jax.numpy as jnp
from jax import lax
from jax.experimental import pallas as pl
from jax.experimental.pallas import tpu as pltpu


C_EMB = 256        # conv1 input channels, zero-padded up from 150 for lane alignment
C_HID = 128        # conv2..conv6 / fc1 width
N_OUT_PAD = 128    # logits padded 2 -> 128 for a lane-dense output store
SUB = 16           # sublane alignment for the bf16 im2col flatten (bf16 tile = (16,128))

# (kernel_size, Cin_real, Cin_padded) per conv stage.
_CONV_DEFS = ((7, 150, C_EMB), (7, 128, C_HID),
              (3, 128, C_HID), (3, 128, C_HID), (3, 128, C_HID), (3, 128, C_HID))


def _round_up(x, m):
    return ((x + m - 1) // m) * m


def _make_kernel(b_tile: int, seq_len: int):
    L = seq_len
    f32, bf16 = jnp.float32, jnp.bfloat16

    def kernel(ids_ref, embed_ref,
               w1, b1, w2, b2, w3, b3, w4, b4, w5, b5, w6, b6,
               wf1, bf1, wf2, bf2, wf3, bf3,
               out_ref, pad_ref):

        # ---- embedding: one-hot(ids) @ table (padding_idx=255 row is zero) --------
        ids = ids_ref[...]                                          # (BT*L, 1) int32
        iota = lax.broadcasted_iota(jnp.int32, (b_tile * L, 256), 1)
        onehot = (iota == ids).astype(bf16)                         # bf16 directly, no f32 temp
        x = jnp.dot(onehot, embed_ref[...], preferred_element_type=f32)
        x = x.reshape(b_tile, L, C_EMB)                             # (BT, L, 256) f32

        # Left zero-pad row (row 0) of the shared conv scratch; set once, never rewritten.
        pad_ref[:, 0:1, :] = jnp.zeros((b_tile, 1, C_EMB), bf16)

        def stage_to_pad(val, lin, cin):
            """Stage a conv input (true length lin) into pad_ref rows [1, 1+lin) and
            zero the right PyTorch pad row.  Stores are bf16 (half the traffic)."""
            pad_ref[:, 1:1 + lin, :cin] = val[:, :lin, :cin].astype(bf16)
            pad_ref[:, 1 + lin:2 + lin, :cin] = jnp.zeros((b_tile, 1, cin), bf16)

        def conv_relu_from_pad(lin, cin, k, w_flat, b):
            """Conv1d(cin->128, kernel=k, stride=1, padding=1) + ReLU as ONE deep MXU dot.
            Lout is rounded up to SUB so the im2col flatten is sublane-aligned (no
            relayout copy of the LHS).  The extra rows read stale scratch rows and
            their outputs are discarded downstream."""
            lout = lin + 2 - k + 1
            lp = _round_up(lout, SUB)
            taps = [pad_ref[:, j:j + lp, :cin] for j in range(k)]   # K shifted bf16 slabs
            lhs = jnp.concatenate(taps, axis=-1)                    # (BT, lp, K*cin); 128-aligned lanes
            lhs = lhs.reshape(b_tile * lp, k * cin)                 # aligned flatten (lp % 16 == 0)
            acc = jnp.dot(lhs, w_flat[...], preferred_element_type=f32)
            acc = jnp.maximum(acc + b[...], 0.0)
            return acc.reshape(b_tile, lp, C_HID), lout
        # TODO(synk): on v7x, the K=7 convs could instead use 7 accumulating dots (MRB
        # accumulate) to avoid materializing the wide im2col LHS and allow larger b_tile.

        def maxpool3(val, lin):
            """MaxPool1d(kernel=3, stride=3, padding=1), vectorized.  val is post-ReLU
            (>= 0) so zero padding is exactly equivalent to PyTorch's -inf padding."""
            c = val.shape[2]
            lout = (lin - 1) // 3 + 1
            take = min(lin, 3 * lout - 1)                           # PyTorch window coverage
            parts = [jnp.zeros((b_tile, 1, c), val.dtype), val[:, :take, :]]
            tail = 3 * lout - 1 - take
            if tail:
                parts.append(jnp.zeros((b_tile, tail, c), val.dtype))
            p = jnp.concatenate(parts, axis=1)                      # (BT, 3*lout, C)
            return jnp.max(p.reshape(b_tile, lout, 3, c), axis=2), lout

        # conv1 + pool1
        stage_to_pad(x, L, C_EMB)
        x, n = conv_relu_from_pad(L, C_EMB, 7, w1, b1)
        x, n = maxpool3(x, n)
        # conv2 + pool2
        stage_to_pad(x, n, C_HID)
        x, n = conv_relu_from_pad(n, C_HID, 7, w2, b2)
        x, n = maxpool3(x, n)
        # conv3..conv6 (k=3, padding=1 -> length preserving)
        stage_to_pad(x, n, C_HID)
        x, n = conv_relu_from_pad(n, C_HID, 3, w3, b3)
        stage_to_pad(x, n, C_HID)
        x, n = conv_relu_from_pad(n, C_HID, 3, w4, b4)
        stage_to_pad(x, n, C_HID)
        x, n = conv_relu_from_pad(n, C_HID, 3, w5, b5)
        stage_to_pad(x, n, C_HID)
        x, n = conv_relu_from_pad(n, C_HID, 3, w6, b6)

        # AdaptiveMaxPool1d(1) + squeeze -> global max over the TRUE n positions.
        # Rows >= n are garbage from the SUB round-up and must be excluded.
        if x.shape[1] > n:
            pos = lax.broadcasted_iota(jnp.int32, x.shape, 1)
            x = jnp.where(pos < n, x, 0.0)        # post-ReLU => 0 is a safe identity
        feat = jnp.max(x, axis=1)                 # (BT, 128) f32

        # fc1 / fc2 (+ReLU); Dropout(p=0.0) is identity in eval mode.
        h = jnp.maximum(jnp.dot(feat.astype(bf16), wf1[...],
                                preferred_element_type=f32) + bf1[...], 0.0)
        # fc2's 64 outputs are zero-padded to 128 lanes (zero cols + zero bias tail);
        # fc3's padded input rows are zero, so numerics are unchanged.
        h = jnp.maximum(jnp.dot(h.astype(bf16), wf2[...],
                                preferred_element_type=f32) + bf2[...], 0.0)
        # fc3 -> logits, stored lane-dense; columns >= 2 are zero padding.
        logits = jnp.dot(h.astype(bf16), wf3[...],
                         preferred_element_type=f32) + bf3[...]
        out_ref[...] = logits.reshape(1, b_tile, N_OUT_PAD)

    return kernel


def charcnn_forward(input_ids, params, *, b_tile=None,
                    vmem_limit_bytes=48 * 1024 * 1024):
    """input_ids: (B, L) byte ids (byte_tokens.input_ids).  Returns (B, 2) f32 logits.

    b_tile is THE tuning knob: it sets M for every MXU dot (M = b_tile * Lout).
    The default targets 32 batch rows per step while keeping >= 2 grid steps (so
    v7x's two TensorCores both get work); raise it to 64-128 on v5e/v6e (and raise
    vmem_limit_bytes accordingly) for large batches / long sequences.
    """
    B, L = input_ids.shape
    assert L % 8 == 0 and L >= 17, "kernel assumes L % 8 == 0 and L >= 17"
    if b_tile is None:
        b_tile = max(1, min(32, (B + 1) // 2))
    bp = _round_up(B, b_tile)
    grid = bp // b_tile

    ids = input_ids.astype(jnp.int32)
    if bp != B:  # pad batch with padding_idx rows; sliced off below
        ids = jnp.concatenate([ids, jnp.full((bp - B, L), 255, jnp.int32)], axis=0)
    ids2d = ids.reshape(bp * L, 1)

    weight_keys = ("embed",
                   "w1", "b1", "w2", "b2", "w3", "b3",
                   "w4", "b4", "w5", "b5", "w6", "b6",
                   "wf1", "bf1", "wf2", "bf2", "wf3", "bf3")
    weights = [params[k] for k in weight_keys]

    in_specs = [pl.BlockSpec((b_tile * L, 1), lambda i: (i, 0))]          # ids tile
    # Weights: full-shape blocks with constant index_map -> VMEM-resident across grid.
    # TODO(synk): pipeline_mode=pl.Buffered(1) on these would drop their ~1.3 MiB
    # double-buffer; left at the default for maximum compatibility.
    in_specs += [pl.BlockSpec(w.shape, lambda i: (0, 0)) for w in weights]

    pad_rows = _round_up(L - 4, SUB) + 8   # covers the SUB-rounded conv1 tap reads + pads

    out = pl.pallas_call(
        _make_kernel(b_tile, L),
        out_shape=jax.ShapeDtypeStruct((grid, b_tile, N_OUT_PAD), jnp.float32),
        grid=(grid,),
        in_specs=in_specs,
        out_specs=pl.BlockSpec((1, b_tile, N_OUT_PAD), lambda i: (i, 0, 0)),
        scratch_shapes=[pltpu.VMEM((b_tile, pad_rows, C_EMB), jnp.bfloat16)],
        compiler_params=pltpu.CompilerParams(
            dimension_semantics=("parallel",),
            vmem_limit_bytes=vmem_limit_bytes),
    )(ids2d, *weights)
    return out.reshape(bp, N_OUT_PAD)[:B, :2]


def init_params(key):
    """Parameters in kernel layout (PyTorch layouts noted inline), bf16 weights."""
    ks = jax.random.split(key, 24)
    f32, bf16 = jnp.float32, jnp.bfloat16

    def nrm(k, shape, scale=0.05):
        return scale * jax.random.normal(k, shape, dtype=f32)

    p = {}
    # nn.Embedding(256, 150, padding_idx=255): row 255 zero; columns zero-padded
    # 150 -> 256 so conv1's im2col lane offsets stay 128-aligned.
    emb = jax.random.normal(ks[0], (256, 150), dtype=f32).at[255].set(0.0)
    p["embed"] = jnp.pad(emb, ((0, 0), (0, C_EMB - 150))).astype(bf16)

    ki = 1
    for i, (k_sz, cin, cin_pad) in enumerate(_CONV_DEFS, start=1):
        # PyTorch Conv1d weight is (Cout, Cin, K); kernel layout is (K, Cin_pad, Cout)
        # flattened to (K*Cin_pad, Cout) with zero rows for the padded channels.
        w = nrm(ks[ki], (k_sz, cin, C_HID)); ki += 1
        if cin_pad != cin:
            w = jnp.pad(w, ((0, 0), (0, cin_pad - cin), (0, 0)))
        p[f"w{i}"] = w.reshape(k_sz * cin_pad, C_HID).astype(bf16)
        p[f"b{i}"] = nrm(ks[ki], (1, C_HID)).astype(f32); ki += 1

    # PyTorch Linear weight is (out, in); kernel layout is (in, out).
    p["wf1"] = nrm(ks[ki], (128, 128)).astype(bf16); ki += 1
    p["bf1"] = nrm(ks[ki], (1, 128)).astype(f32); ki += 1
    # fc2 (128 -> 64): outputs zero-padded 64 -> 128 lanes (zero cols + zero bias tail).
    p["wf2"] = jnp.pad(nrm(ks[ki], (128, 64)), ((0, 0), (0, 64))).astype(bf16); ki += 1
    p["bf2"] = jnp.pad(nrm(ks[ki], (1, 64)), ((0, 0), (0, 64))).astype(f32); ki += 1
    # fc3 (64 -> 2): padded input rows 64..127 and output cols 2..127 are zero.
    p["wf3"] = jnp.pad(nrm(ks[ki], (64, 2)),
                       ((0, 64), (0, N_OUT_PAD - 2))).astype(bf16); ki += 1
    p["bf3"] = jnp.pad(nrm(ks[ki], (1, 2)),
                       ((0, 0), (0, N_OUT_PAD - 2))).astype(f32); ki += 1
    return p


if __name__ == "__main__":
    key = jax.random.PRNGKey(0)
    k_ids, k_par = jax.random.split(key)

    B, L = 2, 64                                   # byte_tokens.input_ids: (B, L)
    input_ids = jax.random.randint(k_ids, (B, L), 0, 256, dtype=jnp.int32)
    params = init_params(k_par)

    logits = charcnn_forward(input_ids, params)    # (B, 2)
    jax.block_until_ready(logits)
    assert logits.shape == (B, 2)
    assert bool(jnp.all(jnp.isfinite(logits)))
    # TODO(synk): PyTorch's `.squeeze()` after AdaptiveMaxPool1d would also drop the
    # batch dim when B == 1; that single-sample quirk is intentionally not replicated.
    print("KERNEL_OK")
</pallas_src>

<mosaic_0001>
module attributes {stable_mosaic.version = 11 : i64} {
  func.func @kernel(%arg0: i32, %arg1: memref<64x1xi32, #tpu.memory_space<vmem>>, %arg2: memref<256x256xbf16, #tpu.memory_space<vmem>>, %arg3: memref<1792x128xbf16, #tpu.memory_space<vmem>>, %arg4: memref<1x128xf32, #tpu.memory_space<vmem>>, %arg5: memref<896x128xbf16, #tpu.memory_space<vmem>>, %arg6: memref<1x128xf32, #tpu.memory_space<vmem>>, %arg7: memref<384x128xbf16, #tpu.memory_space<vmem>>, %arg8: memref<1x128xf32, #tpu.memory_space<vmem>>, %arg9: memref<384x128xbf16, #tpu.memory_space<vmem>>, %arg10: memref<1x128xf32, #tpu.memory_space<vmem>>, %arg11: memref<384x128xbf16, #tpu.memory_space<vmem>>, %arg12: memref<1x128xf32, #tpu.memory_space<vmem>>, %arg13: memref<384x128xbf16, #tpu.memory_space<vmem>>, %arg14: memref<1x128xf32, #tpu.memory_space<vmem>>, %arg15: memref<128x128xbf16, #tpu.memory_space<vmem>>, %arg16: memref<1x128xf32, #tpu.memory_space<vmem>>, %arg17: memref<128x128xbf16, #tpu.memory_space<vmem>>, %arg18: memref<1x128xf32, #tpu.memory_space<vmem>>, %arg19: memref<128x128xbf16, #tpu.memory_space<vmem>>, %arg20: memref<1x128xf32, #tpu.memory_space<vmem>>, %arg21: memref<1x1x128xf32, #tpu.memory_space<vmem>>, %arg22: memref<1x72x256xbf16, #tpu.memory_space<vmem>>) attributes {dimension_semantics = [#tpu.dimension_semantics<parallel>], iteration_bounds = array<i64: 2>, scalar_prefetch = 0 : i64, scratch_operands = 1 : i64, tpu.core_type = #tpu.core_type<tc>, window_params = [{transform_indices = @transform_0, window_bounds = array<i64: 64, 1>}, {pipeline_mode = #tpu.pipeline_mode<synchronous>, transform_indices = @transform_1, window_bounds = array<i64: 256, 256>}, {pipeline_mode = #tpu.pipeline_mode<synchronous>, transform_indices = @transform_2, window_bounds = array<i64: 1792, 128>}, {pipeline_mode = #tpu.pipeline_mode<synchronous>, transform_indices = @transform_3, window_bounds = array<i64: 1, 128>}, {pipeline_mode = #tpu.pipeline_mode<synchronous>, transform_indices = @transform_4, window_bounds = array<i64: 896, 128>}, {pipeline_mode = #tpu.pipeline_mode<synchronous>, transform_indices = @transform_5, window_bounds = array<i64: 1, 128>}, {pipeline_mode = #tpu.pipeline_mode<synchronous>, transform_indices = @transform_6, window_bounds = array<i64: 384, 128>}, {pipeline_mode = #tpu.pipeline_mode<synchronous>, transform_indices = @transform_7, window_bounds = array<i64: 1, 128>}, {pipeline_mode = #tpu.pipeline_mode<synchronous>, transform_indices = @transform_8, window_bounds = array<i64: 384, 128>}, {pipeline_mode = #tpu.pipeline_mode<synchronous>, transform_indices = @transform_9, window_bounds = array<i64: 1, 128>}, {pipeline_mode = #tpu.pipeline_mode<synchronous>, transform_indices = @transform_10, window_bounds = array<i64: 384, 128>}, {pipeline_mode = #tpu.pipeline_mode<synchronous>, transform_indices = @transform_11, window_bounds = array<i64: 1, 128>}, {pipeline_mode = #tpu.pipeline_mode<synchronous>, transform_indices = @transform_12, window_bounds = array<i64: 384, 128>}, {pipeline_mode = #tpu.pipeline_mode<synchronous>, transform_indices = @transform_13, window_bounds = array<i64: 1, 128>}, {pipeline_mode = #tpu.pipeline_mode<synchronous>, transform_indices = @transform_14, window_bounds = array<i64: 128, 128>}, {pipeline_mode = #tpu.pipeline_mode<synchronous>, transform_indices = @transform_15, window_bounds = array<i64: 1, 128>}, {pipeline_mode = #tpu.pipeline_mode<synchronous>, transform_indices = @transform_16, window_bounds = array<i64: 128, 128>}, {pipeline_mode = #tpu.pipeline_mode<synchronous>, transform_indices = @transform_17, window_bounds = array<i64: 1, 128>}, {pipeline_mode = #tpu.pipeline_mode<synchronous>, transform_indices = @transform_18, window_bounds = array<i64: 128, 128>}, {pipeline_mode = #tpu.pipeline_mode<synchronous>, transform_indices = @transform_19, window_bounds = array<i64: 1, 128>}, {transform_indices = @transform_20, window_bounds = array<i64: 1, 1, 128>}]} {
    %c0 = arith.constant 0 : index
    %c0_0 = arith.constant 0 : index
    %0 = vector.load %arg1[%c0, %c0_0] : memref<64x1xi32, #tpu.memory_space<vmem>>, vector<64x1xi32>
    %1 = tpu.iota {dimensions = array<i32: 1>} : vector<64x256xi32>
    %2 = vector.broadcast %0 : vector<64x1xi32> to vector<64x256xi32>
    %3 = arith.cmpi eq, %1, %2 : vector<64x256xi32>
    %4 = arith.extui %3 : vector<64x256xi1> to vector<64x256xi32>
    %5 = arith.sitofp %4 : vector<64x256xi32> to vector<64x256xf32>
    %6 = arith.truncf %5 : vector<64x256xf32> to vector<64x256xbf16>
    %c0_1 = arith.constant 0 : index
    %c0_2 = arith.constant 0 : index
    %7 = vector.load %arg2[%c0_1, %c0_2] : memref<256x256xbf16, #tpu.memory_space<vmem>>, vector<256x256xbf16>
    %cst = arith.constant dense<0.000000e+00> : vector<64x256xf32>
    %8 = tpu.matmul %6, %7, %cst {dimension_numbers = #tpu.dot_dimension_numbers<[1], [0], [0], [1], [0, 0, 1, 1], [], []>} : vector<64x256xbf16>, vector<256x256xbf16>, vector<64x256xf32> -> vector<64x256xf32>
    %9 = vector.shape_cast %8 : vector<64x256xf32> to vector<1x64x256xf32>
    %cst_3 = arith.constant 0.000000e+00 : bf16
    %10 = vector.broadcast %cst_3 : bf16 to vector<1x1x256xbf16>
    %c0_4 = arith.constant 0 : index
    %c0_5 = arith.constant 0 : index
    %c0_6 = arith.constant 0 : index
    %11 = vector.load %arg22[%c0_4, %c0_5, %c0_6] : memref<1x72x256xbf16, #tpu.memory_space<vmem>>, vector<1x1x256xbf16>
    tpu.vector_store %arg22[%c0_4, %c0_5, %c0_6], %10 {strides = array<i32>} : memref<1x72x256xbf16, #tpu.memory_space<vmem>>, vector<1x1x256xbf16>,
    %12 = arith.truncf %9 : vector<1x64x256xf32> to vector<1x64x256xbf16>
    %c0_7 = arith.constant 0 : index
    %c1 = arith.constant 1 : index
    %c0_8 = arith.constant 0 : index
    %13 = vector.load %arg22[%c0_7, %c1, %c0_8] : memref<1x72x256xbf16, #tpu.memory_space<vmem>>, vector<1x64x256xbf16>
    tpu.vector_store %arg22[%c0_7, %c1, %c0_8], %12 {strides = array<i32>} : memref<1x72x256xbf16, #tpu.memory_space<vmem>>, vector<1x64x256xbf16>,
    %cst_9 = arith.constant 0.000000e+00 : bf16
    %14 = vector.broadcast %cst_9 : bf16 to vector<1x1x256xbf16>
    %c0_10 = arith.constant 0 : index
    %c65 = arith.constant 65 : index
    %c0_11 = arith.constant 0 : index
    %15 = vector.load %arg22[%c0_10, %c65, %c0_11] : memref<1x72x256xbf16, #tpu.memory_space<vmem>>, vector<1x1x256xbf16>
    tpu.vector_store %arg22[%c0_10, %c65, %c0_11], %14 {strides = array<i32>} : memref<1x72x256xbf16, #tpu.memory_space<vmem>>, vector<1x1x256xbf16>,
    %c0_12 = arith.constant 0 : index
    %c0_13 = arith.constant 0 : index
    %c0_14 = arith.constant 0 : index
    %16 = vector.load %arg22[%c0_12, %c0_13, %c0_14] : memref<1x72x256xbf16, #tpu.memory_space<vmem>>, vector<1x64x256xbf16>
    %c0_15 = arith.constant 0 : index
    %c1_16 = arith.constant 1 : index
    %c0_17 = arith.constant 0 : index
    %17 = vector.load %arg22[%c0_15, %c1_16, %c0_17] : memref<1x72x256xbf16, #tpu.memory_space<vmem>>, vector<1x64x256xbf16>
    %c0_18 = arith.constant 0 : index
    %c2 = arith.constant 2 : index
    %c0_19 = arith.constant 0 : index
    %18 = vector.load %arg22[%c0_18, %c2, %c0_19] : memref<1x72x256xbf16, #tpu.memory_space<vmem>>, vector<1x64x256xbf16>
    %c0_20 = arith.constant 0 : index
    %c3 = arith.constant 3 : index
    %c0_21 = arith.constant 0 : index
    %19 = vector.load %arg22[%c0_20, %c3, %c0_21] : memref<1x72x256xbf16, #tpu.memory_space<vmem>>, vector<1x64x256xbf16>
    %c0_22 = arith.constant 0 : index
    %c4 = arith.constant 4 : index
    %c0_23 = arith.constant 0 : index
    %20 = vector.load %arg22[%c0_22, %c4, %c0_23] : memref<1x72x256xbf16, #tpu.memory_space<vmem>>, vector<1x64x256xbf16>
    %c0_24 = arith.constant 0 : index
    %c5 = arith.constant 5 : index
    %c0_25 = arith.constant 0 : index
    %21 = vector.load %arg22[%c0_24, %c5, %c0_25] : memref<1x72x256xbf16, #tpu.memory_space<vmem>>, vector<1x64x256xbf16>
    %c0_26 = arith.constant 0 : index
    %c6 = arith.constant 6 : index
    %c0_27 = arith.constant 0 : index
    %22 = vector.load %arg22[%c0_26, %c6, %c0_27] : memref<1x72x256xbf16, #tpu.memory_space<vmem>>, vector<1x64x256xbf16>
    %23 = tpu.concatenate %16, %17, %18, %19, %20, %21, %22 in 2 : vector<1x64x256xbf16>, vector<1x64x256xbf16>, vector<1x64x256xbf16>, vector<1x64x256xbf16>, vector<1x64x256xbf16>, vector<1x64x256xbf16>, vector<1x64x256xbf16> -> vector<1x64x1792xbf16>
    %24 = vector.shape_cast %23 : vector<1x64x1792xbf16> to vector<64x1792xbf16>
    %c0_28 = arith.constant 0 : index
    %c0_29 = arith.constant 0 : index
    %25 = vector.load %arg3[%c0_28, %c0_29] : memref<1792x128xbf16, #tpu.memory_space<vmem>>, vector<1792x128xbf16>
    %cst_30 = arith.constant dense<0.000000e+00> : vector<64x128xf32>
    %26 = tpu.matmul %24, %25, %cst_30 {dimension_numbers = #tpu.dot_dimension_numbers<[1], [0], [0], [1], [0, 0, 1, 1], [], []>} : vector<64x1792xbf16>, vector<1792x128xbf16>, vector<64x128xf32> -> vector<64x128xf32>
    %c0_31 = arith.constant 0 : index
    %c0_32 = arith.constant 0 : index
    %27 = vector.load %arg4[%c0_31, %c0_32] : memref<1x128xf32, #tpu.memory_space<vmem>>, vector<1x128xf32>
    %28 = vector.broadcast %27 : vector<1x128xf32> to vector<64x128xf32>
    %29 = arith.addf %26, %28 : vector<64x128xf32>
    %cst_33 = arith.constant 0.000000e+00 : f32
    %30 = vector.broadcast %cst_33 : f32 to vector<64x128xf32>
    %31 = arith.maximumf %29, %30 : vector<64x128xf32>
    %32 = vector.shape_cast %31 : vector<64x128xf32> to vector<1x64x128xf32>
    %cst_34 = arith.constant 0.000000e+00 : f32
    %33 = vector.broadcast %cst_34 : f32 to vector<1x1x128xf32>
    %34 = vector.extract_strided_slice %32 {offsets = [0, 0, 0], sizes = [1, 59, 128], strides = [1, 1, 1]} : vector<1x64x128xf32> to vector<1x59x128xf32>
    %35 = tpu.concatenate %33, %34 in 1 : vector<1x1x128xf32>, vector<1x59x128xf32> -> vector<1x60x128xf32>
    %36 = vector.shape_cast %35 : vector<1x60x128xf32> to vector<1x20x3x128xf32>
    %cst_35 = arith.constant dense<0xFF800000> : vector<1x20x128xf32>
    %37 = vector.multi_reduction <maximumf>, %36, %cst_35 [2] : vector<1x20x3x128xf32> to vector<1x20x128xf32>
    %38 = arith.truncf %37 : vector<1x20x128xf32> to vector<1x20x128xbf16>
    %c0_36 = arith.constant 0 : index
    %c1_37 = arith.constant 1 : index
    %c0_38 = arith.constant 0 : index
    %39 = vector.load %arg22[%c0_36, %c1_37, %c0_38] : memref<1x72x256xbf16, #tpu.memory_space<vmem>>, vector<1x20x128xbf16>
    tpu.vector_store %arg22[%c0_36, %c1_37, %c0_38], %38 {strides = array<i32>} : memref<1x72x256xbf16, #tpu.memory_space<vmem>>, vector<1x20x128xbf16>,
    %cst_39 = arith.constant 0.000000e+00 : bf16
    %40 = vector.broadcast %cst_39 : bf16 to vector<1x1x128xbf16>
    %c0_40 = arith.constant 0 : index
    %c21 = arith.constant 21 : index
    %c0_41 = arith.constant 0 : index
    %41 = vector.load %arg22[%c0_40, %c21, %c0_41] : memref<1x72x256xbf16, #tpu.memory_space<vmem>>, vector<1x1x128xbf16>
    tpu.vector_store %arg22[%c0_40, %c21, %c0_41], %40 {strides = array<i32>} : memref<1x72x256xbf16, #tpu.memory_space<vmem>>, vector<1x1x128xbf16>,
    %c0_42 = arith.constant 0 : index
    %c0_43 = arith.constant 0 : index
    %c0_44 = arith.constant 0 : index
    %42 = vector.load %arg22[%c0_42, %c0_43, %c0_44] : memref<1x72x256xbf16, #tpu.memory_space<vmem>>, vector<1x16x128xbf16>
    %c0_45 = arith.constant 0 : index
    %c1_46 = arith.constant 1 : index
    %c0_47 = arith.constant 0 : index
    %43 = vector.load %arg22[%c0_45, %c1_46, %c0_47] : memref<1x72x256xbf16, #tpu.memory_space<vmem>>, vector<1x16x128xbf16>
    %c0_48 = arith.constant 0 : index
    %c2_49 = arith.constant 2 : index
    %c0_50 = arith.constant 0 : index
    %44 = vector.load %arg22[%c0_48, %c2_49, %c0_50] : memref<1x72x256xbf16, #tpu.memory_space<vmem>>, vector<1x16x128xbf16>
    %c0_51 = arith.constant 0 : index
    %c3_52 = arith.constant 3 : index
    %c0_53 = arith.constant 0 : index
    %45 = vector.load %arg22[%c0_51, %c3_52, %c0_53] : memref<1x72x256xbf16, #tpu.memory_space<vmem>>, vector<1x16x128xbf16>
    %c0_54 = arith.constant 0 : index
    %c4_55 = arith.constant 4 : index
    %c0_56 = arith.constant 0 : index
    %46 = vector.load %arg22[%c0_54, %c4_55, %c0_56] : memref<1x72x256xbf16, #tpu.memory_space<vmem>>, vector<1x16x128xbf16>
    %c0_57 = arith.constant 0 : index
    %c5_58 = arith.constant 5 : index
    %c0_59 = arith.constant 0 : index
    %47 = vector.load %arg22[%c0_57, %c5_58, %c0_59] : memref<1x72x256xbf16, #tpu.memory_space<vmem>>, vector<1x16x128xbf16>
    %c0_60 = arith.constant 0 : index
    %c6_61 = arith.constant 6 : index
    %c0_62 = arith.constant 0 : index
    %48 = vector.load %arg22[%c0_60, %c6_61, %c0_62] : memref<1x72x256xbf16, #tpu.memory_space<vmem>>, vector<1x16x128xbf16>
    %49 = tpu.concatenate %42, %43, %44, %45, %46, %47, %48 in 2 : vector<1x16x128xbf16>, vector<1x16x128xbf16>, vector<1x16x128xbf16>, vector<1x16x128xbf16>, vector<1x16x128xbf16>, vector<1x16x128xbf16>, vector<1x16x128xbf16> -> vector<1x16x896xbf16>
    %50 = vector.shape_cast %49 : vector<1x16x896xbf16> to vector<16x896xbf16>
    %c0_63 = arith.constant 0 : index
    %c0_64 = arith.constant 0 : index
    %51 = vector.load %arg5[%c0_63, %c0_64] : memref<896x128xbf16, #tpu.memory_space<vmem>>, vector<896x128xbf16>
    %cst_65 = arith.constant dense<0.000000e+00> : vector<16x128xf32>
    %52 = tpu.matmul %50, %51, %cst_65 {dimension_numbers = #tpu.dot_dimension_numbers<[1], [0], [0], [1], [0, 0, 1, 1], [], []>} : vector<16x896xbf16>, vector<896x128xbf16>, vector<16x128xf32> -> vector<16x128xf32>
    %c0_66 = arith.constant 0 : index
    %c0_67 = arith.constant 0 : index
    %53 = vector.load %arg6[%c0_66, %c0_67] : memref<1x128xf32, #tpu.memory_space<vmem>>, vector<1x128xf32>
    %54 = vector.broadcast %53 : vector<1x128xf32> to vector<16x128xf32>
    %55 = arith.addf %52, %54 : vector<16x128xf32>
    %cst_68 = arith.constant 0.000000e+00 : f32
    %56 = vector.broadcast %cst_68 : f32 to vector<16x128xf32>
    %57 = arith.maximumf %55, %56 : vector<16x128xf32>
    %58 = vector.shape_cast %57 : vector<16x128xf32> to vector<1x16x128xf32>
    %cst_69 = arith.constant 0.000000e+00 : f32
    %59 = vector.broadcast %cst_69 : f32 to vector<1x1x128xf32>
    %cst_70 = arith.constant 0.000000e+00 : f32
    %60 = vector.broadcast %cst_70 : f32 to vector<1x1x128xf32>
    %61 = tpu.concatenate %59, %58, %60 in 1 : vector<1x1x128xf32>, vector<1x16x128xf32>, vector<1x1x128xf32> -> vector<1x18x128xf32>
    %62 = vector.shape_cast %61 : vector<1x18x128xf32> to vector<1x6x3x128xf32>
    %cst_71 = arith.constant dense<0xFF800000> : vector<1x6x128xf32>
    %63 = vector.multi_reduction <maximumf>, %62, %cst_71 [2] : vector<1x6x3x128xf32> to vector<1x6x128xf32>
    %64 = arith.truncf %63 : vector<1x6x128xf32> to vector<1x6x128xbf16>
    %c0_72 = arith.constant 0 : index
    %c1_73 = arith.constant 1 : index
    %c0_74 = arith.constant 0 : index
    %65 = vector.load %arg22[%c0_72, %c1_73, %c0_74] : memref<1x72x256xbf16, #tpu.memory_space<vmem>>, vector<1x6x128xbf16>
    tpu.vector_store %arg22[%c0_72, %c1_73, %c0_74], %64 {strides = array<i32>} : memref<1x72x256xbf16, #tpu.memory_space<vmem>>, vector<1x6x128xbf16>,
    %cst_75 = arith.constant 0.000000e+00 : bf16
    %66 = vector.broadcast %cst_75 : bf16 to vector<1x1x128xbf16>
    %c0_76 = arith.constant 0 : index
    %c7 = arith.constant 7 : index
    %c0_77 = arith.constant 0 : index
    %67 = vector.load %arg22[%c0_76, %c7, %c0_77] : memref<1x72x256xbf16, #tpu.memory_space<vmem>>, vector<1x1x128xbf16>
    tpu.vector_store %arg22[%c0_76, %c7, %c0_77], %66 {strides = array<i32>} : memref<1x72x256xbf16, #tpu.memory_space<vmem>>, vector<1x1x128xbf16>,
    %c0_78 = arith.constant 0 : index
    %c0_79 = arith.constant 0 : index
    %c0_80 = arith.constant 0 : index
    %68 = vector.load %arg22[%c0_78, %c0_79, %c0_80] : memref<1x72x256xbf16, #tpu.memory_space<vmem>>, vector<1x16x128xbf16>
    %c0_81 = arith.constant 0 : index
    %c1_82 = arith.constant 1 : index
    %c0_83 = arith.constant 0 : index
    %69 = vector.load %arg22[%c0_81, %c1_82, %c0_83] : memref<1x72x256xbf16, #tpu.memory_space<vmem>>, vector<1x16x128xbf16>
    %c0_84 = arith.constant 0 : index
    %c2_85 = arith.constant 2 : index
    %c0_86 = arith.constant 0 : index
    %70 = vector.load %arg22[%c0_84, %c2_85, %c0_86] : memref<1x72x256xbf16, #tpu.memory_space<vmem>>, vector<1x16x128xbf16>
    %71 = tpu.concatenate %68, %69, %70 in 2 : vector<1x16x128xbf16>, vector<1x16x128xbf16>, vector<1x16x128xbf16> -> vector<1x16x384xbf16>
    %72 = vector.shape_cast %71 : vector<1x16x384xbf16> to vector<16x384xbf16>
    %c0_87 = arith.constant 0 : index
    %c0_88 = arith.constant 0 : index
    %73 = vector.load %arg7[%c0_87, %c0_88] : memref<384x128xbf16, #tpu.memory_space<vmem>>, vector<384x128xbf16>
    %cst_89 = arith.constant dense<0.000000e+00> : vector<16x128xf32>
    %74 = tpu.matmul %72, %73, %cst_89 {dimension_numbers = #tpu.dot_dimension_numbers<[1], [0], [0], [1], [0, 0, 1, 1], [], []>} : vector<16x384xbf16>, vector<384x128xbf16>, vector<16x128xf32> -> vector<16x128xf32>
    %c0_90 = arith.constant 0 : index
    %c0_91 = arith.constant 0 : index
    %75 = vector.load %arg8[%c0_90, %c0_91] : memref<1x128xf32, #tpu.memory_space<vmem>>, vector<1x128xf32>
    %76 = vector.broadcast %75 : vector<1x128xf32> to vector<16x128xf32>
    %77 = arith.addf %74, %76 : vector<16x128xf32>
    %cst_92 = arith.constant 0.000000e+00 : f32
    %78 = vector.broadcast %cst_92 : f32 to vector<16x128xf32>
    %79 = arith.maximumf %77, %78 : vector<16x128xf32>
    %80 = vector.shape_cast %79 : vector<16x128xf32> to vector<1x16x128xf32>
    %81 = vector.extract_strided_slice %80 {offsets = [0, 0, 0], sizes = [1, 6, 128], strides = [1, 1, 1]} : vector<1x16x128xf32> to vector<1x6x128xf32>
    %82 = arith.truncf %81 : vector<1x6x128xf32> to vector<1x6x128xbf16>
    %c0_93 = arith.constant 0 : index
    %c1_94 = arith.constant 1 : index
    %c0_95 = arith.constant 0 : index
    %83 = vector.load %arg22[%c0_93, %c1_94, %c0_95] : memref<1x72x256xbf16, #tpu.memory_space<vmem>>, vector<1x6x128xbf16>
    tpu.vector_store %arg22[%c0_93, %c1_94, %c0_95], %82 {strides = array<i32>} : memref<1x72x256xbf16, #tpu.memory_space<vmem>>, vector<1x6x128xbf16>,
    %cst_96 = arith.constant 0.000000e+00 : bf16
    %84 = vector.broadcast %cst_96 : bf16 to vector<1x1x128xbf16>
    %c0_97 = arith.constant 0 : index
    %c7_98 = arith.constant 7 : index
    %c0_99 = arith.constant 0 : index
    %85 = vector.load %arg22[%c0_97, %c7_98, %c0_99] : memref<1x72x256xbf16, #tpu.memory_space<vmem>>, vector<1x1x128xbf16>
    tpu.vector_store %arg22[%c0_97, %c7_98, %c0_99], %84 {strides = array<i32>} : memref<1x72x256xbf16, #tpu.memory_space<vmem>>, vector<1x1x128xbf16>,
    %c0_100 = arith.constant 0 : index
    %c0_101 = arith.constant 0 : index
    %c0_102 = arith.constant 0 : index
    %86 = vector.load %arg22[%c0_100, %c0_101, %c0_102] : memref<1x72x256xbf16, #tpu.memory_space<vmem>>, vector<1x16x128xbf16>
    %c0_103 = arith.constant 0 : index
    %c1_104 = arith.constant 1 : index
    %c0_105 = arith.constant 0 : index
    %87 = vector.load %arg22[%c0_103, %c1_104, %c0_105] : memref<1x72x256xbf16, #tpu.memory_space<vmem>>, vector<1x16x128xbf16>
    %c0_106 = arith.constant 0 : index
    %c2_107 = arith.constant 2 : index
    %c0_108 = arith.constant 0 : index
    %88 = vector.load %arg22[%c0_106, %c2_107, %c0_108] : memref<1x72x256xbf16, #tpu.memory_space<vmem>>, vector<1x16x128xbf16>
    %89 = tpu.concatenate %86, %87, %88 in 2 : vector<1x16x128xbf16>, vector<1x16x128xbf16>, vector<1x16x128xbf16> -> vector<1x16x384xbf16>
    %90 = vector.shape_cast %89 : vector<1x16x384xbf16> to vector<16x384xbf16>
    %c0_109 = arith.constant 0 : index
    %c0_110 = arith.constant 0 : index
    %91 = vector.load %arg9[%c0_109, %c0_110] : memref<384x128xbf16, #tpu.memory_space<vmem>>, vector<384x128xbf16>
    %cst_111 = arith.constant dense<0.000000e+00> : vector<16x128xf32>
    %92 = tpu.matmul %90, %91, %cst_111 {dimension_numbers = #tpu.dot_dimension_numbers<[1], [0], [0], [1], [0, 0, 1, 1], [], []>} : vector<16x384xbf16>, vector<384x128xbf16>, vector<16x128xf32> -> vector<16x128xf32>
    %c0_112 = arith.constant 0 : index
    %c0_113 = arith.constant 0 : index
    %93 = vector.load %arg10[%c0_112, %c0_113] : memref<1x128xf32, #tpu.memory_space<vmem>>, vector<1x128xf32>
    %94 = vector.broadcast %93 : vector<1x128xf32> to vector<16x128xf32>
    %95 = arith.addf %92, %94 : vector<16x128xf32>
    %cst_114 = arith.constant 0.000000e+00 : f32
    %96 = vector.broadcast %cst_114 : f32 to vector<16x128xf32>
    %97 = arith.maximumf %95, %96 : vector<16x128xf32>
    %98 = vector.shape_cast %97 : vector<16x128xf32> to vector<1x16x128xf32>
    %99 = vector.extract_strided_slice %98 {offsets = [0, 0, 0], sizes = [1, 6, 128], strides = [1, 1, 1]} : vector<1x16x128xf32> to vector<1x6x128xf32>
    %100 = arith.truncf %99 : vector<1x6x128xf32> to vector<1x6x128xbf16>
    %c0_115 = arith.constant 0 : index
    %c1_116 = arith.constant 1 : index
    %c0_117 = arith.constant 0 : index
    %101 = vector.load %arg22[%c0_115, %c1_116, %c0_117] : memref<1x72x256xbf16, #tpu.memory_space<vmem>>, vector<1x6x128xbf16>
    tpu.vector_store %arg22[%c0_115, %c1_116, %c0_117], %100 {strides = array<i32>} : memref<1x72x256xbf16, #tpu.memory_space<vmem>>, vector<1x6x128xbf16>,
    %cst_118 = arith.constant 0.000000e+00 : bf16
    %102 = vector.broadcast %cst_118 : bf16 to vector<1x1x128xbf16>
    %c0_119 = arith.constant 0 : index
    %c7_120 = arith.constant 7 : index
    %c0_121 = arith.constant 0 : index
    %103 = vector.load %arg22[%c0_119, %c7_120, %c0_121] : memref<1x72x256xbf16, #tpu.memory_space<vmem>>, vector<1x1x128xbf16>
    tpu.vector_store %arg22[%c0_119, %c7_120, %c0_121], %102 {strides = array<i32>} : memref<1x72x256xbf16, #tpu.memory_space<vmem>>, vector<1x1x128xbf16>,
    %c0_122 = arith.constant 0 : index
    %c0_123 = arith.constant 0 : index
    %c0_124 = arith.constant 0 : index
    %104 = vector.load %arg22[%c0_122, %c0_123, %c0_124] : memref<1x72x256xbf16, #tpu.memory_space<vmem>>, vector<1x16x128xbf16>
    %c0_125 = arith.constant 0 : index
    %c1_126 = arith.constant 1 : index
    %c0_127 = arith.constant 0 : index
    %105 = vector.load %arg22[%c0_125, %c1_126, %c0_127] : memref<1x72x256xbf16, #tpu.memory_space<vmem>>, vector<1x16x128xbf16>
    %c0_128 = arith.constant 0 : index
    %c2_129 = arith.constant 2 : index
    %c0_130 = arith.constant 0 : index
    %106 = vector.load %arg22[%c0_128, %c2_129, %c0_130] : memref<1x72x256xbf16, #tpu.memory_space<vmem>>, vector<1x16x128xbf16>
    %107 = tpu.concatenate %104, %105, %106 in 2 : vector<1x16x128xbf16>, vector<1x16x128xbf16>, vector<1x16x128xbf16> -> vector<1x16x384xbf16>
    %108 = vector.shape_cast %107 : vector<1x16x384xbf16> to vector<16x384xbf16>
    %c0_131 = arith.constant 0 : index
    %c0_132 = arith.constant 0 : index
    %109 = vector.load %arg11[%c0_131, %c0_132] : memref<384x128xbf16, #tpu.memory_space<vmem>>, vector<384x128xbf16>
    %cst_133 = arith.constant dense<0.000000e+00> : vector<16x128xf32>
    %110 = tpu.matmul %108, %109, %cst_133 {dimension_numbers = #tpu.dot_dimension_numbers<[1], [0], [0], [1], [0, 0, 1, 1], [], []>} : vector<16x384xbf16>, vector<384x128xbf16>, vector<16x128xf32> -> vector<16x128xf32>
    %c0_134 = arith.constant 0 : index
    %c0_135 = arith.constant 0 : index
    %111 = vector.load %arg12[%c0_134, %c0_135] : memref<1x128xf32, #tpu.memory_space<vmem>>, vector<1x128xf32>
    %112 = vector.broadcast %111 : vector<1x128xf32> to vector<16x128xf32>
    %113 = arith.addf %110, %112 : vector<16x128xf32>
    %cst_136 = arith.constant 0.000000e+00 : f32
    %114 = vector.broadcast %cst_136 : f32 to vector<16x128xf32>
    %115 = arith.maximumf %113, %114 : vector<16x128xf32>
    %116 = vector.shape_cast %115 : vector<16x128xf32> to vector<1x16x128xf32>
    %117 = vector.extract_strided_slice %116 {offsets = [0, 0, 0], sizes = [1, 6, 128], strides = [1, 1, 1]} : vector<1x16x128xf32> to vector<1x6x128xf32>
    %118 = arith.truncf %117 : vector<1x6x128xf32> to vector<1x6x128xbf16>
    %c0_137 = arith.constant 0 : index
    %c1_138 = arith.constant 1 : index
    %c0_139 = arith.constant 0 : index
    %119 = vector.load %arg22[%c0_137, %c1_138, %c0_139] : memref<1x72x256xbf16, #tpu.memory_space<vmem>>, vector<1x6x128xbf16>
    tpu.vector_store %arg22[%c0_137, %c1_138, %c0_139], %118 {strides = array<i32>} : memref<1x72x256xbf16, #tpu.memory_space<vmem>>, vector<1x6x128xbf16>,
    %cst_140 = arith.constant 0.000000e+00 : bf16
    %120 = vector.broadcast %cst_140 : bf16 to vector<1x1x128xbf16>
    %c0_141 = arith.constant 0 : index
    %c7_142 = arith.constant 7 : index
    %c0_143 = arith.constant 0 : index
    %121 = vector.load %arg22[%c0_141, %c7_142, %c0_143] : memref<1x72x256xbf16, #tpu.memory_space<vmem>>, vector<1x1x128xbf16>
    tpu.vector_store %arg22[%c0_141, %c7_142, %c0_143], %120 {strides = array<i32>} : memref<1x72x256xbf16, #tpu.memory_space<vmem>>, vector<1x1x128xbf16>,
    %c0_144 = arith.constant 0 : index
    %c0_145 = arith.constant 0 : index
    %c0_146 = arith.constant 0 : index
    %122 = vector.load %arg22[%c0_144, %c0_145, %c0_146] : memref<1x72x256xbf16, #tpu.memory_space<vmem>>, vector<1x16x128xbf16>
    %c0_147 = arith.constant 0 : index
    %c1_148 = arith.constant 1 : index
    %c0_149 = arith.constant 0 : index
    %123 = vector.load %arg22[%c0_147, %c1_148, %c0_149] : memref<1x72x256xbf16, #tpu.memory_space<vmem>>, vector<1x16x128xbf16>
    %c0_150 = arith.constant 0 : index
    %c2_151 = arith.constant 2 : index
    %c0_152 = arith.constant 0 : index
    %124 = vector.load %arg22[%c0_150, %c2_151, %c0_152] : memref<1x72x256xbf16, #tpu.memory_space<vmem>>, vector<1x16x128xbf16>
    %125 = tpu.concatenate %122, %123, %124 in 2 : vector<1x16x128xbf16>, vector<1x16x128xbf16>, vector<1x16x128xbf16> -> vector<1x16x384xbf16>
    %126 = vector.shape_cast %125 : vector<1x16x384xbf16> to vector<16x384xbf16>
    %c0_153 = arith.constant 0 : index
    %c0_154 = arith.constant 0 : index
    %127 = vector.load %arg13[%c0_153, %c0_154] : memref<384x128xbf16, #tpu.memory_space<vmem>>, vector<384x128xbf16>
    %cst_155 = arith.constant dense<0.000000e+00> : vector<16x128xf32>
    %128 = tpu.matmul %126, %127, %cst_155 {dimension_numbers = #tpu.dot_dimension_numbers<[1], [0], [0], [1], [0, 0, 1, 1], [], []>} : vector<16x384xbf16>, vector<384x128xbf16>, vector<16x128xf32> -> vector<16x128xf32>
    %c0_156 = arith.constant 0 : index
    %c0_157 = arith.constant 0 : index
    %129 = vector.load %arg14[%c0_156, %c0_157] : memref<1x128xf32, #tpu.memory_space<vmem>>, vector<1x128xf32>
    %130 = vector.broadcast %129 : vector<1x128xf32> to vector<16x128xf32>
    %131 = arith.addf %128, %130 : vector<16x128xf32>
    %cst_158 = arith.constant 0.000000e+00 : f32
    %132 = vector.broadcast %cst_158 : f32 to vector<16x128xf32>
    %133 = arith.maximumf %131, %132 : vector<16x128xf32>
    %134 = vector.shape_cast %133 : vector<16x128xf32> to vector<1x16x128xf32>
    %135 = tpu.iota {dimensions = array<i32: 1>} : vector<1x16x128xi32>
    %c6_i32 = arith.constant 6 : i32
    %136 = vector.broadcast %c6_i32 : i32 to vector<1x16x128xi32>
    %137 = arith.cmpi slt, %135, %136 : vector<1x16x128xi32>
    %cst_159 = arith.constant 0.000000e+00 : f32
    %138 = vector.broadcast %cst_159 : f32 to vector<1x16x128xf32>
    %139 = arith.select %137, %134, %138 : vector<1x16x128xi1>, vector<1x16x128xf32>
    %cst_160 = arith.constant dense<0xFF800000> : vector<1x128xf32>
    %140 = vector.multi_reduction <maximumf>, %139, %cst_160 [1] : vector<1x16x128xf32> to vector<1x128xf32>
    %141 = arith.truncf %140 : vector<1x128xf32> to vector<1x128xbf16>
    %c0_161 = arith.constant 0 : index
    %c0_162 = arith.constant 0 : index
    %142 = vector.load %arg15[%c0_161, %c0_162] : memref<128x128xbf16, #tpu.memory_space<vmem>>, vector<128x128xbf16>
    %cst_163 = arith.constant dense<0.000000e+00> : vector<1x128xf32>
    %143 = tpu.matmul %141, %142, %cst_163 {dimension_numbers = #tpu.dot_dimension_numbers<[1], [0], [0], [1], [0, 0, 1, 1], [], []>} : vector<1x128xbf16>, vector<128x128xbf16>, vector<1x128xf32> -> vector<1x128xf32>
    %c0_164 = arith.constant 0 : index
    %c0_165 = arith.constant 0 : index
    %144 = vector.load %arg16[%c0_164, %c0_165] : memref<1x128xf32, #tpu.memory_space<vmem>>, vector<1x128xf32>
    %145 = arith.addf %143, %144 : vector<1x128xf32>
    %cst_166 = arith.constant 0.000000e+00 : f32
    %146 = vector.broadcast %cst_166 : f32 to vector<1x128xf32>
    %147 = arith.maximumf %145, %146 : vector<1x128xf32>
    %148 = arith.truncf %147 : vector<1x128xf32> to vector<1x128xbf16>
    %c0_167 = arith.constant 0 : index
    %c0_168 = arith.constant 0 : index
    %149 = vector.load %arg17[%c0_167, %c0_168] : memref<128x128xbf16, #tpu.memory_space<vmem>>, vector<128x128xbf16>
    %cst_169 = arith.constant dense<0.000000e+00> : vector<1x128xf32>
    %150 = tpu.matmul %148, %149, %cst_169 {dimension_numbers = #tpu.dot_dimension_numbers<[1], [0], [0], [1], [0, 0, 1, 1], [], []>} : vector<1x128xbf16>, vector<128x128xbf16>, vector<1x128xf32> -> vector<1x128xf32>
    %c0_170 = arith.constant 0 : index
    %c0_171 = arith.constant 0 : index
    %151 = vector.load %arg18[%c0_170, %c0_171] : memref<1x128xf32, #tpu.memory_space<vmem>>, vector<1x128xf32>
    %152 = arith.addf %150, %151 : vector<1x128xf32>
    %cst_172 = arith.constant 0.000000e+00 : f32
    %153 = vector.broadcast %cst_172 : f32 to vector<1x128xf32>
    %154 = arith.maximumf %152, %153 : vector<1x128xf32>
    %155 = arith.truncf %154 : vector<1x128xf32> to vector<1x128xbf16>
    %c0_173 = arith.constant 0 : index
    %c0_174 = arith.constant 0 : index
    %156 = vector.load %arg19[%c0_173, %c0_174] : memref<128x128xbf16, #tpu.memory_space<vmem>>, vector<128x128xbf16>
    %cst_175 = arith.constant dense<0.000000e+00> : vector<1x128xf32>
    %157 = tpu.matmul %155, %156, %cst_175 {dimension_numbers = #tpu.dot_dimension_numbers<[1], [0], [0], [1], [0, 0, 1, 1], [], []>} : vector<1x128xbf16>, vector<128x128xbf16>, vector<1x128xf32> -> vector<1x128xf32>
    %c0_176 = arith.constant 0 : index
    %c0_177 = arith.constant 0 : index
    %158 = vector.load %arg20[%c0_176, %c0_177] : memref<1x128xf32, #tpu.memory_space<vmem>>, vector<1x128xf32>
    %159 = arith.addf %157, %158 : vector<1x128xf32>
    %160 = vector.shape_cast %159 : vector<1x128xf32> to vector<1x1x128xf32>
    %c0_178 = arith.constant 0 : index
    %c0_179 = arith.constant 0 : index
    %c0_180 = arith.constant 0 : index
    %161 = vector.load %arg21[%c0_178, %c0_179, %c0_180] : memref<1x1x128xf32, #tpu.memory_space<vmem>>, vector<1x1x128xf32>
    tpu.vector_store %arg21[%c0_178, %c0_179, %c0_180], %160 {strides = array<i32>} : memref<1x1x128xf32, #tpu.memory_space<vmem>>, vector<1x1x128xf32>,
    return
  }
  func.func @transform_0(%arg0: i32) -> (i32, i32) {
    %c0_i32 = arith.constant 0 : i32
    %c0_i32_0 = arith.constant 0 : i32
    return %arg0, %c0_i32 : i32, i32
  }
  func.func @transform_1(%arg0: i32) -> (i32, i32) {
    %c0_i32 = arith.constant 0 : i32
    %c0_i32_0 = arith.constant 0 : i32
    %c0_i32_1 = arith.constant 0 : i32
    return %c0_i32, %c0_i32_0 : i32, i32
  }
  func.func @transform_2(%arg0: i32) -> (i32, i32) {
    %c0_i32 = arith.constant 0 : i32
    %c0_i32_0 = arith.constant 0 : i32
    %c0_i32_1 = arith.constant 0 : i32
    return %c0_i32, %c0_i32_0 : i32, i32
  }
  func.func @transform_3(%arg0: i32) -> (i32, i32) {
    %c0_i32 = arith.constant 0 : i32
    %c0_i32_0 = arith.constant 0 : i32
    %c0_i32_1 = arith.constant 0 : i32
    return %c0_i32, %c0_i32_0 : i32, i32
  }
  func.func @transform_4(%arg0: i32) -> (i32, i32) {
    %c0_i32 = arith.constant 0 : i32
    %c0_i32_0 = arith.constant 0 : i32
    %c0_i32_1 = arith.constant 0 : i32
    return %c0_i32, %c0_i32_0 : i32, i32
  }
  func.func @transform_5(%arg0: i32) -> (i32, i32) {
    %c0_i32 = arith.constant 0 : i32
    %c0_i32_0 = arith.constant 0 : i32
    %c0_i32_1 = arith.constant 0 : i32
    return %c0_i32, %c0_i32_0 : i32, i32
  }
  func.func @transform_6(%arg0: i32) -> (i32, i32) {
    %c0_i32 = arith.constant 0 : i32
    %c0_i32_0 = arith.constant 0 : i32
    %c0_i32_1 = arith.constant 0 : i32
    return %c0_i32, %c0_i32_0 : i32, i32
  }
  func.func @transform_7(%arg0: i32) -> (i32, i32) {
    %c0_i32 = arith.constant 0 : i32
    %c0_i32_0 = arith.constant 0 : i32
    %c0_i32_1 = arith.constant 0 : i32
    return %c0_i32, %c0_i32_0 : i32, i32
  }
  func.func @transform_8(%arg0: i32) -> (i32, i32) {
    %c0_i32 = arith.constant 0 : i32
    %c0_i32_0 = arith.constant 0 : i32
    %c0_i32_1 = arith.constant 0 : i32
    return %c0_i32, %c0_i32_0 : i32, i32
  }
  func.func @transform_9(%arg0: i32) -> (i32, i32) {
    %c0_i32 = arith.constant 0 : i32
    %c0_i32_0 = arith.constant 0 : i32
    %c0_i32_1 = arith.constant 0 : i32
    return %c0_i32, %c0_i32_0 : i32, i32
  }
  func.func @transform_10(%arg0: i32) -> (i32, i32) {
    %c0_i32 = arith.constant 0 : i32
    %c0_i32_0 = arith.constant 0 : i32
    %c0_i32_1 = arith.constant 0 : i32
    return %c0_i32, %c0_i32_0 : i32, i32
  }
  func.func @transform_11(%arg0: i32) -> (i32, i32) {
    %c0_i32 = arith.constant 0 : i32
    %c0_i32_0 = arith.constant 0 : i32
    %c0_i32_1 = arith.constant 0 : i32
    return %c0_i32, %c0_i32_0 : i32, i32
  }
  func.func @transform_12(%arg0: i32) -> (i32, i32) {
    %c0_i32 = arith.constant 0 : i32
    %c0_i32_0 = arith.constant 0 : i32
    %c0_i32_1 = arith.constant 0 : i32
    return %c0_i32, %c0_i32_0 : i32, i32
  }
  func.func @transform_13(%arg0: i32) -> (i32, i32) {
    %c0_i32 = arith.constant 0 : i32
    %c0_i32_0 = arith.constant 0 : i32
    %c0_i32_1 = arith.constant 0 : i32
    return %c0_i32, %c0_i32_0 : i32, i32
  }
  func.func @transform_14(%arg0: i32) -> (i32, i32) {
    %c0_i32 = arith.constant 0 : i32
    %c0_i32_0 = arith.constant 0 : i32
    %c0_i32_1 = arith.constant 0 : i32
    return %c0_i32, %c0_i32_0 : i32, i32
  }
  func.func @transform_15(%arg0: i32) -> (i32, i32) {
    %c0_i32 = arith.constant 0 : i32
    %c0_i32_0 = arith.constant 0 : i32
    %c0_i32_1 = arith.constant 0 : i32
    return %c0_i32, %c0_i32_0 : i32, i32
  }
  func.func @transform_16(%arg0: i32) -> (i32, i32) {
    %c0_i32 = arith.constant 0 : i32
    %c0_i32_0 = arith.constant 0 : i32
    %c0_i32_1 = arith.constant 0 : i32
    return %c0_i32, %c0_i32_0 : i32, i32
  }
  func.func @transform_17(%arg0: i32) -> (i32, i32) {
    %c0_i32 = arith.constant 0 : i32
    %c0_i32_0 = arith.constant 0 : i32
    %c0_i32_1 = arith.constant 0 : i32
    return %c0_i32, %c0_i32_0 : i32, i32
  }
  func.func @transform_18(%arg0: i32) -> (i32, i32) {
    %c0_i32 = arith.constant 0 : i32
    %c0_i32_0 = arith.constant 0 : i32
    %c0_i32_1 = arith.constant 0 : i32
    return %c0_i32, %c0_i32_0 : i32, i32
  }
  func.func @transform_19(%arg0: i32) -> (i32, i32) {
    %c0_i32 = arith.constant 0 : i32
    %c0_i32_0 = arith.constant 0 : i32
    %c0_i32_1 = arith.constant 0 : i32
    return %c0_i32, %c0_i32_0 : i32, i32
  }
  func.func @transform_20(%arg0: i32) -> (i32, i32, i32) {
    %c0_i32 = arith.constant 0 : i32
    %c0_i32_0 = arith.constant 0 : i32
    %c0_i32_1 = arith.constant 0 : i32
    return %arg0, %c0_i32, %c0_i32_0 : i32, i32, i32
  }
}

</mosaic_0001>

<bundles_post_ra>
// kernel: tpu_custom_call.1
= control target key start
LH: loop header
LB: loop body
LE: loop exit
PB: predicated region body
PF: predicated region fallthrough
CT: control target
= control target key end

     0   :  { %s10990_s0 = inlined_call_operand.vmem [shape: s32[128,1], index: 0, kind: input, shape index: {}]   ;;  %s10991_s1 = inlined_call_operand.hbm [shape: bf16[256,256], index: 1, kind: input, shape index: {}]   ;;  %s10992_s2 = inlined_call_operand.hbm [shape: bf16[1792,128], index: 2, kind: input, shape index: {}]   ;;  %s10993_s3 = inlined_call_operand.vmem [shape: f32[1,128], index: 3, kind: input, shape index: {}]   ;;  %s10994_s4 = inlined_call_operand.hbm [shape: bf16[896,128], index: 4, kind: input, shape index: {}]   ;;  %s10995_s5 = inlined_call_operand.hbm [shape: f32[1,128], index: 5, kind: input, shape index: {}]   ;;  %s10996_s6 = inlined_call_operand.hbm [shape: bf16[384,128], index: 6, kind: input, shape index: {}]   ;;  %s10997_s7 = inlined_call_operand.hbm [shape: f32[1,128], index: 7, kind: input, shape index: {}]   ;;  %s10998_s8 = inlined_call_operand.hbm [shape: bf16[384,128], index: 8, kind: input, shape index: {}]   ;;  %s10999_s9 = inlined_call_operand.hbm [shape: f32[1,128], index: 9, kind: input, shape index: {}]   ;;  %s11000_s10 = inlined_call_operand.hbm [shape: bf16[384,128], index: 10, kind: input, shape index: {}]   ;;  %s11001_s11 = inlined_call_operand.hbm [shape: f32[1,128], index: 11, kind: input, shape index: {}]   ;;  %s11002_s12 = inlined_call_operand.hbm [shape: bf16[384,128], index: 12, kind: input, shape index: {}]   ;;  %s11003_s13 = inlined_call_operand.hbm [shape: f32[1,128], index: 13, kind: input, shape index: {}]   ;;  %s11004_s14 = inlined_call_operand.vmem [shape: bf16[128,128], index: 14, kind: input, shape index: {}]   ;;  %s11005_s15 = inlined_call_operand.hbm [shape: f32[1,128], index: 15, kind: input, shape index: {}]   ;;  %s11006_s16 = inlined_call_operand.vmem [shape: bf16[128,128], index: 16, kind: input, shape index: {}]   ;;  %s11007_s17 = inlined_call_operand.hbm [shape: f32[1,128], index: 17, kind: input, shape index: {}]   ;;  %s11008_s18 = inlined_call_operand.vmem [shape: bf16[128,128], index: 18, kind: input, shape index: {}]   ;;  %s11009_s19 = inlined_call_operand.vmem [shape: f32[1,128], index: 19, kind: input, shape index: {}]   ;;  %s11010_s20 = inlined_call_operand.hbm [shape: f32[2,1,128], index: 20, kind: output, shape index: {}]  }
   0x1   :  { %11036 = sst [smem:[#allocation44_spill]] %s10990_s0 }
   0x2   :  { %11037 = sst [smem:[#allocation45_spill]] %s10991_s1 }
   0x3   :  { %11038 = sst [smem:[#allocation46_spill]] %s10992_s2 }
   0x4   :  { %11039 = sst [smem:[#allocation47_spill]] %s10993_s3 }
   0x5   :  { %11040 = sst [smem:[#allocation48_spill]] %s10994_s4 }
   0x6   :  { %11041 = sst [smem:[#allocation49_spill]] %s10995_s5 }
   0x7   :  { %11042 = sst [smem:[#allocation50_spill]] %s10997_s7 }
   0x8   :  { %11043 = sst [smem:[#allocation51_spill]] %s10999_s9 }
   0x9   :  { %11044 = sst [smem:[#allocation52_spill]] %s11001_s11 }
   0xa   :  { %11045 = sst [smem:[#allocation53_spill]] %s11006_s16 }
   0xb   :  { %11046 = sst [smem:[#allocation54_spill]] %s11008_s18 }
   0xc   :  { %11047 = sst [smem:[#allocation55_spill]] %s11009_s19 }
   0xd   :  { %11048 = sst [smem:[#allocation56_spill]] %s11010_s20 }
   0xe   :  { %25 = vsyncpa [#allocation4], 0 }
   0xf   :  { %26 = vsyncpa [#allocation7], 0 }
  0x10   :  { %27 = vsyncpa [#allocation10], 0 }
  0x11   :  { %28 = vsyncpa [#allocation13], 0 }
  0x12   :  { %29 = vsyncpa [#allocation16], 0 }
  0x13   :  { %30 = vsyncpa [#allocation19], 0 }
  0x14   :  { %31 = vsyncpa [#allocation22], 0 }
  0x15   :  { %32 = vsyncpa [#allocation25], 0 }
  0x16   :  { %33 = vsyncpa [#allocation5], 0 }
  0x17   :  { %35 = vsyncpa [#allocation5 + $0x1], 0  ;;  %s9565_s1 = smov 0   ;;  %s9567_s22 = smov 0  }
  0x18   :  { %11049 = sst [smem:[#allocation36_spill]] %s9565_s1  ;;  %s9569_s23 = smov 0  }
  0x19   :  { %s9571_s24 = smov 0  }
  0x1a LB: > { %s11051_s1 = sld [smem:[#allocation36_spill]]  ;;  %11053 = sst [smem:[#allocation37_spill]] %s9426_s22  ;;  %s9434_s24 = sphi %s9571_s24, %s11125_s24   ;;  %s9430_s23 = sphi %s9569_s23, %s11128_s23   ;;  %s9426_s22 = sphi %s9567_s22, %s11130_s22  }
  0x1b   : > { %11054 = sst [smem:[#allocation38_spill]] %s9430_s23  ;;  %s9586_s2 = sadd.s32 4294967295, %s9434_s24  }
  0x1c   : > { %11055 = sst [smem:[#allocation39_spill]] %s9434_s24  ;;  %s7208_s25 = sadd.s32 4294967294, %s9434_s24  }
  0x1d   : > { %s9590_s3 = sadd.s32 1, %s9434_s24   ;;  %s473_s26 = sadd.s32 1, %s9430_s23 }
  0x1e   : > { %11056 = sst [smem:[#allocation40_spill]] %s9590_s3  ;;  %s470_s27 = ssub.s32 %s9434_s24, %s9590_s3 }
  0x1f   : > { %p483_p0 = scmp.ne.s32.totalorder %s9430_s23, %s9426_s22  ;;  %p471_p1 = scmp.eq.s32.totalorder %s470_s27, 0 }
  0x20   : > { %11052 = sst [smem:[#allocation36_spill]] %s11051_s1  ;;  %p484_p2 = scmp.eq.s32.totalorder %s9586_s2, 1 }
  0x21   : > { %p489_p3 = scmp.ne.s32.totalorder %s9426_s22, %s11051_s1  ;;  %p490_p4 = scmp.eq.s32.totalorder %s7208_s25, 1 }
  0x22   : > { %s9601_s28 = scalar_select %p471_p1, %s9430_s23, %s473_s26  }
  0x23   : > { %p9603_p5 = por %p484_p2, %p483_p0  ;;  %p9607_p6 = por %p490_p4, %p489_p3 }
  0x24   : > { %11057 = sst [smem:[#allocation41_spill]] %s9601_s28  ;;  %p7209_p7 = scmp.ge.s32.totalorder %s9434_s24, 1 }
  0x25   : > { %s11058_s4 = scalar_select %p9603_p5, 1, 0 }
  0x26   : > { %s11060_s29 = scalar_select %p9607_p6, 1, 0 }
  0x27   : > { %11059 = sst [smem:[#allocation42_spill]] %s11058_s4  ;;  %p497_p8 = scmp.lt.s32.totalorder %s9434_s24, 3 }
  0x28   : > { %11061 = sst [smem:[#allocation43_spill]] %s11060_s29  ;;  %p11023_p9 = scmp.eq.s32.totalorder %s9586_s2, 0 }
  0x29   : > { %p9614_p10 = pnand %p7209_p7, %p497_p8  ;;  %s9436_s0 = smov [#allocation6]  }
  0x2a   : > { %s522_s21 = sshll.u32 %s9436_s0, 4  ;;  %s9437_s26 = smov [#allocation9]   ;;  %s9620_s21 = int_to_ptr.vmem [resolvable:$true] %s522_s21 }
  0x2b   : > { %s11062_s30 = scalar_select %p9614_p10, 1, 0 }
  0x2c   : > { %p8454_p11 = pneg %p9614_p10  ;;  %s552_s27 = sshll.u32 %s9437_s26, 4  ;;  %s9628_s27 = int_to_ptr.vmem [resolvable:$true] %s552_s27 }
  0x2d   : > { %s9438_s28 = smov [#allocation12]   ;;  %s11064_s0 = sld [smem:[#allocation46_spill]] }
  0x2e   : > { %p9624_p12 = pnand %p11023_p9, %p8454_p11  ;;  %s9630_s23 = sshll.u32 %s9438_s28, 4  ;;  %s577_s23 = int_to_ptr.vmem [resolvable:$true] %s9630_s23 }
  0x30   : > { %p9640_p0 = pneg %p9624_p12 }
  0x33   : > { %s8948_s1 = scalar_lea.hbm %s11064_s0, 14336 }
  0x34   : > { %p8949_p13 = scmp.ne.s32.totalorder %s11064_s0, %s8948_s1  ;;  %p8955_p3 = scmp.lt.u32.totalorder %s8948_s1, %s11064_s0 }
  0x36   : > { %p8951_p1 = pnand %p9640_p0, %p8949_p13 }
  0x38   : > { %p8952_p2 = pneg %p8951_p1 }
  0x3a   : > { %p8957_p4 = pnand %p8955_p3, %p8952_p2 }
  0x3c   : > { %8960 = shalt.err (!%p8957_p4)
}
  0x3d   : > { %s8961_s20 = scalar_lea.vmem %s9620_s21, 14336  ;;  %p8969_p9 = scmp.lt.s32.totalorder %s9620_s21, %s9620_s21 }
  0x3e   : > { %p8962_p7 = scmp.ne.s32.totalorder %s9620_s21, %s8961_s20  ;;  %p8970_p6 = scmp.lt.s32.totalorder %s8961_s20, %s8961_s20 }
  0x40   : > { %p8964_p8 = pnand %p8962_p7, %p9640_p0  ;;  %p8971_p13 = por %p8970_p6, %p8969_p9 }
  0x42   : > { %p8965_p11 = pneg %p8964_p8 }
  0x44   : > { %p8972_p1 = pnand %p8971_p13, %p8965_p11 }
  0x46   : > { %8975 = shalt.err (!%p8972_p1)
}
  0x47   : > { %s11029_s24 = smov 64   ;;  %s11031_s1 = smov 4  }
  0x48   : > { %8460 = dma.hbm_to_vmem [thread:$0]  (!%p9624_p12), %s11064_s0, 14336, %s9620_s21, [#allocation7], %s11029_s24, %s11029_s24, %s11031_s1  }
  0x49   : > { %s11066_s5 = sld [smem:[#allocation49_spill]] }
  0x4f   : > { %s8976_s20 = scalar_lea.hbm %s11066_s5, 16 }
  0x50   : > { %p8977_p6 = scmp.ne.s32.totalorder %s11066_s5, %s8976_s20  ;;  %p8983_p3 = scmp.lt.u32.totalorder %s8976_s20, %s11066_s5 }
  0x52   : > { %p8979_p9 = pnand %p8977_p6, %p9640_p0 }
  0x54   : > { %p8980_p2 = pneg %p8979_p9 }
  0x56   : > { %p8985_p4 = pnand %p8983_p3, %p8980_p2 }
  0x58   : > { %8988 = shalt.err (!%p8985_p4)
}
  0x59   : > { %s8989_s21 = scalar_lea.vmem %s9628_s27, 16  ;;  %s8996_s19 = scalar_lea.vmem %s9628_s27, 32 }
  0x5a   : > { %p8990_p7 = scmp.ne.s32.totalorder %s9628_s27, %s8989_s21  ;;  %p8997_p13 = scmp.lt.s32.totalorder %s9628_s27, %s9628_s27 }
  0x5b   : > { %p8998_p1 = scmp.lt.s32.totalorder %s8996_s19, %s8989_s21 }
  0x5c   : > { %p8992_p8 = pnand %p8990_p7, %p9640_p0 }
  0x5d   : > { %p8999_p6 = por %p8998_p1, %p8997_p13 }
  0x5e   : > { %p8993_p11 = pneg %p8992_p8 }
  0x60   : > { %p9000_p9 = pnand %p8999_p6, %p8993_p11 }
  0x62   : > { %9003 = shalt.err (!%p9000_p9)
}
  0x63   : > { %8466 = dma.hbm_to_vmem [thread:$0]  (!%p9624_p12), %s11066_s5, 16, %s9628_s27, [#allocation10]  }
  0x64   : > { %s11067_s7 = sld [smem:[#allocation50_spill]] }
  0x6a   : > { %s9004_s29 = scalar_lea.hbm %s11067_s7, 16 }
  0x6b   : > { %p9005_p2 = scmp.ne.s32.totalorder %s11067_s7, %s9004_s29  ;;  %p9011_p7 = scmp.lt.u32.totalorder %s9004_s29, %s11067_s7 }
  0x6d   : > { %p9007_p3 = pnand %p9005_p2, %p9640_p0 }
  0x6f   : > { %p9008_p4 = pneg %p9007_p3 }
  0x71   : > { %p9013_p8 = pnand %p9011_p7, %p9008_p4 }
  0x73   : > { %9016 = shalt.err (!%p9013_p8)
}
  0x74   : > { %s9017_s19 = scalar_lea.vmem %s577_s23, 16  ;;  %s9024_s27 = scalar_lea.vmem %s577_s23, 32 }
  0x75   : > { %p9018_p11 = scmp.ne.s32.totalorder %s577_s23, %s9017_s19  ;;  %p9025_p6 = scmp.lt.s32.totalorder %s577_s23, %s577_s23 }
  0x76   : > { %p9026_p9 = scmp.lt.s32.totalorder %s9024_s27, %s9017_s19 }
  0x77   : > { %p9020_p13 = pnand %p9018_p11, %p9640_p0 }
  0x78   : > { %p9027_p5 = por %p9026_p9, %p9025_p6 }
  0x79   : > { %p9021_p1 = pneg %p9020_p13 }
  0x7b   : > { %p9028_p10 = pnand %p9027_p5, %p9021_p1 }
  0x7d   : > { %9031 = shalt.err (!%p9028_p10)
}
  0x7e   : > { %8472 = dma.hbm_to_vmem [thread:$0]  (!%p9624_p12), %s11067_s7, 16, %s577_s23, [#allocation13]  }
  0x7f   : > { %s9441_s22 = smov [#allocation15]   ;;  %s9442_s29 = smov [#allocation18]  }
  0x80   : > { %s600_s3 = sshll.u32 %s9441_s22, 4  ;;  %s624_s26 = sshll.u32 %s9442_s29, 4  ;;  %s601_s3 = int_to_ptr.vmem [resolvable:$true] %s600_s3  ;;  %s625_s26 = int_to_ptr.vmem [resolvable:$true] %s624_s26 }
  0x81   : > { %s11068_s9 = sld [smem:[#allocation51_spill]] }
  0x87   : > { %s9032_s21 = scalar_lea.hbm %s11068_s9, 16 }
  0x88   : > { %p9033_p5 = scmp.ne.s32.totalorder %s11068_s9, %s9032_s21  ;;  %p9039_p3 = scmp.lt.u32.totalorder %s9032_s21, %s11068_s9 }
  0x8a   : > { %p9035_p10 = pnand %p9033_p5, %p9640_p0 }
  0x8c   : > { %p9036_p2 = pneg %p9035_p10 }
  0x8e   : > { %p9041_p4 = pnand %p9039_p3, %p9036_p2 }
  0x90   : > { %9044 = shalt.err (!%p9041_p4)
}
  0x91   : > { %s9045_s23 = scalar_lea.vmem %s601_s3, 16  ;;  %s9052_s18 = scalar_lea.vmem %s601_s3, 32 }
  0x92   : > { %p9046_p7 = scmp.ne.s32.totalorder %s601_s3, %s9045_s23  ;;  %p9053_p13 = scmp.lt.s32.totalorder %s601_s3, %s601_s3 }
  0x93   : > { %p9054_p1 = scmp.lt.s32.totalorder %s9052_s18, %s9045_s23 }
  0x94   : > { %p9048_p8 = pnand %p9046_p7, %p9640_p0 }
  0x95   : > { %p9055_p6 = por %p9054_p1, %p9053_p13 }
  0x96   : > { %p9049_p11 = pneg %p9048_p8 }
  0x98   : > { %p9056_p9 = pnand %p9055_p6, %p9049_p11 }
  0x9a   : > { %9059 = shalt.err (!%p9056_p9)
}
  0x9b   : > { %8478 = dma.hbm_to_vmem [thread:$0]  (!%p9624_p12), %s11068_s9, 16, %s601_s3, [#allocation16]  }
  0x9c   : > { %s11069_s11 = sld [smem:[#allocation52_spill]] }
  0xa2   : > { %s9060_s20 = scalar_lea.hbm %s11069_s11, 16 }
  0xa3   : > { %p9061_p5 = scmp.ne.s32.totalorder %s11069_s11, %s9060_s20  ;;  %p9067_p3 = scmp.lt.u32.totalorder %s9060_s20, %s11069_s11 }
  0xa5   : > { %p9063_p10 = pnand %p9061_p5, %p9640_p0 }
  0xa7   : > { %p9064_p2 = pneg %p9063_p10 }
  0xa9   : > { %p9069_p4 = pnand %p9067_p3, %p9064_p2 }
  0xab   : > { %9072 = shalt.err (!%p9069_p4)
}
  0xac   : > { %s9073_s23 = scalar_lea.vmem %s625_s26, 16  ;;  %s9080_s3 = scalar_lea.vmem %s625_s26, 32 }
  0xad   : > { %p9074_p7 = scmp.ne.s32.totalorder %s625_s26, %s9073_s23  ;;  %p9081_p13 = scmp.lt.s32.totalorder %s625_s26, %s625_s26 }
  0xae   : > { %p9082_p1 = scmp.lt.s32.totalorder %s9080_s3, %s9073_s23 }
  0xaf   : > { %p9076_p8 = pnand %p9074_p7, %p9640_p0 }
  0xb0   : > { %p9083_p6 = por %p9082_p1, %p9081_p13 }
  0xb1   : > { %p9077_p11 = pneg %p9076_p8 }
  0xb3   : > { %p9084_p9 = pnand %p9083_p6, %p9077_p11 }
  0xb5   : > { %9087 = shalt.err (!%p9084_p9)
}
  0xb6   : > { %8484 = dma.hbm_to_vmem [thread:$0]  (!%p9624_p12), %s11069_s11, 16, %s625_s26, [#allocation19]  }
  0xb7   : > { %s9443_s29 = smov [#allocation21]   ;;  %s9444_s28 = smov [#allocation3]  }
  0xb8   : > { %s648_s24 = sshll.u32 %s9443_s29, 4  ;;  %s509_s20 = sshll.u32 %s9444_s28, 4  ;;  %s649_s24 = int_to_ptr.vmem [resolvable:$true] %s648_s24  ;;  %s510_s20 = int_to_ptr.vmem [resolvable:$true] %s509_s20 }
  0xb9   : > { %s9088_s27 = scalar_lea.hbm %s11003_s13, 16 }
  0xba   : > { %p9089_p5 = scmp.ne.s32.totalorder %s11003_s13, %s9088_s27  ;;  %p9095_p3 = scmp.lt.u32.totalorder %s9088_s27, %s11003_s13 }
  0xbc   : > { %p9091_p10 = pnand %p9089_p5, %p9640_p0 }
  0xbe   : > { %p9092_p2 = pneg %p9091_p10 }
  0xc0   : > { %p9097_p4 = pnand %p9095_p3, %p9092_p2 }
  0xc2   : > { %9100 = shalt.err (!%p9097_p4)
}
  0xc3   : > { %s9101_s26 = scalar_lea.vmem %s649_s24, 16  ;;  %s9108_s22 = scalar_lea.vmem %s649_s24, 32 }
  0xc4   : > { %p9102_p7 = scmp.ne.s32.totalorder %s649_s24, %s9101_s26  ;;  %p9109_p13 = scmp.lt.s32.totalorder %s649_s24, %s649_s24 }
  0xc5   : > { %p9110_p1 = scmp.lt.s32.totalorder %s9108_s22, %s9101_s26 }
  0xc6   : > { %p9104_p8 = pnand %p9102_p7, %p9640_p0 }
  0xc7   : > { %p9111_p6 = por %p9110_p1, %p9109_p13 }
  0xc8   : > { %p9105_p11 = pneg %p9104_p8 }
  0xca   : > { %p9112_p9 = pnand %p9111_p6, %p9105_p11 }
  0xcc   : > { %9115 = shalt.err (!%p9112_p9)
}
  0xcd   : > { %8490 = dma.hbm_to_vmem [thread:$0]  (!%p9624_p12), %s11003_s13, 16, %s649_s24, [#allocation22]  }
  0xce   : > { %s11070_s27 = sld [smem:[#allocation45_spill]] }
  0xd4   : > { %s9116_s16 = scalar_lea.hbm %s11070_s27, 4096 }
  0xd5   : > { %p9117_p5 = scmp.ne.s32.totalorder %s11070_s27, %s9116_s16  ;;  %p9123_p3 = scmp.lt.u32.totalorder %s9116_s16, %s11070_s27 }
  0xd7   : > { %p9119_p10 = pnand %p9117_p5, %p9640_p0 }
  0xd9   : > { %p9120_p2 = pneg %p9119_p10 }
  0xdb   : > { %p9125_p4 = pnand %p9123_p3, %p9120_p2 }
  0xdd   : > { %9128 = shalt.err (!%p9125_p4)
}
  0xde   : > { %s9129_s22 = scalar_lea.vmem %s510_s20, 4096  ;;  %p9137_p13 = scmp.lt.s32.totalorder %s510_s20, %s510_s20 }
  0xdf   : > { %p9130_p7 = scmp.ne.s32.totalorder %s510_s20, %s9129_s22  ;;  %p9138_p1 = scmp.lt.s32.totalorder %s9129_s22, %s9129_s22 }
  0xe1   : > { %p9132_p8 = pnand %p9130_p7, %p9640_p0  ;;  %p9139_p6 = por %p9138_p1, %p9137_p13 }
  0xe3   : > { %p9133_p11 = pneg %p9132_p8 }
  0xe5   : > { %p9140_p9 = pnand %p9139_p6, %p9133_p11 }
  0xe7   : > { %9143 = shalt.err (!%p9140_p9)
}
  0xe8   : > { %s9445_s24 = smov 128   ;;  %s9446_s29 = smov 8  }
  0xe9   : > { %8457 = dma.hbm_to_vmem [thread:$0]  (!%p9624_p12), %s11070_s27, 4096, %s510_s20, [#allocation4], %s9445_s24, %s9445_s24, %s9446_s29  }
  0xea   : > { %s9447_s19 = smov [#allocation8]   ;;  %s9448_s23 = smov [#allocation11]  }
  0xeb   : > { %s538_s16 = sshll.u32 %s9447_s19, 4  ;;  %s562_s3 = sshll.u32 %s9448_s23, 4  ;;  %s539_s16 = int_to_ptr.vmem [resolvable:$true] %s538_s16  ;;  %s563_s3 = int_to_ptr.vmem [resolvable:$true] %s562_s3 }
  0xec   : > { %s11071_s22 = sld [smem:[#allocation48_spill]] }
  0xf2   : > { %s11072_s1 = smov %s11071_s22  ;;  %s9144_s0 = scalar_lea.hbm %s11071_s22, 7168 }
  0xf3   : > { %p9145_p5 = scmp.ne.s32.totalorder %s11072_s1, %s9144_s0  ;;  %p9151_p3 = scmp.lt.u32.totalorder %s9144_s0, %s11072_s1 }
  0xf5   : > { %p9147_p10 = pnand %p9145_p5, %p9640_p0 }
  0xf7   : > { %p9148_p2 = pneg %p9147_p10 }
  0xf9   : > { %p9153_p4 = pnand %p9151_p3, %p9148_p2 }
  0xfb   : > { %9156 = shalt.err (!%p9153_p4)
}
  0xfc   : > { %s9157_s20 = scalar_lea.vmem %s539_s16, 7168  ;;  %p9165_p13 = scmp.lt.s32.totalorder %s539_s16, %s539_s16 }
  0xfd   : > { %p9158_p7 = scmp.ne.s32.totalorder %s539_s16, %s9157_s20  ;;  %p9166_p1 = scmp.lt.s32.totalorder %s9157_s20, %s9157_s20 }
  0xff   : > { %p9160_p8 = pnand %p9158_p7, %p9640_p0  ;;  %p9167_p6 = por %p9166_p1, %p9165_p13 }
 0x101   : > { %p9161_p11 = pneg %p9160_p8 }
 0x103   : > { %p9168_p9 = pnand %p9167_p6, %p9161_p11 }
 0x105   : > { %9171 = shalt.err (!%p9168_p9)
}
 0x106   : > { %s11073_s5 = smov 4   ;;  %s11074_s7 = smov 64  }
 0x107   : > { %8463 = dma.hbm_to_vmem [thread:$0]  (!%p9624_p12), %s11072_s1, 7168, %s539_s16, [#allocation7], %s11074_s7, %s11074_s7, %s11073_s5  }
 0x108   : > { %s9172_s29 = scalar_lea.hbm %s10996_s6, 3072 }
 0x109   : > { %p9173_p5 = scmp.ne.s32.totalorder %s10996_s6, %s9172_s29  ;;  %p9179_p3 = scmp.lt.u32.totalorder %s9172_s29, %s10996_s6 }
 0x10b   : > { %p9175_p10 = pnand %p9173_p5, %p9640_p0 }
 0x10d   : > { %p9176_p2 = pneg %p9175_p10 }
 0x10f   : > { %p9181_p4 = pnand %p9179_p3, %p9176_p2 }
 0x111   : > { %9184 = shalt.err (!%p9181_p4)
}
 0x112   : > { %s9185_s18 = scalar_lea.vmem %s563_s3, 3072  ;;  %p9193_p13 = scmp.lt.s32.totalorder %s563_s3, %s563_s3 }
 0x113   : > { %p9186_p7 = scmp.ne.s32.totalorder %s563_s3, %s9185_s18  ;;  %p9194_p1 = scmp.lt.s32.totalorder %s9185_s18, %s9185_s18 }
 0x115   : > { %p9188_p8 = pnand %p9186_p7, %p9640_p0  ;;  %p9195_p6 = por %p9194_p1, %p9193_p13 }
 0x117   : > { %p9189_p11 = pneg %p9188_p8 }
 0x119   : > { %p9196_p9 = pnand %p9195_p6, %p9189_p11 }
 0x11b   : > { %9199 = shalt.err (!%p9196_p9)
}
 0x11c   : > { %8469 = dma.hbm_to_vmem [thread:$0]  (!%p9624_p12), %s10996_s6, 3072, %s563_s3, [#allocation10], %s11074_s7, %s11074_s7, %s11073_s5  }
 0x11d   : > { %s9449_s22 = smov [#allocation14]   ;;  %s9450_s9 = smov [#allocation17]  }
 0x11e   : > { %s586_s20 = sshll.u32 %s9449_s22, 4  ;;  %s610_s11 = sshll.u32 %s9450_s9, 4  ;;  %s587_s20 = int_to_ptr.vmem [resolvable:$true] %s586_s20  ;;  %s611_s11 = int_to_ptr.vmem [resolvable:$true] %s610_s11 }
 0x11f   : > { %s9200_s29 = scalar_lea.hbm %s10998_s8, 3072 }
 0x120   : > { %p9201_p5 = scmp.ne.s32.totalorder %s10998_s8, %s9200_s29  ;;  %p9207_p3 = scmp.lt.u32.totalorder %s9200_s29, %s10998_s8 }
 0x122   : > { %p9203_p10 = pnand %p9201_p5, %p9640_p0 }
 0x124   : > { %p9204_p2 = pneg %p9203_p10 }
 0x126   : > { %p9209_p4 = pnand %p9207_p3, %p9204_p2 }
 0x128   : > { %9212 = shalt.err (!%p9209_p4)
}
 0x129   : > { %s9213_s3 = scalar_lea.vmem %s587_s20, 3072  ;;  %p9221_p13 = scmp.lt.s32.totalorder %s587_s20, %s587_s20 }
 0x12a   : > { %p9214_p7 = scmp.ne.s32.totalorder %s587_s20, %s9213_s3  ;;  %p9222_p1 = scmp.lt.s32.totalorder %s9213_s3, %s9213_s3 }
 0x12c   : > { %p9216_p8 = pnand %p9214_p7, %p9640_p0  ;;  %p9223_p6 = por %p9222_p1, %p9221_p13 }
 0x12e   : > { %p9217_p11 = pneg %p9216_p8 }
 0x130   : > { %p9224_p9 = pnand %p9223_p6, %p9217_p11 }
 0x132   : > { %9227 = shalt.err (!%p9224_p9)
}
 0x133   : > { %8475 = dma.hbm_to_vmem [thread:$0]  (!%p9624_p12), %s10998_s8, 3072, %s587_s20, [#allocation13], %s11074_s7, %s11074_s7, %s11073_s5  }
 0x134   : > { %s9228_s9 = scalar_lea.hbm %s11000_s10, 3072 }
 0x135   : > { %p9229_p5 = scmp.ne.s32.totalorder %s11000_s10, %s9228_s9  ;;  %p9235_p3 = scmp.lt.u32.totalorder %s9228_s9, %s11000_s10 }
 0x137   : > { %p9231_p10 = pnand %p9229_p5, %p9640_p0 }
 0x139   : > { %p9232_p2 = pneg %p9231_p10 }
 0x13b   : > { %p9237_p4 = pnand %p9235_p3, %p9232_p2 }
 0x13d   : > { %9240 = shalt.err (!%p9237_p4)
}
 0x13e   : > { %s9241_s21 = scalar_lea.vmem %s611_s11, 3072  ;;  %p9249_p13 = scmp.lt.s32.totalorder %s611_s11, %s611_s11 }
 0x13f   : > { %p9242_p7 = scmp.ne.s32.totalorder %s611_s11, %s9241_s21  ;;  %p9250_p1 = scmp.lt.s32.totalorder %s9241_s21, %s9241_s21 }
 0x141   : > { %p9244_p8 = pnand %p9242_p7, %p9640_p0  ;;  %p9251_p6 = por %p9250_p1, %p9249_p13 }
 0x143   : > { %p9245_p11 = pneg %p9244_p8 }
 0x145   : > { %p9252_p9 = pnand %p9251_p6, %p9245_p11 }
 0x147   : > { %9255 = shalt.err (!%p9252_p9)
}
 0x148   : > { %8481 = dma.hbm_to_vmem [thread:$0]  (!%p9624_p12), %s11000_s10, 3072, %s611_s11, [#allocation16], %s11074_s7, %s11074_s7, %s11073_s5  }
 0x149   : > { %s9451_s23 = smov [#allocation20]   ;;  %s9452_s18 = smov [#allocation23]  }
 0x14a   : > { %s634_s3 = sshll.u32 %s9451_s23, 4  ;;  %s662_s16 = sshll.u32 %s9452_s18, 4  ;;  %s635_s3 = int_to_ptr.vmem [resolvable:$true] %s634_s3  ;;  %s663_s16 = int_to_ptr.vmem [resolvable:$true] %s662_s16 }
 0x14b   : > { %s9256_s9 = scalar_lea.hbm %s11002_s12, 3072 }
 0x14c   : > { %p9257_p5 = scmp.ne.s32.totalorder %s11002_s12, %s9256_s9  ;;  %p9263_p3 = scmp.lt.u32.totalorder %s9256_s9, %s11002_s12 }
 0x14e   : > { %p9259_p10 = pnand %p9257_p5, %p9640_p0 }
 0x150   : > { %p9260_p2 = pneg %p9259_p10 }
 0x152   : > { %p9265_p4 = pnand %p9263_p3, %p9260_p2 }
 0x154   : > { %9268 = shalt.err (!%p9265_p4)
}
 0x155   : > { %s9269_s11 = scalar_lea.vmem %s635_s3, 3072  ;;  %p9277_p13 = scmp.lt.s32.totalorder %s635_s3, %s635_s3 }
 0x156   : > { %p9270_p7 = scmp.ne.s32.totalorder %s635_s3, %s9269_s11  ;;  %p9278_p1 = scmp.lt.s32.totalorder %s9269_s11, %s9269_s11 }
 0x158   : > { %p9272_p8 = pnand %p9270_p7, %p9640_p0  ;;  %p9279_p6 = por %p9278_p1, %p9277_p13 }
 0x15a   : > { %p9273_p11 = pneg %p9272_p8 }
 0x15c   : > { %p9280_p9 = pnand %p9279_p6, %p9273_p11 }
 0x15e   : > { %9283 = shalt.err (!%p9280_p9)
}
 0x15f   : > { %8487 = dma.hbm_to_vmem [thread:$0]  (!%p9624_p12), %s11002_s12, 3072, %s635_s3, [#allocation19], %s11074_s7, %s11074_s7, %s11073_s5  }
 0x160   : > { %s9284_s18 = scalar_lea.hbm %s11005_s15, 16 }
 0x161   : > { %p9285_p5 = scmp.ne.s32.totalorder %s11005_s15, %s9284_s18  ;;  %p9291_p3 = scmp.lt.u32.totalorder %s9284_s18, %s11005_s15 }
 0x163   : > { %p9287_p10 = pnand %p9285_p5, %p9640_p0 }
 0x165   : > { %p9288_p2 = pneg %p9287_p10 }
 0x167   : > { %p9293_p4 = pnand %p9291_p3, %p9288_p2 }
 0x169   : > { %9296 = shalt.err (!%p9293_p4)
}
 0x16a   : > { %s9297_s24 = scalar_lea.vmem %s663_s16, 16  ;;  %s9304_s5 = scalar_lea.vmem %s663_s16, 32 }
 0x16b   : > { %p9298_p7 = scmp.ne.s32.totalorder %s663_s16, %s9297_s24  ;;  %p9305_p13 = scmp.lt.s32.totalorder %s663_s16, %s663_s16 }
 0x16c   : > { %p9306_p1 = scmp.lt.s32.totalorder %s9304_s5, %s9297_s24 }
 0x16d   : > { %p9300_p8 = pnand %p9298_p7, %p9640_p0 }
 0x16e   : > { %p9307_p6 = por %p9306_p1, %p9305_p13 }
 0x16f   : > { %p9301_p11 = pneg %p9300_p8 }
 0x171   : > { %p9308_p9 = pnand %p9307_p6, %p9301_p11 }
 0x173   : > { %9311 = shalt.err (!%p9308_p9)
}
 0x174   : > { %8493 = dma.hbm_to_vmem [thread:$0]  (!%p9624_p12), %s11005_s15, 16, %s663_s16, [#allocation22]  }
 0x175   : > { %s9453_s29 = smov [#allocation24]   ;;  %s9312_s20 = scalar_lea.hbm %s11007_s17, 16 }
 0x176   : > { %s676_s28 = sshll.u32 %s9453_s29, 4  ;;  %p9313_p5 = scmp.ne.s32.totalorder %s11007_s17, %s9312_s20  ;;  %s677_s28 = int_to_ptr.vmem [resolvable:$true] %s676_s28 }
 0x177   : > { %p9319_p3 = scmp.lt.u32.totalorder %s9312_s20, %s11007_s17 }
 0x178   : > { %p9315_p10 = pnand %p9313_p5, %p9640_p0 }
 0x17a   : > { %p9316_p2 = pneg %p9315_p10 }
 0x17c   : > { %p9321_p4 = pnand %p9319_p3, %p9316_p2 }
 0x17e   : > { %9324 = shalt.err (!%p9321_p4)
}
 0x17f   : > { %s9325_s16 = scalar_lea.vmem %s677_s28, 16  ;;  %s9332_s22 = scalar_lea.vmem %s677_s28, 32 }
 0x180   : > { %p9326_p7 = scmp.ne.s32.totalorder %s677_s28, %s9325_s16  ;;  %p9333_p13 = scmp.lt.s32.totalorder %s677_s28, %s677_s28 }
 0x181   : > { %p9334_p1 = scmp.lt.s32.totalorder %s9332_s22, %s9325_s16 }
 0x182   : > { %p9328_p8 = pnand %p9326_p7, %p9640_p0 }
 0x183   : > { %p9335_p6 = por %p9334_p1, %p9333_p13 }
 0x184   : > { %p9329_p11 = pneg %p9328_p8 }
 0x186   : > { %p9336_p9 = pnand %p9335_p6, %p9329_p11 }
 0x188   : > { %9339 = shalt.err (!%p9336_p9)
}
 0x189   : > { %8496 = dma.hbm_to_vmem [thread:$0]  (!%p9624_p12), %s11007_s17, 16, %s677_s28, [#allocation25]  }
 0x18a   : > { %p11075_p5 = scmp.ne.s32.totalorder %s11062_s30, 0 }
 0x18b   : > { %p11076_p10 = scmp.eq.s32.totalorder (!%p11075_p5), %s9586_s2, 0 }
 0x18c   : > { %704 = sbr.rel (%p11075_p5) target bundleno = 3256 (0xcb8), region = 100 }
 0x193   : > { %9385 = dma.done.wait (%p11076_p10), [#allocation4], 4096   ;;  %p11077_p0 = pmov %p11076_p10 }
 0x195   : > { %9387 = vsyncadd (%p11077_p0), [#allocation4], 4294963200  ;;  %p11078_p2 = pmov %p11077_p0 }
 0x196   : > { %p11079_p3 = pmov %p11077_p0 }
 0x197   : > { %9389 = dma.done.wait (%p11078_p2), [#allocation7], 21504  }
 0x198   : > { %9391 = vsyncadd (%p11079_p3), [#allocation7], 4294945792  ;;  %p11080_p4 = pmov %p11077_p0 }
 0x199   : > { %p11081_p12 = pmov %p11077_p0 }
 0x19a   : > { %9393 = dma.done.wait (%p11080_p4), [#allocation10], 3088  }
 0x19b   : > { %9395 = vsyncadd (%p11081_p12), [#allocation10], 4294964208  ;;  %p11082_p7 = pmov %p11077_p0 }
 0x19c   : > { %p11083_p8 = pmov %p11077_p0 }
 0x19d   : > { %9397 = dma.done.wait (%p11082_p7), [#allocation13], 3088  }
 0x19e   : > { %9399 = vsyncadd (%p11083_p8), [#allocation13], 4294964208  ;;  %p11084_p11 = pmov %p11077_p0 }
 0x19f   : > { %p11085_p13 = pmov %p11077_p0 }
 0x1a0   : > { %9401 = dma.done.wait (%p11084_p11), [#allocation16], 3088  }
 0x1a1   : > { %9403 = vsyncadd (%p11085_p13), [#allocation16], 4294964208  ;;  %p11086_p1 = pmov %p11077_p0 }
 0x1a2   : > { %p11087_p6 = pmov %p11077_p0 }
 0x1a3   : > { %9405 = dma.done.wait (%p11086_p1), [#allocation19], 3088  }
 0x1a4   : > { %9407 = vsyncadd (%p11087_p6), [#allocation19], 4294964208  ;;  %p11088_p9 = pmov %p11077_p0 }
 0x1a5   : > { %p11089_p5 = pmov %p11077_p0 }
 0x1a6   : > { %9409 = dma.done.wait (%p11088_p9), [#allocation22], 32  }
 0x1a7   : > { %9411 = vsyncadd (%p11089_p5), [#allocation22], 4294967264  ;;  %p11090_p10 = pmov %p11077_p0 }
 0x1a9   : > { %9413 = dma.done.wait (%p11090_p10), [#allocation25], 16  }
 0x1aa   : > { %9415 = vsyncadd (%p11077_p0), [#allocation25], 4294967280  ;;  %s7240_s4 = sshll.u32 %s9586_s2, 3  ;;  %v9454_v0 = vmov 0   ;;  %s11091_s5 = sld [smem:[#allocation44_spill]]  ;;  %v828_v19 = vlaneseq  ;;  %v8635_v29 = vld [vmem:[#allocation6 + $0x40] sm:$0xff]  }
 0x1ab   : > { %8586 = vset.pattern.permute.xlu1 %v9454_v0  ;;  %8585 = vset.pattern.permute.xlu0 %v9454_v0  ;;  %p814_p2 = scmp.lt.s32.totalorder %s7240_s4, 15  ;;  %v8587_v5 = vld [vmem:[#allocation3 + $0x4] ss:$8 sps:$4 sm:$0xff]   ;;  %v8589_v6 = vld [vmem:[#allocation3] ss:$8 sps:$4 sm:$0xff]   ;;  %v8639_v36 = vld [vmem:[#allocation6 + $0x50] sm:$0xff]  }
 0x1ac   : > { %v8590_v7 = vld [vmem:[#allocation3 + $0x14] ss:$8 sps:$4 sm:$0xff]   ;;  %1103 = vmatprep.subr.bf16.mxu0 %v8587_v5  ;;  %v8592_v10 = vld [vmem:[#allocation3 + $0x10] ss:$8 sps:$4 sm:$0xff]   ;;  %v8593_v11 = vld [vmem:[#allocation3 + $0x24] ss:$8 sps:$4 sm:$0xff]   ;;  %7730 = vmatprep.subr.bf16.mxu1 %v8635_v29 }
 0x1ad   : > { %s11132_s4 = smov (!%p814_p2, %s7240_s4), 15  ;;  %1104 = vmatpush1.bf16.msra.mxu0 %v8589_v6  ;;  %v8595_v14 = vld [vmem:[#allocation3 + $0x20] ss:$8 sps:$4 sm:$0xff]   ;;  %v8596_v15 = vld [vmem:[#allocation3 + $0x34] ss:$8 sps:$4 sm:$0xff]   ;;  %v9959_v23 = vand.u32 127, %v828_v19 }
 0x1ae   : > { %s7241_s30 = sshll.u32 %s11132_s4, 3  ;;  %1105 = vmatprep.subr.bf16.mxu0 %v8590_v7  ;;  %v8598_v16 = vld [vmem:[#allocation3 + $0x30] ss:$8 sps:$4 sm:$0xff]   ;;  %v8599_v17 = vld [vmem:[#allocation3 + $0x44] ss:$8 sps:$4 sm:$0xff]   ;;  %s11106_s28 = sld [smem:[#allocation47_spill]] }
 0x1af   : > { %v8601_v18 = vld [vmem:[#allocation3 + $0x40] ss:$8 sps:$4 sm:$0xff]   ;;  %v8602_v20 = vld [vmem:[#allocation3 + $0x54] ss:$8 sps:$4 sm:$0xff]   ;;  %v8604_v21 = vld [vmem:[#allocation3 + $0x50] ss:$8 sps:$4 sm:$0xff]  }
 0x1b0   : > { %s817_s7 = scalar_lea.vmem %s11091_s5, %s7241_s30  ;;  %v8605_v22 = vld [vmem:[#allocation3 + $0x64] ss:$8 sps:$4 sm:$0xff]   ;;  %v8607_v24 = vld [vmem:[#allocation3 + $0x60] ss:$8 sps:$4 sm:$0xff]   ;;  %v8608_v25 = vld [vmem:[#allocation3 + $0x74] ss:$8 sps:$4 sm:$0xff]  }
 0x1b1   : > { %v822_v1 = vld [vmem:[%s817_s7 + $0x10] sm:$0xff]  ;;  %v820_v2 = vld [vmem:[%s817_s7] sm:$0xff]  ;;  %v823_v3 = vld [vmem:[%s817_s7 + $0x18] sm:$0xff]  ;;  %1106 = vmatpush1.bf16.msra.mxu0 %v8592_v10  ;;  %v9962_v33 = vadd.s32 128, %v9959_v23  ;;  %v9455_v55 = vmov 1.0|1.0  }
 0x1b2   : > { %838 = vperm.xlu1 %8586, %v822_v1   ;;  %832 = vperm.xlu0 %8585, %v820_v2   ;;  %v821_v4 = vld [vmem:[%s817_s7 + $0x8] sm:$0xff]  ;;  %v824_v9 = vld [vmem:[%s817_s7 + $0x20] sm:$0xff]  ;;  %v827_v12 = vld [vmem:[%s817_s7 + $0x38] sm:$0xff]  ;;  %s11113_s29 = sld [smem:[#allocation53_spill]]  ;;  %s11114_s5 = sld [smem:[#allocation54_spill]] }
 0x1b3   : > { %v825_v8 = vld [vmem:[%s817_s7 + $0x28] sm:$0xff]  ;;  %v826_v13 = vld [vmem:[%s817_s7 + $0x30] sm:$0xff]  ;;  %1107 = vmatprep.subr.bf16.mxu0 %v8593_v11  ;;  %v8610_v26 = vld [vmem:[#allocation3 + $0x70] ss:$8 sps:$4 sm:$0xff]   ;;  %s11115_s16 = sld [smem:[#allocation37_spill]]  ;;  %s11116_s7 = sld [smem:[#allocation55_spill]] }
 0x1b4   : > { %v8611_v27 = vld [vmem:[#allocation3 + $0x84] ss:$8 sps:$4 sm:$0xff]   ;;  %v8613_v28 = vld [vmem:[#allocation3 + $0x80] ss:$8 sps:$4 sm:$0xff]   ;;  %v8614_v32 = vld [vmem:[#allocation3 + $0x94] ss:$8 sps:$4 sm:$0xff]  }
 0x1b5   : > { %1108 = vmatpush1.bf16.msra.mxu0 %v8595_v14  ;;  %v8636_v30 = vld [vmem:[#allocation6] sm:$0xff]   ;;  %v8637_v31 = vld [vmem:[#allocation6 + $0x48] sm:$0xff]   ;;  %v8616_v35 = vld [vmem:[#allocation3 + $0x90] ss:$8 sps:$4 sm:$0xff]   ;;  %s11117_s3 = sld [smem:[#allocation42_spill]]  ;;  %s11118_s23 = sld [smem:[#allocation56_spill]] }
 0x1b6   : > { %841 = vperm.xlu1 %8586, %v823_v3   ;;  %835 = vperm.xlu0 %8585, %v821_v4   ;;  %v8638_v34 = vld [vmem:[#allocation6 + $0x8] sm:$0xff]   ;;  %v8620_v39 = vld [vmem:[#allocation3 + $0xb4] ss:$8 sps:$4 sm:$0xff]   ;;  %v8622_v40 = vld [vmem:[#allocation3 + $0xb0] ss:$8 sps:$4 sm:$0xff]   ;;  %s9459_s22 = smov [#allocation26]  }
 0x1b7   : > { %1109 = vmatprep.subr.bf16.mxu0 %v8596_v15  ;;  %v8617_v37 = vld [vmem:[#allocation3 + $0xa4] ss:$8 sps:$4 sm:$0xff]   ;;  %7731 = vmatpush3.bf16.msra.mxu1 %v8636_v30  ;;  %v8619_v38 = vld [vmem:[#allocation3 + $0xa0] ss:$8 sps:$4 sm:$0xff]   ;;  %v8626_v43 = vld [vmem:[#allocation3 + $0xd4] ss:$8 sps:$4 sm:$0xff]  }
 0x1b8   : > { %7732 = vmatprep.subr.bf16.mxu1 %v8637_v31  ;;  %v8623_v41 = vld [vmem:[#allocation3 + $0xc4] ss:$8 sps:$4 sm:$0xff]   ;;  %v8625_v42 = vld [vmem:[#allocation3 + $0xc0] ss:$8 sps:$4 sm:$0xff]   ;;  %v8628_v44 = vld [vmem:[#allocation3 + $0xd0] ss:$8 sps:$4 sm:$0xff]  }
 0x1b9   : > { %1110 = vmatpush1.bf16.msra.mxu0 %v8598_v16  ;;  %v8629_v45 = vld [vmem:[#allocation3 + $0xe4] ss:$8 sps:$4 sm:$0xff]   ;;  %v8631_v46 = vld [vmem:[#allocation3 + $0xe0] ss:$8 sps:$4 sm:$0xff]   ;;  %v8632_v47 = vld [vmem:[#allocation3 + $0xf4] ss:$8 sps:$4 sm:$0xff]  }
 0x1ba   : > { %847 = vperm.xlu1 %8586, %v825_v8   ;;  %844 = vperm.xlu0 %8585, %v824_v9   ;;  %v8634_v48 = vld [vmem:[#allocation3 + $0xf0] ss:$8 sps:$4 sm:$0xff]   ;;  %v8642_v59 = vld [vmem:[#allocation6 + $0x140] sm:$0xff]   ;;  %v8646_v63 = vld [vmem:[#allocation6 + $0x148] sm:$0xff]   ;;  %s811_s30 = sand.u32 1, %s11115_s16   ;;  %s9344_s9 = sshll.u32 %s9459_s22, 4  ;;  %s9345_s9 = int_to_ptr.vmem [resolvable:$false] %s9344_s9 }
 0x1bb   : > { %1111 = vmatprep.subr.bf16.mxu0 %v8599_v17  ;;  %7733 = vmatpush3.bf16.msra.mxu1 %v8638_v34  ;;  %v8640_v58 = vld [vmem:[#allocation6 + $0x10] sm:$0xff]   ;;  %v8641_v60 = vld [vmem:[#allocation6 + $0x58] sm:$0xff]   ;;  %v8644_v61 = vld [vmem:[#allocation6 + $0x100] sm:$0xff]   ;;  %s812_s11 = scalar_lea.vmem [#allocation26], %s811_s30  ;;  %s11119_s18 = smov %s11118_s23 }
 0x1bc   : > { %7734 = vmatprep.subr.bf16.mxu1 %v8639_v36  ;;  %v8643_v62 = vld [vmem:[#allocation6 + $0x18] sm:$0xff]   ;;  %v8645_v1 = vld [vmem:[#allocation6 + $0x60] sm:$0xff]   ;;  %v8648_v5 = vld [vmem:[#allocation6 + $0x108] sm:$0xff]   ;;  %s7017_s21 = sshll.u32 %s812_s11, 4  ;;  %s7005_s16 = scalar_lea.sflag [#allocation5], %s811_s30  ;;  %s10950_s21 = int_to_ptr.vmem [resolvable:$true] %s7017_s21 }
 0x1bd   : > { %1112 = vmatpush1.bf16.msra.mxu0 %v8601_v18  ;;  %v8647_v2 = vld [vmem:[#allocation6 + $0x20] sm:$0xff]   ;;  %v1183_v4 = vld [vmem:[#allocation2] sm:$0x11]  ;;  %v8650_v6 = vld [vmem:[#allocation6 + $0x150] sm:$0xff]   ;;  %p11120_p4 = scmp.ne.s32.totalorder %s11117_s3, 0  ;;  %s9346_s0 = scalar_lea.vmem %s9345_s9, 32 }
 0x1be   : > { %853 = vperm.xlu1 %8586, %v827_v12   ;;  %850 = vperm.xlu0 %8585, %v826_v13   ;;  %v8649_v8 = vld [vmem:[#allocation6 + $0x68] sm:$0xff]   ;;  %v8652_v9 = vld [vmem:[#allocation6 + $0x110] sm:$0xff]   ;;  %v8654_v11 = vld [vmem:[#allocation6 + $0x158] sm:$0xff]   ;;  %p9347_p8 = scmp.lt.s32.totalorder %s10950_s21, %s9345_s9 }
 0x1bf   : > { %1113 = vmatprep.subr.bf16.mxu0 %v8602_v20  ;;  %7735 = vmatpush3.bf16.msra.mxu1 %v8640_v58  ;;  %v8651_v10 = vld [vmem:[#allocation6 + $0x28] sm:$0xff]   ;;  %v8653_v12 = vld [vmem:[#allocation6 + $0x70] sm:$0xff]   ;;  %v8656_v13 = vld [vmem:[#allocation6 + $0x118] sm:$0xff]  }
 0x1c0   : > { %7736 = vmatprep.subr.bf16.mxu1 %v8641_v60  ;;  %v8655_v14 = vld [vmem:[#allocation6 + $0x30] sm:$0xff]   ;;  %v8658_v15 = vld [vmem:[#allocation6 + $0x160] sm:$0xff]   ;;  %v8657_v16 = vld [vmem:[#allocation6 + $0x78] sm:$0xff]  }
 0x1c1   : > { %1114 = vmatpush1.bf16.msra.mxu0 %v8604_v21  ;;  %v8659_v17 = vld [vmem:[#allocation6 + $0x38] sm:$0xff]   ;;  %v8660_v18 = vld [vmem:[#allocation6 + $0x120] sm:$0xff]   ;;  %v8662_v20 = vld [vmem:[#allocation6 + $0x168] sm:$0xff]  }
 0x1c2   : > { %1115 = vmatprep.subr.bf16.mxu0 %v8605_v22  ;;  %v8661_v21 = vld [vmem:[#allocation6 + $0xc0] sm:$0xff]   ;;  %v8664_v22 = vld [vmem:[#allocation6 + $0x128] sm:$0xff]  }
 0x1c3   : > { %7737 = vmatpush3.bf16.msra.mxu1 %v8643_v62  ;;  %v8663_v58 = vld [vmem:[#allocation6 + $0x80] sm:$0xff]   ;;  %v8665_v62 = vld [vmem:[#allocation6 + $0xc8] sm:$0xff]  }
 0x1c4   : > { %7738 = vmatprep.subr.bf16.mxu1 %v8645_v1 }
 0x1c5   : > { %1116 = vmatpush1.bf16.msra.mxu0 %v8607_v24  ;;  %v8668_v24 = vld [vmem:[#allocation6 + $0x130] sm:$0xff]  }
 0x1c6   : > { %1117 = vmatprep.subr.bf16.mxu0 %v8608_v25  ;;  %v8670_v25 = vld [vmem:[#allocation6 + $0x178] sm:$0xff]  }
 0x1c7   : > { %7739 = vmatpush3.bf16.msra.mxu1 %v8647_v2 }
 0x1c8   : > { %7740 = vmatprep.subr.bf16.mxu1 %v8649_v8 }
 0x1c9   : > { %1118 = vmatpush1.bf16.msra.mxu0 %v8610_v26  ;;  %v8672_v26 = vld [vmem:[#allocation6 + $0x138] sm:$0xff]  }
 0x1ca   : > { %1119 = vmatprep.subr.bf16.mxu0 %v8611_v27  ;;  %v8675_v27 = vld [vmem:[#allocation6 + $0x240] sm:$0xff]  }
 0x1cb   : > { %7741 = vmatpush3.bf16.msra.mxu1 %v8651_v10 }
 0x1cc   : > { %7742 = vmatprep.subr.bf16.mxu1 %v8653_v12 }
 0x1cd   : > { %1120 = vmatpush1.bf16.msra.mxu0 %v8613_v28 }
 0x1ce   : > { %1121 = vmatprep.subr.bf16.mxu0 %v8614_v32 }
 0x1cf   : > { %7743 = vmatpush3.bf16.msra.mxu1 %v8655_v14 }
 0x1d0   : > { %7744 = vmatprep.subr.bf16.mxu1 %v8657_v16 }
 0x1d1   : > { %1122 = vmatpush1.bf16.msra.mxu0 %v8616_v35  ;;  %v8671_v35 = vld [vmem:[#allocation6 + $0x90] sm:$0xff]  }
 0x1d2   : > { %1123 = vmatprep.subr.bf16.mxu0 %v8617_v37 }
 0x1d3   : > { %7745 = vmatpush3.bf16.msra.mxu1 %v8659_v17 }
 0x1d4   : > { %7770 = vmatprep.subr.bf16.mxu1 %v8661_v21 }
 0x1d5   : > { %1124 = vmatpush1.bf16.msra.mxu0 %v8619_v38 }
 0x1d6   : > { %1125 = vmatprep.subr.bf16.mxu0 %v8620_v39 }
 0x1d9   : > { %1126 = vmatpush1.bf16.msra.mxu0 %v8622_v40 }
 0x1da   : > { %1127 = vmatprep.subr.bf16.mxu0 %v8623_v41 }
 0x1dd   : > { %1128 = vmatpush1.bf16.msra.mxu0 %v8625_v42 }
 0x1de   : > { %1129 = vmatprep.subr.bf16.mxu0 %v8626_v43 }
 0x1e1   : > { %1130 = vmatpush1.bf16.msra.mxu0 %v8628_v44 }
 0x1e2   : > { %1131 = vmatprep.subr.bf16.mxu0 %v8629_v45  ;;  %v8686_v45 = vld [vmem:[#allocation6 + $0xb0] sm:$0xff]  }
 0x1e5   : > { %1132 = vmatpush1.bf16.msra.mxu0 %v8631_v46 }
 0x1e6   : > { %1133 = vmatprep.subr.bf16.mxu0 %v8632_v47 }
 0x1e9   : > { %1134 = vmatpush1.bf16.msra.mxu0 %v8634_v48 }
 0x1ea   : > { %7810 = vmatprep.subr.bf16.mxu0 %v8642_v59 }
 0x231   : > { %v839_v49 = vpop.permute.xlu1 %838  ;;  %v833_v50 = vpop.permute.xlu0 %832 }
 0x232   : > { %vm860_vm0 = vcmp.eq.s32.totalorder %v9962_v33, %v839_v49  ;;  %vm855_vm4 = vcmp.eq.s32.totalorder %v9959_v23, %v833_v50  ;;  %vm856_vm7 = vcmp.eq.s32.totalorder %v9962_v33, %v833_v50  ;;  %vm859_vm9 = vcmp.eq.s32.totalorder %v9959_v23, %v839_v49 }
 0x235   : > { %v842_v51 = vpop.permute.xlu1 %841  ;;  %v836_v52 = vpop.permute.xlu0 %835 }
 0x236   : > { %vm862_vm1 = vcmp.eq.s32.totalorder %v9962_v33, %v842_v51  ;;  %vm857_vm2 = vcmp.eq.s32.totalorder %v9959_v23, %v836_v52  ;;  %vm858_vm3 = vcmp.eq.s32.totalorder %v9962_v33, %v836_v52  ;;  %vm861_vm10 = vcmp.eq.s32.totalorder %v9959_v23, %v842_v51 }
 0x237   : > { %vm7294_vm5 = vmpackc.low %vm862_vm1, %vm860_vm0 }
 0x238   : > { %vm7292_vm6 = vmpackc.low %vm857_vm2, %vm855_vm4 }
 0x239   : > { %v848_v53 = vpop.permute.xlu1 %847  ;;  %v845_v54 = vpop.permute.xlu0 %844  ;;  %vm7290_vm8 = vmpackc.low %vm858_vm3, %vm856_vm7 }
 0x23a   : > { %7291 = vmatprep.mubr.msk.bf16.mxu0 %vm7290_vm8, %v9455_v55  ;;  %vm866_vm11 = vcmp.eq.s32.totalorder %v9962_v33, %v848_v53  ;;  %vm864_vm12 = vcmp.eq.s32.totalorder %v9962_v33, %v845_v54  ;;  %vm7296_vm13 = vmpackc.low %vm861_vm10, %vm859_vm9  ;;  %vm865_vm14 = vcmp.eq.s32.totalorder %v9959_v23, %v848_v53  ;;  %vm863_vm15 = vcmp.eq.s32.totalorder %v9959_v23, %v845_v54 }
 0x23b   : > { %7293 = vmatmul.mubr.msk.bf16.vlgmr.msra.gmra.mrb[0].mxu0 %vm7292_vm6, %v9455_v55  ;;  %vm7298_vm0 = vmpackc.low %vm866_vm11, %vm864_vm12  ;;  %vm1176_vm8 = vcmask 1040384   ;;  %vm1177_vm9 = vsmask.f32 256  ;;  %vm1179_vm10 = vcmask 1044484   ;;  %vm1180_vm11 = vsmask.f32 4352 }
 0x23c   : > { %7295 = vmatprep.mubr.msk.bf16.mxu0 %vm7294_vm5, %v9455_v55  ;;  %vm7300_vm3 = vmpackc.low %vm865_vm14, %vm863_vm15  ;;  %7811 = vmatpush3.bf16.msra.mxu0 %v8644_v61  ;;  %vm11035_vm15 = vcmask 1043456  }
 0x23d   : > { %v854_v56 = vpop.permute.xlu1 %853  ;;  %v851_v57 = vpop.permute.xlu0 %850  ;;  %vm9982_vm12 = vmand %vm1176_vm8, %vm1177_vm9  ;;  %7812 = vmatprep.subr.bf16.mxu0 %v8646_v63 }
 0x23e   : > { %vm870_vm1 = vcmp.eq.s32.totalorder %v9962_v33, %v854_v56  ;;  %vm868_vm2 = vcmp.eq.s32.totalorder %v9962_v33, %v851_v57  ;;  %vm869_vm6 = vcmp.eq.s32.totalorder %v9959_v23, %v854_v56  ;;  %vm867_vm5 = vcmp.eq.s32.totalorder %v9959_v23, %v851_v57  ;;  %v8666_v23 = vld [vmem:[#allocation6 + $0x170] sm:$0xff]  }
 0x23f   : > { %vm7302_vm4 = vmpackc.low %vm870_vm1, %vm868_vm2  ;;  %vm1311_vm1 = vcmask 1047556   ;;  %vm1312_vm2 = vsmask.f32 7954 }
 0x240   : > { %vm7304_vm7 = vmpackc.low %vm869_vm6, %vm867_vm5  ;;  %7813 = vmatpush3.bf16.msra.mxu0 %v8648_v5  ;;  %vm1226_vm6 = vsmask.f32 4368 }
 0x241   : > { %7814 = vmatprep.subr.bf16.mxu0 %v8650_v6 }
 0x243   : > { %7297 = vmatmul.mubr.msk.bf16.gmra.mrb[4].mxu0 %vm7296_vm13, %v9455_v55  ;;  %vm9987_vm13 = vmand %vm1179_vm10, %vm1180_vm11  ;;  %vm1433_vm11 = vsmask.f32 7424 }
 0x244   : > { %7299 = vmatprep.mubr.msk.bf16.mxu0 %vm7298_vm0, %v9455_v55  ;;  %vm1182_vm14 = vmor %vm9987_vm13, %vm9982_vm12  ;;  %7815 = vmatpush3.bf16.msra.mxu0 %v8652_v9  ;;  %vm1309_vm0 = vsmask.f32 7938  ;;  %v8667_v9 = vld [vmem:[#allocation6 + $0x88] sm:$0xff]   ;;  %vm1551_vm12 = vsmask.f32 6400 }
 0x245   : > { %v1184_v7 = vsel %vm1182_vm14, 0, %v1183_v4  ;;  %7816 = vmatprep.subr.bf16.mxu0 %v8654_v11  ;;  %vm10159_vm13 = vmand %vm1176_vm8, %vm1309_vm0 }
 0x246   : > { %1185 = vst [vmem:[#allocation2] sm:$0x11] %v1184_v7 }
 0x248   : > { %7817 = vmatpush3.bf16.msra.mxu0 %v8656_v13 }
 0x249   : > { %7818 = vmatprep.subr.bf16.mxu0 %v8658_v15 }
 0x24b   : > { %7301 = vmatmul.mubr.msk.bf16.gmra.mrb[8].mxu0 %vm7300_vm3, %v9455_v55  ;;  %vm10002_vm3 = vmand %vm11035_vm15, %vm1309_vm0  ;;  %vm1727_vm0 = vcmask 1044480  }
 0x24c   : > { %7303 = vmatprep.mubr.msk.bf16.mxu0 %vm7302_vm4, %v9455_v55  ;;  %7819 = vmatpush3.bf16.msra.mxu0 %v8660_v18  ;;  %vm10007_vm4 = vmand %vm1311_vm1, %vm1312_vm2  ;;  %vm1623_vm1 = vcmask 1045504  }
 0x24d   : > { %7820 = vmatprep.subr.bf16.mxu0 %v8662_v20  ;;  %vm1314_vm5 = vmor %vm10007_vm4, %vm10002_vm3  ;;  %v1315_v40 = vld [vmem:[#allocation2] sm:$0xff]  ;;  %v8669_v20 = vld [vmem:[#allocation6 + $0xd0] sm:$0xff]   ;;  %vm1655_vm4 = vsmask.f32 5376 }
 0x250   : > { %7821 = vmatpush3.bf16.msra.mxu0 %v8664_v22 }
 0x251   : > { %7822 = vmatprep.subr.bf16.mxu0 %v8666_v23 }
 0x253   : > { %7305 = vmatmul.mubr.msk.bf16.gmra.mrb[12].mxu0 %vm7304_vm7, %v9455_v55  ;;  %vm10016_vm7 = vmor %vm1177_vm9, %vm1226_vm6  ;;  %vm1519_vm9 = vcmask 1046528   ;;  %vm3994_vm6 = vcmask 1042432  }
 0x254   : > { %7823 = vmatpush3.bf16.msra.mxu0 %v8668_v24 }
 0x255   : > { %7824 = vmatprep.subr.bf16.mxu0 %v8670_v25 }
 0x258   : > { %7825 = vmatpush3.bf16.msra.mxu0 %v8672_v26 }
 0x259   : > { %7890 = vmatprep.subr.bf16.mxu0 %v8675_v27 }
 0x30e   : > { %v1137_v28 = vpop.f32.mrb[0].mxu0 }
 0x30f   : > { %v1139_v29 = vpop.f32.mrb[1].mxu0 }
 0x310   : > { %v7693_v30 = vpack.c.bf16 %v1139_v29, %v1137_v28  ;;  %v1141_v31 = vpop.f32.mrb[2].mxu0 }
 0x311   : > { %v1143_v33 = vpop.f32.mrb[3].mxu0 }
 0x312   : > { %v1229_v34 = vshrl.u32 %v7693_v30, 16  ;;  %v7694_v36 = vpack.c.bf16 %v1143_v33, %v1141_v31  ;;  %v1232_v38 = vshll.u32 %v7693_v30, 16 }
 0x314   : > { %v1231_v37 = vrot.slane %v1229_v34, 7  ;;  %v1237_v39 = vshrl.u32 %v7694_v36, 16  ;;  %v1240_v43 = vshll.u32 %v7694_v36, 16 }
 0x316   : > { %v1234_v41 = vor.u32 %v1232_v38, %v1231_v37  ;;  %v1239_v42 = vrot.slane %v1237_v39, 7  ;;  %v1147_v44 = vpop.f32.mrb[4].mxu0  ;;  %v1235_v47 = vrot.slane %v1231_v37, 4 }
 0x317   : > { %v1149_v46 = vpop.f32.mrb[5].mxu0 }
 0x318   : > { %v1316_v48 = vsel %vm1314_vm5, %v1234_v41, %v1315_v40  ;;  %v1242_v49 = vor.u32 %v1240_v43, %v1239_v42  ;;  %v7695_v50 = vpack.c.bf16 %v1149_v46, %v1147_v44  ;;  %v1151_v51 = vpop.f32.mrb[6].mxu0  ;;  %v1244_v2 = vrot.slane %v1239_v42, 4  ;;  %v8673_v41 = vld [vmem:[#allocation6 + $0xd8] sm:$0xff]  }
 0x319   : > { %1317 = vst [vmem:[#allocation2] sm:$0xff] %v1316_v48  ;;  %v1153_v52 = vpop.f32.mrb[7].mxu0  ;;  %vm4235_vm5 = vcmask 1042434  }
 0x31a   : > { %v10022_v53 = vsel %vm10016_vm7, %v1235_v47, %v1242_v49  ;;  %v1246_v54 = vshrl.u32 %v7695_v50, 16  ;;  %v7696_v55 = vpack.c.bf16 %v1153_v52, %v1151_v51  ;;  %v1249_v60 = vshll.u32 %v7695_v50, 16  ;;  %v8676_v52 = vld [vmem:[#allocation6 + $0x200] sm:$0xff]  }
 0x31b   : > { %1318 = vst [vmem:[#allocation2 + $0x8] sm:$0xff] %v10022_v53  ;;  %v7315_v56 = vcombine.high %v1316_v48, %v10022_v53  ;;  %v7314_v57 = vcombine.low %v1316_v48, %v10022_v53 }
 0x31c   : > { %v1248_v59 = vrot.slane %v1246_v54, 7  ;;  %v1255_v61 = vshrl.u32 %v7696_v55, 16  ;;  %v1258_v6 = vshll.u32 %v7696_v55, 16 }
 0x31d   : > { %2689 = vmatprep.mubr.bf16.mxu1 %v7315_v56  ;;  %v1449_v63 = vshll.u32 %v7315_v56, 16  ;;  %v1437_v1 = vshll.u32 %v7314_v57, 16  ;;  %v1447_v10 = vshrl.u32 %v7315_v56, 16  ;;  %v1435_v12 = vshrl.u32 %v7314_v57, 16 }
 0x31e   : > { %v1251_v4 = vor.u32 %v1249_v60, %v1248_v59  ;;  %v10027_v5 = vrot.slane %v1255_v61, 7  ;;  %v1157_v7 = vpop.f32.mrb[8].mxu0  ;;  %2690 = vmatmul.mubr.bf16.vlgmr.msra.gmra.mrb[0].mxu1 %v7314_v57  ;;  %v1253_v15 = vrot.slane %v1248_v59, 4  ;;  %v8679_v59 = vld [vmem:[#allocation6 + $0x248] sm:$0xff]  }
 0x31f   : > { %v1159_v8 = vpop.f32.mrb[9].mxu0  ;;  %7771 = vmatpush3.bf16.msra.mxu1 %v8663_v58  ;;  %v1451_v11 = vrot.slane %v1449_v63, 1  ;;  %v1439_v13 = vrot.slane %v1437_v1, 1  ;;  %v8674_v58 = vld [vmem:[#allocation6 + $0x98] sm:$0xff]  }
 0x320   : > { %v1252_v14 = vsel %vm10016_vm7, %v1244_v2, %v1251_v4  ;;  %v1260_v16 = vor.u32 %v1258_v6, %v10027_v5  ;;  %v7697_v17 = vpack.c.bf16 %v1159_v8, %v1157_v7  ;;  %v1161_v18 = vpop.f32.mrb[10].mxu0  ;;  %7772 = vmatprep.subr.bf16.mxu1 %v8665_v62  ;;  %v1351_v21 = vld [vmem:[#allocation2] sm:$0xee]  ;;  %v1262_v22 = vrot.slane %v10027_v5, 4  ;;  %v8677_v4 = vld [vmem:[#allocation6 + $0xe0] sm:$0xff]  }
 0x321   : > { %1319 = vst [vmem:[#allocation2 + $0x10] sm:$0xff] %v1252_v14  ;;  %v1163_v23 = vpop.f32.mrb[11].mxu0  ;;  %v10034_v24 = vcombine.high %v1351_v21, %v10022_v53  ;;  %v10037_v25 = vcombine.low %v1351_v21, %v10022_v53  ;;  %v1452_v26 = vor.u32 %v1451_v11, %v1447_v10  ;;  %v1440_v30 = vor.u32 %v1439_v13, %v1435_v12  ;;  %v10046_v37 = vld [vmem:[#allocation2] sm:$0xcc]  ;;  %v8680_v13 = vld [vmem:[#allocation6 + $0x208] sm:$0xff]  }
 0x322   : > { %v1261_v27 = vsel %vm10016_vm7, %v1253_v15, %v1260_v16  ;;  %v1264_v28 = vshrl.u32 %v7697_v17, 16  ;;  %v7698_v29 = vpack.c.bf16 %v1163_v23, %v1161_v18  ;;  %v1267_v31 = vshll.u32 %v7697_v17, 16  ;;  %v8678_v17 = vld [vmem:[#allocation6 + $0xa0] sm:$0xff]   ;;  %v8683_v18 = vld [vmem:[#allocation6 + $0x250] sm:$0xff]  }
 0x323   : > { %7773 = vmatpush3.bf16.msra.mxu1 %v8667_v9  ;;  %v10041_v33 = vcombine.high %v1252_v14, %v1261_v27  ;;  %v10043_v34 = vcombine.low %v1252_v14, %v1261_v27  ;;  %v1523_v36 = vrot.slane %v10034_v24, 1  ;;  %v1520_v42 = vrot.slane %v10037_v25, 1  ;;  %v8681_v27 = vld [vmem:[#allocation6 + $0xe8] sm:$0xff]  }
 0x324   : > { %v1266_v38 = vrot.slane %v1264_v28, 7  ;;  %v1273_v39 = vshrl.u32 %v7698_v29, 16  ;;  %v1276_v40 = vshll.u32 %v7698_v29, 16  ;;  %7774 = vmatprep.subr.bf16.mxu1 %v8669_v20  ;;  %v10063_v54 = vcombine.high %v10046_v37, %v10022_v53 }
 0x325   : > { %2697 = vmatprep.mubr.bf16.mxu1 %v10041_v33  ;;  %v1524_v43 = vrot.slane %v10041_v33, 1  ;;  %v1521_v44 = vrot.slane %v10043_v34, 1  ;;  %v10053_v46 = vshll.u32 %v10041_v33, 16  ;;  %v10056_v47 = vshll.u32 %v10043_v34, 16 }
 0x326   : > { %v1269_v48 = vor.u32 %v1267_v31, %v1266_v38  ;;  %v1271_v49 = vrot.slane %v1266_v38, 4  ;;  %v10058_v50 = vrot.slane %v1273_v39, 7  ;;  %v1167_v51 = vpop.f32.mrb[12].mxu0  ;;  %2698 = vmatmul.mubr.bf16.gmra.mrb[4].mxu1 %v10043_v34  ;;  %v10077_v5 = vshrl.u32 %v10041_v33, 16 }
 0x327   : > { %v1169_v55 = vpop.f32.mrb[13].mxu0  ;;  %7775 = vmatpush3.bf16.msra.mxu1 %v8671_v35  ;;  %v1525_v56 = vsel %vm1519_vm9, %v1523_v36, %v1524_v43  ;;  %v1522_v57 = vsel %vm1519_vm9, %v1520_v42, %v1521_v44  ;;  %v1456_v60 = vrot.slane %v10053_v46, 1  ;;  %v1444_v61 = vrot.slane %v10056_v47, 1  ;;  %v1325_v42 = vld [vmem:[#allocation2 + $0x40] sm:$0x11] }
 0x328   : > { %v1270_v62 = vsel %vm10016_vm7, %v1262_v22, %v1269_v48  ;;  %v1278_v63 = vor.u32 %v1276_v40, %v10058_v50  ;;  %v7699_v1 = vpack.c.bf16 %v1169_v55, %v1167_v51  ;;  %v1171_v2 = vpop.f32.mrb[14].mxu0  ;;  %2819 = vmatprep.mubr.bf16.mxu0 %v1525_v56  ;;  %7776 = vmatprep.subr.bf16.mxu1 %v8673_v41  ;;  %v1280_v6 = vrot.slane %v10058_v50, 4  ;;  %v8684_v40 = vld [vmem:[#allocation6 + $0x210] sm:$0xff]   ;;  %v8682_v50 = vld [vmem:[#allocation6 + $0xa8] sm:$0xff]   ;;  %v8687_v51 = vld [vmem:[#allocation6 + $0x258] sm:$0xff]  }
 0x329   : > { %v1173_v7 = vpop.f32.mrb[15].mxu0  ;;  %2820 = vmatmul.mubr.bf16.vlgmr.msra.gmra.mrb[16].mxu0 %v1522_v57  ;;  %v10081_v8 = vsel %vm1433_vm11, %v1452_v26, %v1456_v60  ;;  %v10086_v9 = vsel %vm1433_vm11, %v1440_v30, %v1444_v61  ;;  %v1468_v14 = vor.u32 %v10077_v5, %v1456_v60  ;;  %v1627_v20 = vrot.slane %v10063_v54, 2 }
 0x32a   : > { %v1279_v10 = vsel %vm10016_vm7, %v1271_v49, %v1278_v63  ;;  %v1282_v11 = vshrl.u32 %v7699_v1, 16  ;;  %v7700_v12 = vpack.c.bf16 %v1173_v7, %v1171_v2  ;;  %7891 = vmatpush3.bf16.msra.mxu0 %v8676_v52  ;;  %v1628_v21 = vrot.slane %v10041_v33, 2  ;;  %v8688_v2 = vld [vmem:[#allocation6 + $0x218] sm:$0xff]  }
 0x32b   : > { %7777 = vmatpush3.bf16.msra.mxu1 %v8674_v58  ;;  %v10091_v15 = vcombine.high %v1270_v62, %v1279_v10  ;;  %v10093_v16 = vcombine.low %v1270_v62, %v1279_v10  ;;  %7892 = vmatprep.subr.bf16.mxu0 %v8679_v59  ;;  %v1285_v23 = vshll.u32 %v7699_v1, 16  ;;  %v10098_v28 = vshrl.u32 %v10043_v34, 16  ;;  %v8685_v58 = vld [vmem:[#allocation6 + $0xf0] sm:$0xff]  }
 0x32c   : > { %v1284_v22 = vrot.slane %v1282_v11, 7  ;;  %v1291_v26 = vshrl.u32 %v7700_v12, 16  ;;  %7778 = vmatprep.subr.bf16.mxu1 %v8677_v4  ;;  %v10107_v35 = vsel %vm1623_vm1, %v1627_v20, %v1628_v21  ;;  %v1294_v39 = vshll.u32 %v7700_v12, 16  ;;  %v8689_v11 = vld [vmem:[#allocation6 + $0xf8] sm:$0xff]  }
 0x32d   : > { %2705 = vmatprep.mubr.bf16.mxu1 %v10091_v15  ;;  %v1528_v29 = vrot.slane %v10091_v15, 1  ;;  %v1526_v30 = vrot.slane %v10093_v16, 1  ;;  %v10104_v31 = vshll.u32 %v10091_v15, 16  ;;  %v10112_v41 = vcombine.low %v10046_v37, %v10022_v53 }
 0x32e   : > { %v1287_v36 = vor.u32 %v1285_v23, %v1284_v22  ;;  %v1293_v38 = vrot.slane %v1291_v26, 7  ;;  %2706 = vmatmul.mubr.bf16.gmra.mrb[8].mxu1 %v10093_v16  ;;  %7893 = vmatpush3.bf16.msra.mxu0 %v8680_v13  ;;  %v10126_v52 = vshll.u32 %v10093_v16, 16  ;;  %v1289_v56 = vrot.slane %v1284_v22, 4  ;;  %v8691_v23 = vld [vmem:[#allocation6 + $0x260] sm:$0xff]  }
 0x32f   : > { %7779 = vmatpush3.bf16.msra.mxu1 %v8678_v17  ;;  %v1529_v48 = vsel %vm1519_vm9, %v1524_v43, %v1528_v29  ;;  %v1527_v49 = vsel %vm1519_vm9, %v1521_v44, %v1526_v30  ;;  %7894 = vmatprep.subr.bf16.mxu0 %v8683_v18  ;;  %v1472_v37 = vrot.slane %v10104_v31, 1  ;;  %v1460_v59 = vor.u32 %v10098_v28, %v1444_v61 }
 0x330   : > { %v1288_v55 = vsel %vm10016_vm7, %v1280_v6, %v1287_v36  ;;  %v1296_v57 = vor.u32 %v1294_v39, %v1293_v38  ;;  %v1298_v43 = vrot.slane %v1293_v38, 4  ;;  %2827 = vmatprep.mubr.bf16.mxu0 %v1529_v48  ;;  %7780 = vmatprep.subr.bf16.mxu1 %v8681_v27  ;;  %v1464_v60 = vrot.slane %v10126_v52, 1  ;;  %v8692_v27 = vld [vmem:[#allocation6 + $0x220] sm:$0xff]  }
 0x331   : > { %2828 = vmatmul.mubr.bf16.gmra.mrb[20].mxu0 %v1527_v49  ;;  %v10131_v44 = vsel %vm1433_vm11, %v1468_v14, %v1472_v37  ;;  %v1625_v62 = vrot.slane %v10043_v34, 2  ;;  %v1624_v4 = vrot.slane %v10112_v41, 2  ;;  %v1632_v6 = vrot.slane %v10091_v15, 2  ;;  %v8690_v49 = vld [vmem:[#allocation6 + $0xb8] sm:$0xff]  }
 0x332   : > { %v1297_v63 = vsel %vm10016_vm7, %v1289_v56, %v1296_v57  ;;  %v1326_v1 = vsel %vm1182_vm14, %v1298_v43, %v1325_v42  ;;  %7895 = vmatpush3.bf16.msra.mxu0 %v8684_v40  ;;  %v10152_v3 = vsel %vm1433_vm11, %v1460_v59, %v1464_v60  ;;  %v10155_v0 = vshrl.u32 %v10091_v15, 16  ;;  %vm10173_vm14 = vmand %vm1179_vm10, %vm1312_vm2 }
 0x333   : > { %1327 = vst [vmem:[#allocation2 + $0x40] sm:$0x11] %v1326_v1  ;;  %7781 = vmatpush3.bf16.msra.mxu1 %v8682_v50  ;;  %v10147_v61 = vcombine.high %v1288_v55, %v1297_v63  ;;  %v10149_v7 = vcombine.low %v1288_v55, %v1297_v63  ;;  %7896 = vmatprep.subr.bf16.mxu0 %v8687_v51  ;;  %v1630_v14 = vrot.slane %v10093_v16, 2  ;;  %v1565_v17 = vshrl.u32 %v10034_v24, 16  ;;  %v8695_v50 = vld [vmem:[#allocation6 + $0x268] sm:$0xff]   ;;  %vm1330_vm2 = vmor %vm10173_vm14, %vm10159_vm13 }
 0x334   : > { %7782 = vmatprep.subr.bf16.mxu1 %v8685_v58  ;;  %v10164_v12 = vsel %vm1623_vm1, %v1624_v4, %v1625_v62  ;;  %v10167_v13 = vsel %vm1623_vm1, %v1628_v21, %v1632_v6  ;;  %v10184_v26 = vshrl.u32 %v10093_v16, 16  ;;  %v1484_v36 = vor.u32 %v10155_v0, %v1472_v37 }
 0x335   : > { %2713 = vmatprep.mubr.bf16.mxu1 %v10147_v61  ;;  %v1532_v20 = vrot.slane %v10147_v61, 1  ;;  %v1530_v22 = vrot.slane %v10149_v7, 1  ;;  %v10181_v21 = vshll.u32 %v10147_v61, 16  ;;  %v10189_v38 = vshll.u32 %v10149_v7, 16 }
 0x336   : > { %2714 = vmatmul.mubr.bf16.gmra.mrb[12].mxu1 %v10149_v7  ;;  %7897 = vmatpush3.bf16.msra.mxu0 %v8688_v2  ;;  %v10192_v39 = vsel %vm1623_vm1, %v1625_v62, %v1630_v14  ;;  %v1636_v40 = vrot.slane %v10147_v61, 2  ;;  %v1476_v37 = vor.u32 %v10184_v26, %v1464_v60  ;;  %v1567_v55 = vrot.slane %v1565_v17, 1  ;;  %v8696_v62 = vld [vmem:[#allocation6 + $0x228] sm:$0xff]  }
 0x337   : > { %7783 = vmatpush3.bf16.msra.mxu1 %v8686_v45  ;;  %2754 = vmatprep.mubr.bf16.mxu1 %v10081_v8  ;;  %v1533_v42 = vsel %vm1519_vm9, %v1528_v29, %v1532_v20  ;;  %v1531_v48 = vsel %vm1519_vm9, %v1526_v30, %v1530_v22  ;;  %v1488_v51 = vrot.slane %v10181_v21, 1  ;;  %v8693_v8 = vld [vmem:[#allocation6 + $0x1c0] sm:$0xff]   ;;  %v1480_v29 = vrot.slane %v10189_v38, 1 }
 0x338   : > { %2835 = vmatprep.mubr.bf16.mxu0 %v1533_v42  ;;  %7784 = vmatprep.subr.bf16.mxu1 %v8689_v11  ;;  %v10216_v30 = vsel %vm1623_vm1, %v1632_v6, %v1636_v40  ;;  %v1568_v56 = vshll.u32 %v10034_v24, 16  ;;  %v10225_v43 = vshrl.u32 %v10147_v61, 16  ;;  %v1572_v58 = vrot.slane %v10077_v5, 1  ;;  %v8694_v6 = vld [vmem:[#allocation6 + $0x180] sm:$0xff]  }
 0x339   : > { %2836 = vmatmul.mubr.bf16.gmra.mrb[24].mxu0 %v1531_v48  ;;  %7898 = vmatprep.subr.bf16.mxu0 %v8691_v23  ;;  %v10222_v57 = vsel %vm1433_vm11, %v1484_v36, %v1488_v51  ;;  %v1573_v59 = vrot.slane %v10053_v46, 2  ;;  %v10232_v24 = vsel %vm1433_vm11, %v1476_v37, %v1480_v29  ;;  %v10235_v63 = vshrl.u32 %v10149_v7, 16  ;;  %v1355_v23 = vld [vmem:[#allocation2] sm:$0x88]  ;;  %v8701_v36 = vld [vmem:[#allocation6 + $0x270] sm:$0xff]  }
 0x33a   : > { %v1331_v60 = vld [vmem:[#allocation2 + $0x40] sm:$0x11]  ;;  %7899 = vmatpush3.bf16.msra.mxu0 %v8692_v27  ;;  %v1570_v1 = vrot.slane %v1568_v56, 2  ;;  %v1634_v2 = vrot.slane %v10149_v7, 2  ;;  %v1553_v11 = vshrl.u32 %v10037_v25, 16  ;;  %v1556_v17 = vshll.u32 %v10037_v25, 16 }
 0x33b   : > { %v1332_v4 = vsel %vm1330_vm2, 0, %v1331_v60  ;;  %7785 = vmatpush3.bf16.msra.mxu1 %v8690_v49  ;;  %7900 = vmatprep.subr.bf16.mxu0 %v8695_v50  ;;  %v1574_v45 = vor.u32 %v1573_v59, %v1572_v58  ;;  %v8698_v27 = vld [vmem:[#allocation6 + $0x1c8] sm:$0xff]   ;;  %v1560_v18 = vrot.slane %v10098_v28, 1  ;;  %v1561_v48 = vrot.slane %v10056_v47, 2  ;;  %v8705_v60 = vld [vmem:[#allocation6 + $0x278] sm:$0xff]  }
 0x33c   : > { %1333 = vst [vmem:[#allocation2 + $0x40] sm:$0x11] %v1332_v4  ;;  %7850 = vmatprep.subr.bf16.mxu1 %v8693_v8  ;;  %v1571_v42 = vor.u32 %v1570_v1, %v1567_v55  ;;  %v10248_v10 = vsel %vm1623_vm1, %v1630_v14, %v1634_v2  ;;  %v1555_v49 = vrot.slane %v1553_v11, 1  ;;  %v1558_v50 = vrot.slane %v1556_v17, 2  ;;  %v8702_v8 = vld [vmem:[#allocation6 + $0x230] sm:$0xff]   ;;  %v8700_v59 = vld [vmem:[#allocation6 + $0x188] sm:$0xff]  }
 0x33d   : > { %v1580_v37 = vrot.slane %v10155_v0, 1  ;;  %v1581_v25 = vrot.slane %v10104_v31, 2  ;;  %v1562_v56 = vor.u32 %v1561_v48, %v1560_v18  ;;  %v7341_v14 = vcombine.high %v1355_v23, %v10022_v53 }
 0x33e   : > { %2755 = vmatmul.mubr.bf16.vlgmr.msra.gmra.mrb[16].mxu1 %v10086_v9  ;;  %7901 = vmatpush3.bf16.msra.mxu0 %v8696_v62  ;;  %v10256_v55 = vsel %vm1551_vm12, %v1571_v42, %v1574_v45  ;;  %v1732_v58 = vrot.slane %v10041_v33, 3  ;;  %v1559_v1 = vor.u32 %v1558_v50, %v1555_v49  ;;  %v1576_v11 = vrot.slane %v10184_v26, 1  ;;  %v8703_v62 = vld [vmem:[#allocation6 + $0x1d0] sm:$0xff]  }
 0x33f   : > { %7851 = vmatpush3.bf16.msra.mxu1 %v8694_v6  ;;  %2762 = vmatprep.mubr.bf16.mxu1 %v10131_v44  ;;  %v1582_v4 = vor.u32 %v1581_v25, %v1580_v37  ;;  %v1577_v9 = vrot.slane %v10126_v52, 2  ;;  %v1731_v17 = vrot.slane %v7341_v14, 3  ;;  %v1588_v42 = vrot.slane %v10225_v43, 1 }
 0x340   : > { %7852 = vmatprep.subr.bf16.mxu1 %v8698_v27  ;;  %7902 = vmatprep.subr.bf16.mxu0 %v8701_v36  ;;  %v1589_v18 = vrot.slane %v10181_v21, 2  ;;  %v7340_v33 = vcombine.low %v1355_v23, %v10022_v53  ;;  %v10267_v44 = vsel %vm1551_vm12, %v1559_v1, %v1562_v56  ;;  %v1729_v49 = vrot.slane %v10043_v34, 3  ;;  %v8706_v27 = vld [vmem:[#allocation6 + $0x238] sm:$0xff]   ;;  %v8704_v53 = vld [vmem:[#allocation6 + $0x190] sm:$0xff]  }
 0x341   : > { %v10270_v6 = vsel %vm1551_vm12, %v1574_v45, %v1582_v4  ;;  %v1578_v48 = vor.u32 %v1577_v9, %v1576_v11  ;;  %v10274_v36 = vsel %vm1727_vm0, %v1731_v17, %v1732_v58  ;;  %v1736_v37 = vrot.slane %v10091_v15, 3  ;;  %v8707_v11 = vld [vmem:[#allocation6 + $0x1d8] sm:$0xff]   ;;  %v8709_v9 = vld [vmem:[#allocation6 + $0x340] sm:$0xff]  }
 0x342   : > { %7903 = vmatpush3.bf16.msra.mxu0 %v8702_v8  ;;  %v10276_v50 = vor.u32 %v1589_v18, %v1588_v42  ;;  %v1728_v45 = vrot.slane %v7340_v33, 3  ;;  %v1584_v14 = vrot.slane %v10235_v63, 1  ;;  %v1585_v34 = vrot.slane %v10189_v38, 2  ;;  %v8708_v18 = vld [vmem:[#allocation6 + $0x198] sm:$0xff]  }
 0x343   : > { %v1350_v25 = vld [vmem:[#allocation2 + $0x40] sm:$0x11]  ;;  %7853 = vmatpush3.bf16.msra.mxu1 %v8700_v59  ;;  %7904 = vmatprep.subr.bf16.mxu0 %v8705_v60  ;;  %v10280_v23 = vsel %vm1551_vm12, %v1562_v56, %v1578_v48  ;;  %v10292_v56 = vsel %vm1727_vm0, %v1732_v58, %v1736_v37  ;;  %vm4237_vm7 = vcmask 1043459   ;;  %vm4241_vm13 = vcmask 1045509  }
 0x344   : > { %v7331_v8 = vcombine.high %v1350_v25, %v1350_v25  ;;  %v7330_v1 = vcombine.low %v1350_v25, %v1350_v25  ;;  %7854 = vmatprep.subr.bf16.mxu1 %v8703_v62  ;;  %v10286_v15 = vsel %vm1551_vm12, %v1582_v4, %v10276_v50  ;;  %v10289_v59 = vsel %vm1727_vm0, %v1728_v45, %v1729_v49 }
 0x345   : > { %v10294_v60 = vor.u32 %v1585_v34, %v1584_v14  ;;  %v1740_v25 = vrot.slane %v10147_v61, 3  ;;  %v1676_v14 = vrot.slane %v10077_v5, 2  ;;  %v8713_v5 = vld [vmem:[#allocation6 + $0x348] sm:$0xff]   ;;  %vm11034_vm14 = vcmask 1046534  }
 0x346   : > { %v1536_v17 = vrot.slane %v7331_v8, 1  ;;  %v1534_v42 = vrot.slane %v7330_v1, 1  ;;  %2763 = vmatmul.mubr.bf16.gmra.mrb[20].mxu1 %v10152_v3  ;;  %7905 = vmatpush3.bf16.msra.mxu0 %v8706_v27  ;;  %v1502_v62 = vshll.u32 %v7331_v8, 16  ;;  %v8711_v3 = vld [vmem:[#allocation6 + $0x1e0] sm:$0xff]   ;;  %v1494_v34 = vshll.u32 %v7330_v1, 16  ;;  %v8716_v1 = vld [vmem:[#allocation6 + $0x1a8] sm:$0xff]  }
 0x347   : > { %7855 = vmatpush3.bf16.msra.mxu1 %v8704_v53  ;;  %2770 = vmatprep.mubr.bf16.mxu1 %v10222_v57  ;;  %v10300_v4 = vsel %vm1551_vm12, %v1578_v48, %v10294_v60  ;;  %v1734_v57 = vrot.slane %v10093_v16, 3  ;;  %v8712_v48 = vld [vmem:[#allocation6 + $0x1a0] sm:$0xff]   ;;  %v8715_v53 = vld [vmem:[#allocation6 + $0x1e8] sm:$0xff]   ;;  %v10321_v16 = vsel %vm1727_vm0, %v1736_v37, %v1740_v25  ;;  %v1657_v37 = vshrl.u32 %v10112_v41, 16 }
 0x348   : > { %v1537_v58 = vsel %vm1519_vm9, %v1532_v20, %v1536_v17  ;;  %v1535_v33 = vsel %vm1519_vm9, %v1530_v22, %v1534_v42  ;;  %7856 = vmatprep.subr.bf16.mxu1 %v8707_v11  ;;  %7970 = vmatprep.subr.bf16.mxu0 %v8709_v9  ;;  %v1504_v27 = vrot.slane %v1502_v62, 1  ;;  %v1500_v20 = vor.u32 %v10225_v43, %v1488_v51  ;;  %v8710_v17 = vld [vmem:[#allocation6 + $0x300] sm:$0xff]  }
 0x349   : > { %2843 = vmatprep.mubr.bf16.mxu0 %v1537_v58  ;;  %v1669_v22 = vshrl.u32 %v10063_v54, 16  ;;  %v10316_v45 = vsel %vm1727_vm0, %v1729_v49, %v1734_v57  ;;  %v1677_v9 = vrot.slane %v10053_v46, 3  ;;  %v1738_v49 = vrot.slane %v10149_v7, 3  ;;  %v8719_v46 = vld [vmem:[#allocation6 + $0x1f0] sm:$0xff]  }
 0x34a   : > { %2844 = vmatmul.mubr.bf16.gmra.mrb[28].mxu0 %v1535_v33  ;;  %v1505_v51 = vsel %vm1433_vm11, %v1500_v20, %v1504_v27  ;;  %v1659_v58 = vrot.slane %v1657_v37, 2  ;;  %v1665_v27 = vrot.slane %v10056_v47, 3  ;;  %v1492_v20 = vor.u32 %v10235_v63, %v1480_v29  ;;  %v8723_v29 = vld [vmem:[#allocation6 + $0x1f8] sm:$0xff]  }
 0x34b   : > { %2949 = vmatprep.mubr.bf16.mxu0 %v10107_v35  ;;  %7857 = vmatpush3.bf16.msra.mxu1 %v8708_v18  ;;  %v1672_v35 = vshll.u32 %v10063_v54, 16  ;;  %v1671_v8 = vrot.slane %v1669_v22, 2  ;;  %v1660_v54 = vshll.u32 %v10112_v41, 16  ;;  %v10334_v62 = vsel %vm1727_vm0, %v1734_v57, %v1738_v49  ;;  %v8714_v57 = vld [vmem:[#allocation6 + $0x308] sm:$0xff]  }
 0x34c   : > { %7858 = vmatprep.subr.bf16.mxu1 %v8711_v3  ;;  %v1496_v18 = vrot.slane %v1494_v34, 1  ;;  %v1664_v3 = vrot.slane %v10098_v28, 2  ;;  %v1685_v28 = vrot.slane %v10104_v31, 3  ;;  %v1688_v31 = vrot.slane %v10235_v63, 2  ;;  %v8724_v63 = vld [vmem:[#allocation6 + $0x1b8] sm:$0xff]  }
 0x34d   : > { %v1674_v11 = vrot.slane %v1672_v35, 3  ;;  %v1662_v33 = vrot.slane %v1660_v54, 3  ;;  %v8720_v35 = vld [vmem:[#allocation6 + $0x1b0] sm:$0xff]   ;;  %vm4245_vm2 = vcmask 1047559  }
 0x34e   : > { %2771 = vmatmul.mubr.bf16.gmra.mrb[24].mxu1 %v10232_v24  ;;  %v1678_v24 = vor.u32 %v1677_v9, %v1676_v14  ;;  %v1666_v47 = vor.u32 %v1665_v27, %v1664_v3  ;;  %v1693_v14 = vrot.slane %v10181_v21, 3  ;;  %v1497_v34 = vsel %vm1433_vm11, %v1492_v20, %v1496_v18  ;;  %v1352_v21 = vld [vmem:[#allocation2 + $0x40] sm:$0x33]  ;;  %v8732_v18 = vld [vmem:[#allocation6 + $0x2c8] sm:$0xff]   ;;  %v8737_v27 = vld [vmem:[#allocation6 + $0x2d0] sm:$0xff]  }
 0x34f   : > { %7859 = vmatpush3.bf16.msra.mxu1 %v8712_v48  ;;  %2778 = vmatprep.mubr.bf16.mxu1 %v1505_v51  ;;  %v1675_v42 = vor.u32 %v1674_v11, %v1671_v8  ;;  %v1684_v48 = vrot.slane %v10155_v0, 2  ;;  %v1663_v22 = vor.u32 %v1662_v33, %v1659_v58  ;;  %v1681_v0 = vrot.slane %v10126_v52, 3  ;;  %v8718_v52 = vld [vmem:[#allocation6 + $0x310] sm:$0xff]   ;;  %v8727_v33 = vld [vmem:[#allocation6 + $0x320] sm:$0xff]   ;;  %v8730_v3 = vld [vmem:[#allocation6 + $0x368] sm:$0xff]  }
 0x350   : > { %7860 = vmatprep.subr.bf16.mxu1 %v8715_v53  ;;  %v8717_v53 = vld [vmem:[#allocation6 + $0x350] sm:$0xff]  }
 0x351   : > { %v10339_v41 = vsel %vm1655_vm4, %v1675_v42, %v1678_v24  ;;  %v1686_v8 = vor.u32 %v1685_v28, %v1684_v48  ;;  %v10356_v51 = vsel %vm1655_vm4, %v1663_v22, %v1666_v47  ;;  %v8722_v42 = vld [vmem:[#allocation6 + $0x318] sm:$0xff]   ;;  %v8735_v22 = vld [vmem:[#allocation6 + $0x370] sm:$0xff]  }
 0x352   : > { %2950 = vmatmul.mubr.bf16.vlgmr.msra.gmra.mrb[32].mxu0 %v10164_v12  ;;  %v1680_v12 = vrot.slane %v10184_v26, 2  ;;  %v1689_v26 = vrot.slane %v10189_v38, 3  ;;  %v8721_v38 = vld [vmem:[#allocation6 + $0x358] sm:$0xff]   ;;  %v8738_v28 = vld [vmem:[#allocation6 + $0x290] sm:$0xff]  }
 0x353   : > { %2957 = vmatprep.mubr.bf16.mxu0 %v10167_v13  ;;  %7971 = vmatpush3.bf16.msra.mxu0 %v8710_v17  ;;  %v1692_v13 = vrot.slane %v10225_v43, 2  ;;  %v10362_v43 = vsel %vm1655_vm4, %v1678_v24, %v1686_v8  ;;  %v8725_v24 = vld [vmem:[#allocation6 + $0x360] sm:$0xff]  }
 0x354   : > { %7972 = vmatprep.subr.bf16.mxu0 %v8713_v5  ;;  %7861 = vmatpush3.bf16.msra.mxu1 %v8716_v1  ;;  %v1682_v11 = vor.u32 %v1681_v0, %v1680_v12  ;;  %v10364_v17 = vor.u32 %v1689_v26, %v1688_v31  ;;  %v8728_v5 = vld [vmem:[#allocation6 + $0x2c0] sm:$0xff]   ;;  %v7335_v1 = vcombine.high %v1352_v21, %v1352_v21  ;;  %v8745_v31 = vld [vmem:[#allocation6 + $0x2e8] sm:$0xff]  }
 0x355   : > { %7862 = vmatprep.subr.bf16.mxu1 %v8719_v46  ;;  %v10358_v9 = vor.u32 %v1693_v14, %v1692_v13  ;;  %v8729_v46 = vld [vmem:[#allocation6 + $0x280] sm:$0xff]  }
 0x356   : > { %2779 = vmatmul.mubr.bf16.gmra.mrb[28].mxu1 %v1497_v34  ;;  %v10367_v37 = vsel %vm1655_vm4, %v1666_v47, %v1682_v11  ;;  %v1640_v58 = vrot.slane %v7335_v1, 2  ;;  %v1602_v20 = vshrl.u32 %v7335_v1, 16  ;;  %v8742_v47 = vld [vmem:[#allocation6 + $0x298] sm:$0xff]   ;;  %v8743_v13 = vld [vmem:[#allocation6 + $0x2e0] sm:$0xff]  }
 0x357   : > { %7973 = vmatpush3.bf16.msra.mxu0 %v8714_v57  ;;  %2884 = vmatprep.mubr.bf16.mxu1 %v10256_v55  ;;  %v10371_v54 = vsel %vm1655_vm4, %v1686_v8, %v10358_v9  ;;  %v10375_v55 = vsel %vm1655_vm4, %v1682_v11, %v10364_v17  ;;  %v8731_v57 = vld [vmem:[#allocation6 + $0x328] sm:$0xff]   ;;  %v8744_v8 = vld [vmem:[#allocation6 + $0x2a0] sm:$0xff]  }
 0x358   : > { %7974 = vmatprep.subr.bf16.mxu0 %v8717_v53  ;;  %7863 = vmatpush3.bf16.msra.mxu1 %v8720_v35  ;;  %v1641_v48 = vsel %vm1623_vm1, %v1636_v40, %v1640_v58  ;;  %v8736_v53 = vld [vmem:[#allocation6 + $0x330] sm:$0xff]   ;;  %v8739_v40 = vld [vmem:[#allocation6 + $0x378] sm:$0xff]  }
 0x359   : > { %7864 = vmatprep.subr.bf16.mxu1 %v8723_v29 }
 0x35a   : > { %2958 = vmatmul.mubr.bf16.gmra.mrb[36].mxu0 %v10192_v39  ;;  %v8734_v39 = vld [vmem:[#allocation6 + $0x288] sm:$0xff]  }
 0x35b   : > { %2965 = vmatprep.mubr.bf16.mxu0 %v10216_v30  ;;  %7975 = vmatpush3.bf16.msra.mxu0 %v8718_v52  ;;  %v7334_v30 = vcombine.low %v1352_v21, %v1352_v21  ;;  %v8748_v21 = vld [vmem:[#allocation6 + $0x2b0] sm:$0xff]  }
 0x35c   : > { %7976 = vmatprep.subr.bf16.mxu0 %v8721_v38  ;;  %7865 = vmatpush3.bf16.msra.mxu1 %v8724_v63  ;;  %v8749_v38 = vld [vmem:[#allocation6 + $0x2f8] sm:$0xff]  }
 0x35d   : > { %7930 = vmatprep.subr.bf16.mxu1 %v8728_v5  ;;  %v1638_v12 = vrot.slane %v7334_v30, 2  ;;  %v1593_v14 = vshrl.u32 %v7334_v30, 16  ;;  %v1596_v34 = vshll.u32 %v7334_v30, 16  ;;  %v1354_v63 = vld [vmem:[#allocation2 + $0x40] sm:$0x77] }
 0x35e   : > { %v7338_v5 = vcombine.low %v1354_v63, %v1354_v63 }
 0x35f   : > { %7977 = vmatpush3.bf16.msra.mxu0 %v8722_v42  ;;  %2885 = vmatmul.mubr.bf16.vlgmr.msra.gmra.mrb[32].mxu1 %v10267_v44  ;;  %v1605_v44 = vshll.u32 %v7335_v1, 16  ;;  %v1639_v0 = vsel %vm1623_vm1, %v1634_v2, %v1638_v12  ;;  %v1595_v26 = vrot.slane %v1593_v14, 1  ;;  %v1598_v11 = vrot.slane %v1596_v34, 2 }
 0x360   : > { %7978 = vmatprep.subr.bf16.mxu0 %v8725_v24  ;;  %7931 = vmatpush3.bf16.msra.mxu1 %v8729_v46 }
 0x361   : > { %2892 = vmatprep.mubr.bf16.mxu1 %v10270_v6  ;;  %7932 = vmatprep.subr.bf16.mxu1 %v8732_v18  ;;  %v8741_v6 = vld [vmem:[#allocation6 + $0x2d8] sm:$0xff]   ;;  %v1607_v35 = vrot.slane %v1605_v44, 2  ;;  %v1599_v52 = vor.u32 %v1598_v11, %v1595_v26 }
 0x362   : > { %2966 = vmatmul.mubr.bf16.gmra.mrb[40].mxu0 %v10248_v10  ;;  %v1604_v10 = vrot.slane %v1602_v20, 1  ;;  %v7342_v11 = vld [vmem:[%s11106_s28] ss:$0 sm:$0xff]  ;;  %s7690_s28 = sshll.u32 %s9586_s2, 4  ;;  %s9340_s2 = scalar_lea.vmem %s10950_s21, 16 }
 0x363   : > { %2973 = vmatprep.mubr.bf16.mxu0 %v1641_v48  ;;  %7979 = vmatpush3.bf16.msra.mxu0 %v8727_v33  ;;  %s10948_s26 = scalar_lea.hbm %s11118_s23, %s7690_s28  ;;  %p9341_p3 = scmp.ne.s32.totalorder %s10950_s21, %s9340_s2 }
 0x364   : > { %7980 = vmatprep.subr.bf16.mxu0 %v8730_v3  ;;  %7933 = vmatpush3.bf16.msra.mxu1 %v8734_v39  ;;  %v1608_v29 = vor.u32 %v1607_v35, %v1604_v10  ;;  %p9348_p11 = scmp.lt.s32.totalorder %s9346_s0, %s9340_s2 }
 0x365   : > { %7934 = vmatprep.subr.bf16.mxu1 %v8737_v27  ;;  %p9342_p12 = pnand %p9341_p3, %p11120_p4 }
 0x366   : > { %v1609_v2 = vsel %vm1551_vm12, %v10276_v50, %v1608_v29  ;;  %v8750_v50 = vld [vmem:[#allocation6 + $0x2b8] sm:$0xff]   ;;  %p9349_p13 = por %p9348_p11, %p9347_p8 }
 0x367   : > { %7981 = vmatpush3.bf16.msra.mxu0 %v8731_v57  ;;  %2893 = vmatmul.mubr.bf16.gmra.mrb[36].mxu1 %v10280_v23  ;;  %v8740_v23 = vld [vmem:[#allocation6 + $0x338] sm:$0xff]   ;;  %p9343_p7 = pneg %p9342_p12 }
 0x368   : > { %7982 = vmatprep.subr.bf16.mxu0 %v8735_v22  ;;  %7935 = vmatpush3.bf16.msra.mxu1 %v8738_v28 }
 0x369   : > { %2900 = vmatprep.mubr.bf16.mxu1 %v10286_v15  ;;  %7936 = vmatprep.subr.bf16.mxu1 %v8741_v6  ;;  %v8746_v15 = vld [vmem:[#allocation6 + $0x2a8] sm:$0xff]   ;;  %p9350_p1 = pnand %p9349_p13, %p9343_p7 }
 0x36a   : > { %2974 = vmatmul.mubr.bf16.gmra.mrb[44].mxu0 %v1639_v0 }
 0x36b   : > { %7983 = vmatpush3.bf16.msra.mxu0 %v8736_v53  ;;  %3079 = vmatprep.mubr.bf16.mxu0 %v10274_v36  ;;  %v8747_v36 = vld [vmem:[#allocation6 + $0x2f0] sm:$0xff]  }
 0x36c   : > { %7984 = vmatprep.subr.bf16.mxu0 %v8739_v40  ;;  %7937 = vmatpush3.bf16.msra.mxu1 %v8742_v47 }
 0x36d   : > { %7938 = vmatprep.subr.bf16.mxu1 %v8743_v13 }
 0x36f   : > { %7985 = vmatpush3.bf16.msra.mxu0 %v8740_v23  ;;  %2901 = vmatmul.mubr.bf16.gmra.mrb[40].mxu1 %v10300_v4  ;;  %v1600_v4 = vsel %vm1551_vm12, %v10294_v60, %v1599_v52 }
 0x370   : > { %7939 = vmatpush3.bf16.msra.mxu1 %v8744_v8  ;;  %2908 = vmatprep.mubr.bf16.mxu1 %v1609_v2 }
 0x371   : > { %7940 = vmatprep.subr.bf16.mxu1 %v8745_v31 }
 0x372   : > { %3080 = vmatmul.mubr.bf16.vlgmr.msra.gmra.mrb[48].mxu0 %v10289_v59  ;;  %v7339_v59 = vcombine.high %v1354_v63, %v1354_v63 }
 0x373   : > { %3087 = vmatprep.mubr.bf16.mxu0 %v10292_v56 }
 0x374   : > { %7941 = vmatpush3.bf16.msra.mxu1 %v8746_v15  ;;  %v1744_v56 = vrot.slane %v7339_v59, 3  ;;  %v1709_v1 = vshll.u32 %v7339_v59, 16 }
 0x375   : > { %7942 = vmatprep.subr.bf16.mxu1 %v8747_v36 }
 0x376   : > { %v1745_v60 = vsel %vm1727_vm0, %v1740_v25, %v1744_v56  ;;  %v1711_v42 = vrot.slane %v1709_v1, 3 }
 0x377   : > { %2909 = vmatmul.mubr.bf16.gmra.mrb[44].mxu1 %v1600_v4 }
 0x378   : > { %7943 = vmatpush3.bf16.msra.mxu1 %v8748_v21  ;;  %3014 = vmatprep.mubr.bf16.mxu1 %v10339_v41  ;;  %v1706_v41 = vshrl.u32 %v7339_v59, 16 }
 0x379   : > { %7944 = vmatprep.subr.bf16.mxu1 %v8749_v38 }
 0x37a   : > { %3088 = vmatmul.mubr.bf16.gmra.mrb[52].mxu0 %v10316_v45  ;;  %v1742_v45 = vrot.slane %v7338_v5, 3 }
 0x37b   : > { %3095 = vmatprep.mubr.bf16.mxu0 %v10321_v16  ;;  %v1708_v16 = vrot.slane %v1706_v41, 2 }
 0x37c   : > { %7945 = vmatpush3.bf16.msra.mxu1 %v8750_v50 }
 0x37d   : > { %v1712_v61 = vor.u32 %v1711_v42, %v1708_v16 }
 0x37f   : > { %3015 = vmatmul.mubr.bf16.vlgmr.msra.gmra.mrb[48].mxu1 %v10356_v51  ;;  %v1743_v51 = vsel %vm1727_vm0, %v1738_v49, %v1742_v45  ;;  %v1713_v46 = vsel %vm1655_vm4, %v10358_v9, %v1712_v61 }
 0x380   : > { %3022 = vmatprep.mubr.bf16.mxu1 %v10362_v43  ;;  %v1700_v43 = vshll.u32 %v7338_v5, 16 }
 0x382   : > { %3096 = vmatmul.mubr.bf16.gmra.mrb[56].mxu0 %v10334_v62  ;;  %v1697_v62 = vshrl.u32 %v7338_v5, 16  ;;  %v1702_v25 = vrot.slane %v1700_v43, 3 }
 0x383   : > { %3103 = vmatprep.mubr.bf16.mxu0 %v1745_v60 }
 0x384   : > { %v1699_v24 = vrot.slane %v1697_v62, 2 }
 0x387   : > { %3023 = vmatmul.mubr.bf16.gmra.mrb[52].mxu1 %v10367_v37  ;;  %v1703_v37 = vor.u32 %v1702_v25, %v1699_v24 }
 0x388   : > { %3030 = vmatprep.mubr.bf16.mxu1 %v10371_v54 }
 0x389   : > { %v1704_v54 = vsel %vm1655_vm4, %v10364_v17, %v1703_v37 }
 0x38a   : > { %3104 = vmatmul.mubr.bf16.gmra.mrb[60].mxu0 %v1743_v51 }
 0x38f   : > { %3031 = vmatmul.mubr.bf16.gmra.mrb[56].mxu1 %v10375_v55 }
 0x390   : > { %3038 = vmatprep.mubr.bf16.mxu1 %v1713_v46 }
 0x397   : > { %3039 = vmatmul.mubr.bf16.gmra.mrb[60].mxu1 %v1704_v54 }
 0x3f1   : > { %v7746_v7 = vpop.f32.mrb[0].mxu1 }
 0x3f2   : > { %v7747_v18 = vpop.f32.mrb[1].mxu1 }
 0x3f3   : > { %v7748_v49 = vadd.f32 %v7747_v18, %v7746_v7  ;;  %v7749_v58 = vpop.f32.mrb[2].mxu1 }
 0x3f4   : > { %v7750_v33 = vpop.f32.mrb[3].mxu1 }
 0x3f5   : > { %v7751_v3 = vadd.f32 %v7750_v33, %v7749_v58  ;;  %v2692_v60 = vadd.f32 %v7748_v49, %v7342_v11 }
 0x3f7   : > { %v2695_v16 = vadd.f32 %v7751_v3, %v7342_v11 }
 0x3f9   : > { %v7752_v39 = vpop.f32.mrb[4].mxu1 }
 0x3fa   : > { %v7753_v30 = vpop.f32.mrb[5].mxu1 }
 0x3fb   : > { %v7754_v27 = vadd.f32 %v7753_v30, %v7752_v39  ;;  %v7755_v48 = vpop.f32.mrb[6].mxu1 }
 0x3fc   : > { %v7756_v55 = vpop.f32.mrb[7].mxu1  ;;  %v7826_v57 = vpop.f32.mrb[16].mxu0 }
 0x3fd   : > { %v7757_v20 = vadd.f32 %v7756_v55, %v7755_v48  ;;  %v7827_v9 = vpop.f32.mrb[17].mxu0  ;;  %v2700_v46 = vadd.f32 %v7754_v27, %v7342_v11 }
 0x3fe   : > { %v7828_v44 = vadd.f32 %v7827_v9, %v7826_v57  ;;  %v7829_v22 = vpop.f32.mrb[18].mxu0 }
 0x3ff   : > { %v7830_v28 = vpop.f32.mrb[19].mxu0  ;;  %v2703_v18 = vadd.f32 %v7757_v20, %v7342_v11 }
 0x400   : > { %v7831_v12 = vadd.f32 %v7830_v28, %v7829_v22 }
 0x401   : > { %v7758_v17 = vpop.f32.mrb[8].mxu1 }
 0x402   : > { %v7759_v6 = vpop.f32.mrb[9].mxu1 }
 0x403   : > { %v7760_v53 = vadd.f32 %v7759_v6, %v7758_v17  ;;  %v7761_v10 = vpop.f32.mrb[10].mxu1 }
 0x404   : > { %v7762_v35 = vpop.f32.mrb[11].mxu1  ;;  %v7832_v40 = vpop.f32.mrb[20].mxu0 }
 0x405   : > { %v7763_v47 = vadd.f32 %v7762_v35, %v7761_v10  ;;  %v7833_v0 = vpop.f32.mrb[21].mxu0 }
 0x406   : > { %v7834_v13 = vadd.f32 %v7833_v0, %v7832_v40  ;;  %v7835_v14 = vpop.f32.mrb[22].mxu0 }
 0x407   : > { %v7836_v34 = vpop.f32.mrb[23].mxu0  ;;  %v2711_v10 = vadd.f32 %v7763_v47, %v7342_v11 }
 0x408   : > { %v7837_v23 = vadd.f32 %v7836_v34, %v7835_v14 }
 0x409   : > { %v7764_v29 = vpop.f32.mrb[12].mxu1 }
 0x40a   : > { %v7765_v8 = vpop.f32.mrb[13].mxu1 }
 0x40b   : > { %v7766_v31 = vadd.f32 %v7765_v8, %v7764_v29  ;;  %v7767_v26 = vpop.f32.mrb[14].mxu1 }
 0x40c   : > { %v7768_v2 = vpop.f32.mrb[15].mxu1  ;;  %v7838_v15 = vpop.f32.mrb[24].mxu0 }
 0x40d   : > { %v2716_v36 = vadd.f32 %v7766_v31, %v7342_v11  ;;  %v7769_v52 = vadd.f32 %v7768_v2, %v7767_v26  ;;  %v7839_v21 = vpop.f32.mrb[25].mxu0 }
 0x40e   : > { %v7840_v38 = vadd.f32 %v7839_v21, %v7838_v15  ;;  %v7841_v4 = vpop.f32.mrb[26].mxu0 }
 0x40f   : > { %v2719_v63 = vadd.f32 %v7769_v52, %v7342_v11  ;;  %v7842_v50 = vpop.f32.mrb[27].mxu0 }
 0x410   : > { %v7843_v59 = vadd.f32 %v7842_v50, %v7841_v4 }
 0x411   : > { %v7786_v56 = vpop.f32.mrb[16].mxu1 }
 0x412   : > { %v7787_v5 = vpop.f32.mrb[17].mxu1 }
 0x413   : > { %v7788_v41 = vadd.f32 %v7787_v5, %v7786_v56  ;;  %v7789_v1 = vpop.f32.mrb[18].mxu1 }
 0x414   : > { %v7790_v45 = vpop.f32.mrb[19].mxu1 }
 0x415   : > { %v2757_v42 = vadd.f32 %v7788_v41, %v2692_v60  ;;  %v7791_v51 = vadd.f32 %v7790_v45, %v7789_v1 }
 0x417   : > { %v2760_v62 = vadd.f32 %v7791_v51, %v2695_v16  ;;  %v2822_v43 = vadd.f32 %v7828_v44, %v2757_v42 }
 0x419   : > { %v7792_v61 = vpop.f32.mrb[20].mxu1  ;;  %v10420_v24 = vadd.f32 %v7831_v12, %v2760_v62  ;;  %v2708_v12 = vadd.f32 %v7760_v53, %v7342_v11 }
 0x41a   : > { %v7793_v25 = vpop.f32.mrb[21].mxu1 }
 0x41b   : > { %v7794_v37 = vadd.f32 %v7793_v25, %v7792_v61  ;;  %v7795_v54 = vpop.f32.mrb[22].mxu1 }
 0x41c   : > { %v7796_v7 = vpop.f32.mrb[23].mxu1 }
 0x41d   : > { %v7844_v58 = vpop.f32.mrb[28].mxu0  ;;  %v2765_v33 = vadd.f32 %v7794_v37, %v2700_v46  ;;  %v7797_v49 = vadd.f32 %v7796_v7, %v7795_v54 }
 0x41e   : > { %v7845_v39 = vpop.f32.mrb[29].mxu0 }
 0x41f   : > { %v7846_v30 = vadd.f32 %v7845_v39, %v7844_v58  ;;  %v7847_v48 = vpop.f32.mrb[30].mxu0  ;;  %v2768_v3 = vadd.f32 %v7797_v49, %v2703_v18  ;;  %v2830_v55 = vadd.f32 %v7834_v13, %v2765_v33 }
 0x420   : > { %v7848_v57 = vpop.f32.mrb[31].mxu0 }
 0x421   : > { %v7849_v9 = vadd.f32 %v7848_v57, %v7847_v48  ;;  %v7798_v44 = vpop.f32.mrb[24].mxu1  ;;  %v2833_v22 = vadd.f32 %v7837_v23, %v2768_v3 }
 0x422   : > { %v7799_v28 = vpop.f32.mrb[25].mxu1 }
 0x423   : > { %v7800_v17 = vadd.f32 %v7799_v28, %v7798_v44  ;;  %v7801_v27 = vpop.f32.mrb[26].mxu1 }
 0x424   : > { %v7802_v6 = vpop.f32.mrb[27].mxu1 }
 0x425   : > { %v7906_v35 = vpop.f32.mrb[32].mxu0  ;;  %v2773_v20 = vadd.f32 %v7800_v17, %v2708_v12  ;;  %v7803_v40 = vadd.f32 %v7802_v6, %v7801_v27 }
 0x426   : > { %v7907_v0 = vpop.f32.mrb[33].mxu0 }
 0x427   : > { %v7908_v14 = vadd.f32 %v7907_v0, %v7906_v35  ;;  %v7909_v34 = vpop.f32.mrb[34].mxu0  ;;  %v2776_v29 = vadd.f32 %v7803_v40, %v2711_v10  ;;  %v2838_v8 = vadd.f32 %v7840_v38, %v2773_v20 }
 0x428   : > { %v7910_v31 = vpop.f32.mrb[35].mxu0 }
 0x429   : > { %v7911_v13 = vadd.f32 %v7910_v31, %v7909_v34  ;;  %v7804_v26 = vpop.f32.mrb[28].mxu1  ;;  %v2841_v2 = vadd.f32 %v7843_v59, %v2776_v29 }
 0x42a   : > { %v7805_v15 = vpop.f32.mrb[29].mxu1 }
 0x42b   : > { %v7806_v23 = vadd.f32 %v7805_v15, %v7804_v26  ;;  %v7807_v52 = vpop.f32.mrb[30].mxu1 }
 0x42c   : > { %v7808_v53 = vpop.f32.mrb[31].mxu1 }
 0x42d   : > { %v7912_v21 = vpop.f32.mrb[36].mxu0  ;;  %v2781_v4 = vadd.f32 %v7806_v23, %v2716_v36  ;;  %v7809_v50 = vadd.f32 %v7808_v53, %v7807_v52  ;;  %v8753_v52 = vld [vmem:[#allocation8 + $0x40] sm:$0xff]  }
 0x42e   : > { %v7913_v47 = vpop.f32.mrb[37].mxu0  ;;  %8010 = vmatprep.subr.bf16.mxu1 %v8753_v52 }
 0x42f   : > { %v7914_v11 = vadd.f32 %v7913_v47, %v7912_v21  ;;  %v7915_v56 = vpop.f32.mrb[38].mxu0  ;;  %v2784_v5 = vadd.f32 %v7809_v50, %v2719_v63  ;;  %v10422_v60 = vadd.f32 %v7846_v30, %v2781_v4  ;;  %v8754_v4 = vld [vmem:[#allocation8] sm:$0xff]  }
 0x430   : > { %v7916_v41 = vpop.f32.mrb[39].mxu0  ;;  %v8755_v47 = vld [vmem:[#allocation8 + $0xc0] sm:$0xff]   ;;  %8011 = vmatpush3.bf16.msra.mxu1 %v8754_v4 }
 0x431   : > { %v7917_v1 = vadd.f32 %v7916_v41, %v7915_v56  ;;  %v10424_v38 = vadd.f32 %v7849_v9, %v2784_v5  ;;  %v8756_v56 = vld [vmem:[#allocation8 + $0x80] sm:$0xff]   ;;  %8032 = vmatprep.subr.bf16.mxu0 %v8755_v47 }
 0x432   : > { %v7866_v45 = vpop.f32.mrb[32].mxu1  ;;  %8033 = vmatpush3.bf16.msra.mxu0 %v8756_v56  ;;  %v8772_v4 = vld [vmem:[#allocation8 + $0xa0] sm:$0xff]   ;;  %v8774_v56 = vld [vmem:[#allocation8 + $0x28] sm:$0xff]  }
 0x433   : > { %v7867_v16 = vpop.f32.mrb[33].mxu1 }
 0x434   : > { %v7868_v59 = vadd.f32 %v7867_v16, %v7866_v45  ;;  %v7869_v42 = vpop.f32.mrb[34].mxu1 }
 0x435   : > { %v7918_v51 = vpop.f32.mrb[40].mxu0  ;;  %v7870_v62 = vpop.f32.mrb[35].mxu1 }
 0x436   : > { %v7919_v61 = vpop.f32.mrb[41].mxu0  ;;  %v2887_v25 = vadd.f32 %v7868_v59, %v2822_v43  ;;  %v7871_v36 = vadd.f32 %v7870_v62, %v7869_v42  ;;  %v8758_v59 = vld [vmem:[#allocation8 + $0x8] sm:$0xff]  }
 0x437   : > { %v7920_v46 = vadd.f32 %v7919_v61, %v7918_v51  ;;  %v7921_v37 = vpop.f32.mrb[42].mxu0  ;;  %v8759_v62 = vld [vmem:[#allocation8 + $0xc8] sm:$0xff]  }
 0x438   : > { %v7922_v54 = vpop.f32.mrb[43].mxu0  ;;  %v2890_v63 = vadd.f32 %v7871_v36, %v10420_v24  ;;  %v10427_v7 = vadd.f32 %v7908_v14, %v2887_v25  ;;  %8034 = vmatprep.subr.bf16.mxu0 %v8759_v62  ;;  %v8776_v62 = vld [vmem:[#allocation8 + $0xa8] sm:$0xff]  }
 0x439   : > { %v7923_v18 = vadd.f32 %v7922_v54, %v7921_v37  ;;  %v8761_v54 = vld [vmem:[#allocation8 + $0x50] sm:$0xff]  }
 0x43a   : > { %v7872_v58 = vpop.f32.mrb[36].mxu1  ;;  %v10429_v33 = vadd.f32 %v7911_v13, %v2890_v63 }
 0x43b   : > { %v7873_v49 = vpop.f32.mrb[37].mxu1 }
 0x43c   : > { %v7874_v39 = vadd.f32 %v7873_v49, %v7872_v58  ;;  %v7875_v30 = vpop.f32.mrb[38].mxu1  ;;  %v9456_v58 = vmov 1966171168  }
 0x43d   : > { %v7924_v48 = vpop.f32.mrb[44].mxu0  ;;  %v7876_v3 = vpop.f32.mrb[39].mxu1  ;;  %v3149_v49 = vunpack.c.l.s4 %v9456_v58 }
 0x43e   : > { %v7925_v57 = vpop.f32.mrb[45].mxu0  ;;  %v2895_v9 = vadd.f32 %v7874_v39, %v2830_v55  ;;  %v7877_v43 = vadd.f32 %v7876_v3, %v7875_v30  ;;  %v8763_v30 = vld [vmem:[#allocation8 + $0xd0] sm:$0xff]  }
 0x43f   : > { %v7926_v44 = vadd.f32 %v7925_v57, %v7924_v48  ;;  %v7927_v28 = vpop.f32.mrb[46].mxu0  ;;  %v8764_v3 = vld [vmem:[#allocation8 + $0x90] sm:$0xff]  }
 0x440   : > { %v7928_v12 = vpop.f32.mrb[47].mxu0  ;;  %v2898_v17 = vadd.f32 %v7877_v43, %v2833_v22  ;;  %v10431_v27 = vadd.f32 %v7914_v11, %v2895_v9  ;;  %v8765_v43 = vld [vmem:[#allocation8 + $0x58] sm:$0xff]  }
 0x441   : > { %v7929_v24 = vadd.f32 %v7928_v12, %v7927_v28 }
 0x442   : > { %v7878_v6 = vpop.f32.mrb[40].mxu1  ;;  %v10433_v10 = vadd.f32 %v7917_v1, %v2898_v17  ;;  %v8766_v17 = vld [vmem:[#allocation8 + $0x18] sm:$0xff]  }
 0x443   : > { %v7879_v35 = vpop.f32.mrb[41].mxu1 }
 0x444   : > { %v7880_v20 = vadd.f32 %v7879_v35, %v7878_v6  ;;  %v7881_v40 = vpop.f32.mrb[42].mxu1  ;;  %v10455_v6 = vshrl.u32 %v828_v19, 7 }
 0x445   : > { %v7986_v0 = vpop.f32.mrb[48].mxu0  ;;  %v7882_v14 = vpop.f32.mrb[43].mxu1 }
 0x446   : > { %v7987_v34 = vpop.f32.mrb[49].mxu0  ;;  %v2903_v29 = vadd.f32 %v7880_v20, %v2838_v8  ;;  %v7883_v31 = vadd.f32 %v7882_v14, %v7881_v40  ;;  %v8767_v40 = vld [vmem:[#allocation8 + $0xd8] sm:$0xff]  }
 0x447   : > { %v10435_v55 = vadd.f32 %v7987_v34, %v7986_v0  ;;  %v7989_v13 = vpop.f32.mrb[50].mxu0 }
 0x448   : > { %v7990_v26 = vpop.f32.mrb[51].mxu0  ;;  %v2906_v15 = vadd.f32 %v7883_v31, %v2841_v2  ;;  %v10437_v22 = vadd.f32 %v7920_v46, %v2903_v29  ;;  %v8757_v2 = vld [vmem:[#allocation8 + $0x48] sm:$0xff]   ;;  %v8768_v29 = vld [vmem:[#allocation8 + $0x98] sm:$0xff]   ;;  %v8769_v31 = vld [vmem:[#allocation8 + $0x60] sm:$0xff]  }
 0x449   : > { %v10439_v23 = vadd.f32 %v7990_v26, %v7989_v13  ;;  %8012 = vmatprep.subr.bf16.mxu1 %v8757_v2  ;;  %v8760_v46 = vld [vmem:[#allocation8 + $0x88] sm:$0xff]   ;;  %v8777_v2 = vld [vmem:[#allocation8 + $0x70] sm:$0xff]  }
 0x44a   : > { %v7884_v53 = vpop.f32.mrb[44].mxu1  ;;  %v10441_v21 = vadd.f32 %v7923_v18, %v2906_v15  ;;  %8013 = vmatpush3.bf16.msra.mxu1 %v8758_v59  ;;  %8035 = vmatpush3.bf16.msra.mxu0 %v8760_v46  ;;  %v8762_v18 = vld [vmem:[#allocation8 + $0x10] sm:$0xff]   ;;  %v8770_v15 = vld [vmem:[#allocation8 + $0x20] sm:$0xff]  }
 0x44b   : > { %v7885_v50 = vpop.f32.mrb[45].mxu1  ;;  %8014 = vmatprep.subr.bf16.mxu1 %v8761_v54  ;;  %8036 = vmatprep.subr.bf16.mxu0 %v8763_v30 }
 0x44c   : > { %v7886_v11 = vadd.f32 %v7885_v50, %v7884_v53  ;;  %v7887_v8 = vpop.f32.mrb[46].mxu1 }
 0x44d   : > { %v7992_v5 = vpop.f32.mrb[52].mxu0  ;;  %v7888_v41 = vpop.f32.mrb[47].mxu1 }
 0x44e   : > { %v7993_v1 = vpop.f32.mrb[53].mxu0  ;;  %v2911_v45 = vadd.f32 %v7886_v11, %v10422_v60  ;;  %v7889_v16 = vadd.f32 %v7888_v41, %v7887_v8  ;;  %8015 = vmatpush3.bf16.msra.mxu1 %v8762_v18  ;;  %8037 = vmatpush3.bf16.msra.mxu0 %v8764_v3 }
 0x44f   : > { %v10444_v42 = vadd.f32 %v7993_v1, %v7992_v5  ;;  %v7995_v51 = vpop.f32.mrb[54].mxu0  ;;  %8016 = vmatprep.subr.bf16.mxu1 %v8765_v43  ;;  %8038 = vmatprep.subr.bf16.mxu0 %v8767_v40  ;;  %v8775_v5 = vld [vmem:[#allocation8 + $0xe8] sm:$0xff]  }
 0x450   : > { %v7996_v61 = vpop.f32.mrb[55].mxu0  ;;  %v2914_v25 = vadd.f32 %v7889_v16, %v10424_v38  ;;  %v10447_v36 = vadd.f32 %v7926_v44, %v2911_v45 }
 0x451   : > { %v10449_v37 = vadd.f32 %v7996_v61, %v7995_v51 }
 0x452   : > { %v7946_v60 = vpop.f32.mrb[48].mxu1  ;;  %v10451_v63 = vadd.f32 %v7929_v24, %v2914_v25  ;;  %v3150_v24 = vunpack.c.0.s8 %v3149_v49  ;;  %8017 = vmatpush3.bf16.msra.mxu1 %v8766_v17  ;;  %8039 = vmatpush3.bf16.msra.mxu0 %v8768_v29 }
 0x453   : > { %v7947_v39 = vpop.f32.mrb[49].mxu1  ;;  %8018 = vmatprep.subr.bf16.mxu1 %v8769_v31 }
 0x454   : > { %v7948_v48 = vadd.f32 %v7947_v39, %v7946_v60  ;;  %v7949_v38 = vpop.f32.mrb[50].mxu1  ;;  %v10465_v52 = vsub.s32 %v3150_v24, %v10455_v6  ;;  %v8779_v60 = vld [vmem:[#allocation8 + $0xf0] sm:$0xff]  }
 0x455   : > { %v7998_v57 = vpop.f32.mrb[56].mxu0  ;;  %v7950_v9 = vpop.f32.mrb[51].mxu1 }
 0x456   : > { %v7999_v44 = vpop.f32.mrb[57].mxu0  ;;  %v3017_v28 = vadd.f32 %v7948_v48, %v10427_v7  ;;  %v7951_v12 = vadd.f32 %v7950_v9, %v7949_v38  ;;  %8019 = vmatpush3.bf16.msra.mxu1 %v8770_v15 }
 0x457   : > { %v10457_v35 = vadd.f32 %v7999_v44, %v7998_v57  ;;  %v8001_v20 = vpop.f32.mrb[58].mxu0  ;;  %v8781_v57 = vld [vmem:[#allocation8 + $0x78] sm:$0xff]  }
 0x458   : > { %v8002_v0 = vpop.f32.mrb[59].mxu0  ;;  %v3082_v14 = vadd.f32 %v10435_v55, %v3017_v28  ;;  %v3020_v34 = vadd.f32 %v7951_v12, %v10429_v33  ;;  %v8771_v55 = vld [vmem:[#allocation8 + $0xe0] sm:$0xff]   ;;  %v8773_v33 = vld [vmem:[#allocation8 + $0x68] sm:$0xff]   ;;  %v8780_v28 = vld [vmem:[#allocation8 + $0xb0] sm:$0xff]  }
 0x459   : > { %v10461_v7 = vadd.f32 %v8002_v0, %v8001_v20  ;;  %8040 = vmatprep.subr.bf16.mxu0 %v8771_v55  ;;  %8020 = vmatprep.subr.bf16.mxu1 %v8773_v33  ;;  %v8783_v0 = vld [vmem:[#allocation8 + $0xf8] sm:$0xff]  }
 0x45a   : > { %v3112_v13 = vmax.f32 %v3082_v14, 0.0  ;;  %v3085_v19 = vadd.f32 %v10439_v23, %v3020_v34  ;;  %v7952_v26 = vpop.f32.mrb[52].mxu1  ;;  %8041 = vmatpush3.bf16.msra.mxu0 %v8772_v4  ;;  %8021 = vmatpush3.bf16.msra.mxu1 %v8774_v56 }
 0x45b   : > { %v7953_v53 = vpop.f32.mrb[53].mxu1  ;;  %8042 = vmatprep.subr.bf16.mxu0 %v8775_v5  ;;  %8022 = vmatprep.subr.bf16.mxu1 %v8777_v2 }
 0x45c   : > { %v3129_v50 = vrot.slane %v3112_v13, 7  ;;  %v3113_v47 = vmax.f32 %v3085_v19, 0.0  ;;  %v7954_v11 = vadd.f32 %v7953_v53, %v7952_v26  ;;  %v7955_v8 = vpop.f32.mrb[54].mxu1  ;;  %v8782_v13 = vld [vmem:[#allocation8 + $0x38] sm:$0xff]  }
 0x45d   : > { %v8004_v41 = vpop.f32.mrb[60].mxu0  ;;  %v7956_v23 = vpop.f32.mrb[55].mxu1 }
 0x45e   : > { %v3145_v1 = vsel %vm1176_vm8, 0.0, %v3129_v50  ;;  %v10468_v45 = vrot.slane %v3113_v47, 7  ;;  %v8005_v16 = vpop.f32.mrb[61].mxu0  ;;  %v3025_v59 = vadd.f32 %v7954_v11, %v10431_v27  ;;  %v7957_v51 = vadd.f32 %v7956_v23, %v7955_v8  ;;  %v8778_v27 = vld [vmem:[#allocation8 + $0x30] sm:$0xff]   ;;  %8043 = vmatpush3.bf16.msra.mxu0 %v8776_v62  ;;  %v8784_v11 = vld [vmem:[#allocation8 + $0xb8] sm:$0xff]  }
 0x45f   : > { %v3147_v61 = vcombine.high %v3145_v1, %v3145_v1  ;;  %v3154_v25 = vrot.slane %v3145_v1, %v10465_v52  ;;  %v10472_v46 = vadd.f32 %v8005_v16, %v8004_v41  ;;  %v8007_v54 = vpop.f32.mrb[62].mxu0  ;;  %8044 = vmatprep.subr.bf16.mxu0 %v8779_v60  ;;  %8023 = vmatpush3.bf16.msra.mxu1 %v8778_v27 }
 0x460   : > { %v3131_v18 = vsel %vm1176_vm8, %v3129_v50, %v10468_v45  ;;  %v8008_v58 = vpop.f32.mrb[63].mxu0  ;;  %v3090_v49 = vadd.f32 %v10444_v42, %v3025_v59  ;;  %v3028_v39 = vadd.f32 %v7957_v51, %v10433_v10  ;;  %8024 = vmatprep.subr.bf16.mxu1 %v8781_v57 }
 0x461   : > { %v3161_v30 = vrot.slane %v3147_v61, %v10465_v52  ;;  %v3162_v48 = vcombine.high %v3154_v25, %v3154_v25  ;;  %v3170_v38 = vrot.slane %v3154_v25, %v10465_v52  ;;  %v3196_v3 = vcombine.high %v3131_v18, %v3131_v18  ;;  %v8787_v25 = vld [vmem:[#allocation8 + $0x140] sm:$0xff]  }
 0x462   : > { %v3203_v9 = vrot.slane %v3131_v18, %v10465_v52  ;;  %v10481_v43 = vadd.f32 %v8008_v58, %v8007_v54  ;;  %v3114_v44 = vmax.f32 %v3090_v49, 0.0  ;;  %v10484_v42 = vadd.f32 %v10449_v37, %v3028_v39  ;;  %v10486_v10 = vpop.f32.mrb[56].mxu1  ;;  %8045 = vmatpush3.bf16.msra.mxu0 %v8780_v28 }
 0x463   : > { %v3163_v12 = vcombine.high %v3161_v30, %v3161_v30  ;;  %v3177_v17 = vrot.slane %v3161_v30, %v10465_v52  ;;  %v3184_v24 = vrot.slane %v3162_v48, %v10465_v52  ;;  %v3192_v20 = vcombine.high %v3170_v38, %v3170_v38  ;;  %v10490_v40 = vpop.f32.mrb[57].mxu1  ;;  %8046 = vmatprep.subr.bf16.mxu0 %v8783_v0 }
 0x464   : > { %v3210_v14 = vrot.slane %v3196_v3, %v10465_v52  ;;  %v3211_v34 = vcombine.high %v3203_v9, %v3203_v9  ;;  %v3219_v37 = vrot.slane %v3203_v9, %v10465_v52  ;;  %v10494_v29 = vrot.slane %v3114_v44, 7  ;;  %v10496_v31 = vpop.f32.mrb[58].mxu1  ;;  %8025 = vmatpush3.bf16.msra.mxu1 %v8782_v13 }
 0x465   : > { %v3191_v19 = vrot.slane %v3163_v12, %v10465_v52  ;;  %v3194_v26 = vcombine.high %v3184_v24, %v3184_v24  ;;  %v3514_v15 = vcombine.low %v3170_v38, %v3184_v24  ;;  %v3528_v53 = vrot.slane %v3192_v20, %v10465_v52  ;;  %v10500_v55 = vpop.f32.mrb[59].mxu1  ;;  %8054 = vmatprep.subr.bf16.mxu1 %v8787_v25 }
 0x466   : > { %v3212_v4 = vcombine.high %v3210_v14, %v3210_v14  ;;  %v3226_v33 = vrot.slane %v3210_v14, %v10465_v52  ;;  %v3233_v50 = vrot.slane %v3211_v34, %v10465_v52  ;;  %v3241_v47 = vcombine.high %v3219_v37, %v3219_v37  ;;  %8047 = vmatpush3.bf16.msra.mxu0 %v8784_v11 }
 0x467   : > { %v3521_v8 = vrot.slane %v3514_v15, %v10465_v52  ;;  %v3537_v56 = vcombine.low %v3194_v26, %v3177_v17  ;;  %v3551_v5 = vrot.slane %v3191_v19, %v10465_v52  ;;  %v7455_v41 = vcombine.high %v3177_v17, %v3191_v19 }
 0x468   : > { %v3240_v23 = vrot.slane %v3212_v4, %v10465_v52  ;;  %v3242_v2 = vcombine.high %v3226_v33, %v3226_v33  ;;  %v3243_v1 = vcombine.high %v3233_v50, %v3233_v50  ;;  %v3574_v16 = vrot.slane %v3219_v37, %v10465_v52 }
 0x469   : > { %v3529_v59 = vcombine.low %v3521_v8, %v3528_v53  ;;  %v3544_v51 = vrot.slane %v3537_v56, %v10465_v52  ;;  %v3567_v62 = vrot.slane %v7455_v41, %v10465_v52  ;;  %v3583_v61 = vcombine.low %v3233_v50, %v3241_v47 }
 0x46a   : > { %v3597_v54 = vrot.slane %v3243_v1, %v10465_v52  ;;  %v3606_v60 = vcombine.low %v3226_v33, %v3240_v23  ;;  %v3620_v18 = vrot.slane %v3242_v2, %v10465_v52  ;;  %v3133_v58 = vsel %vm1176_vm8, %v10468_v45, %v10494_v29  ;;  %v10515_v49 = vpop.f32.mrb[60].mxu1 }
 0x46b   : > { %v3536_v39 = vrot.slane %v3529_v59, %v10465_v52  ;;  %v3552_v27 = vcombine.low %v3544_v51, %v3551_v5  ;;  %v3575_v30 = vcombine.low %v3567_v62, %v3574_v16  ;;  %v3590_v48 = vrot.slane %v3583_v61, %v10465_v52  ;;  %v10519_v38 = vpop.f32.mrb[61].mxu1 }
 0x46c   : > { %v3613_v3 = vrot.slane %v3606_v60, %v10465_v52  ;;  %v3244_v57 = vcombine.high %v3240_v23, %v3240_v23  ;;  %v3245_v9 = vcombine.high %v3133_v58, %v3133_v58  ;;  %v3252_v44 = vrot.slane %v3133_v58, %v10465_v52  ;;  %v10523_v28 = vpop.f32.mrb[62].mxu1 }
 0x46d   : > { %v3559_v45 = vrot.slane %v3552_v27, %v10465_v52  ;;  %v3995_v12 = vsel %vm3994_vm6, %v3536_v39, -inf  ;;  %v3582_v17 = vrot.slane %v3575_v30, %v10465_v52  ;;  %v3598_v24 = vcombine.low %v3590_v48, %v3597_v54  ;;  %v10528_v20 = vpop.f32.mrb[63].mxu1 }
 0x46e   : > { %v3996_v0 = vrot.slane %v3995_v12, 4  ;;  %v3621_v14 = vcombine.low %v3613_v3, %v3620_v18  ;;  %v3259_v34 = vrot.slane %v3245_v9, %v10465_v52  ;;  %v3260_v37 = vcombine.high %v3252_v44, %v3252_v44 }
 0x46f   : > { %v4002_v13 = vsel %vm3994_vm6, %v3559_v45, -inf  ;;  %v3605_v19 = vrot.slane %v3598_v24, %v10465_v52  ;;  %v4009_v26 = vsel %vm3994_vm6, %v3582_v17, -inf  ;;  %v3268_v15 = vrot.slane %v3252_v44, %v10465_v52 }
 0x470   : > { %v3997_v53 = vmax.f32 %v3995_v12, %v3996_v0  ;;  %v4003_v4 = vrot.slane %v4002_v13, 4  ;;  %v3628_v33 = vrot.slane %v3621_v14, %v10465_v52  ;;  %v4010_v50 = vrot.slane %v4009_v26, 4 }
 0x471   : > { %v4016_v47 = vsel %vm3994_vm6, %v3605_v19, -inf  ;;  %v3261_v11 = vcombine.high %v3259_v34, %v3259_v34  ;;  %v3275_v8 = vrot.slane %v3259_v34, %v10465_v52  ;;  %v3282_v56 = vrot.slane %v3260_v37, %v10465_v52 }
 0x472   : > { %v3998_v5 = vrot.slane %v3997_v53, 2  ;;  %v4004_v41 = vmax.f32 %v4002_v13, %v4003_v4  ;;  %v4011_v23 = vmax.f32 %v4009_v26, %v4010_v50  ;;  %v4017_v2 = vrot.slane %v4016_v47, 4 }
 0x473   : > { %v4023_v1 = vsel %vm3994_vm6, %v3628_v33, -inf  ;;  %v3289_v16 = vrot.slane %v3261_v11, %v10465_v52  ;;  %v3291_v59 = vcombine.high %v3275_v8, %v3275_v8  ;;  %v3629_v51 = vcombine.low %v3244_v57, %v3268_v15 }
 0x474   : > { %v3999_v62 = vmax.f32 %v3997_v53, %v3998_v5  ;;  %v4005_v61 = vrot.slane %v4004_v41, 2  ;;  %v4012_v25 = vrot.slane %v4011_v23, 2  ;;  %v4018_v54 = vmax.f32 %v4016_v47, %v4017_v2 }
 0x475   : > { %v4024_v60 = vrot.slane %v4023_v1, 4  ;;  %v3293_v18 = vcombine.high %v3289_v16, %v3289_v16  ;;  %v3636_v58 = vrot.slane %v3629_v51, %v10465_v52  ;;  %v3643_v39 = vrot.slane %v3282_v56, %v10465_v52 }
 0x476   : > { %v4000_v27 = vrot.slane %v3999_v62, 1  ;;  %v4006_v30 = vmax.f32 %v4004_v41, %v4005_v61  ;;  %v4013_v48 = vmax.f32 %v4011_v23, %v4012_v25  ;;  %v4019_v3 = vrot.slane %v4018_v54, 2 }
 0x477   : > { %v4025_v9 = vmax.f32 %v4023_v1, %v4024_v60  ;;  %v3644_v44 = vcombine.low %v3636_v58, %v3643_v39  ;;  %v7456_v45 = vcombine.high %v3268_v15, %v3282_v56  ;;  %v3666_v57 = vrot.slane %v3275_v8, %v10465_v52 }
 0x478   : > { %v4001_v12 = vmax.f32 %v3999_v62, %v4000_v27  ;;  %v4007_v17 = vrot.slane %v4006_v30, 1  ;;  %v4014_v24 = vrot.slane %v4013_v48, 1  ;;  %v4020_v0 = vmax.f32 %v4018_v54, %v4019_v3 }
 0x479   : > { %v4026_v14 = vrot.slane %v4025_v9, 2  ;;  %v3651_v34 = vrot.slane %v3644_v44, %v10465_v52  ;;  %v3659_v37 = vrot.slane %v7456_v45, %v10465_v52  ;;  %v3675_v13 = vcombine.low %v3289_v16, %v3291_v59 }
 0x47a   : > { %v4008_v19 = vmax.f32 %v4006_v30, %v4007_v17  ;;  %v7701_v26 = vpack.c.bf16 %v4001_v12, %v4001_v12  ;;  %v4015_v53 = vmax.f32 %v4013_v48, %v4014_v24  ;;  %v4021_v4 = vrot.slane %v4020_v0, 1 }
 0x47b   : > { %v4027_v33 = vmax.f32 %v4025_v9, %v4026_v14  ;;  %v3667_v50 = vcombine.low %v3659_v37, %v3666_v57  ;;  %v3682_v15 = vrot.slane %v3675_v13, %v10465_v52  ;;  %v3689_v47 = vrot.slane %v3293_v18, %v10465_v52 }
 0x47c   : > { %v7702_v11 = vpack.c.bf16 %v4008_v19, %v4008_v19  ;;  %v4215_v8 = vunpack.c.l.b16 %v7701_v26  ;;  %v4022_v56 = vmax.f32 %v4020_v0, %v4021_v4  ;;  %v7703_v5 = vpack.c.bf16 %v4015_v53, %v4015_v53 }
 0x47d   : > { %v4028_v41 = vrot.slane %v4027_v33, 1  ;;  %v3674_v23 = vrot.slane %v3667_v50, %v10465_v52  ;;  %v3690_v2 = vcombine.low %v3682_v15, %v3689_v47  ;;  %v4030_v1 = vsel %vm3994_vm6, %v3651_v34, -inf }
 0x47e   : > { %v4216_v16 = vunpack.c.l.b16 %v7702_v11  ;;  %v7704_v59 = vpack.c.bf16 %v4022_v56, %v4022_v56  ;;  %v4217_v51 = vunpack.c.l.b16 %v7703_v5  ;;  %v4031_v62 = vrot.slane %v4030_v1, 4 }
 0x47f   : > { %v4029_v61 = vmax.f32 %v4027_v33, %v4028_v41  ;;  %v3697_v25 = vrot.slane %v3690_v2, %v10465_v52  ;;  %v4037_v54 = vsel %vm3994_vm6, %v3674_v23, -inf  ;;  %v3115_v60 = vmax.f32 %v10484_v42, 0.0 }
 0x480   : > { %v4236_v18 = vsel %vm4235_vm5, %v4216_v16, %v4215_v8  ;;  %v4218_v58 = vunpack.c.l.b16 %v7704_v59  ;;  %v4032_v39 = vmax.f32 %v4030_v1, %v4031_v62  ;;  %v4038_v27 = vrot.slane %v4037_v54, 4 }
 0x481   : > { %v7705_v30 = vpack.c.bf16 %v4029_v61, %v4029_v61  ;;  %v4238_v48 = vsel %vm4237_vm7, %v4217_v51, %v4236_v18  ;;  %v4044_v3 = vsel %vm3994_vm6, %v3697_v25, -inf  ;;  %v3134_v9 = vrot.slane %v3115_v60, 7 }
 0x482   : > { %v4240_v44 = vsel %vm1179_vm10, %v4218_v58, %v4238_v48  ;;  %v4033_v45 = vrot.slane %v4032_v39, 2  ;;  %v4039_v57 = vmax.f32 %v4037_v54, %v4038_v27  ;;  %v4045_v12 = vrot.slane %v4044_v3, 4 }
 0x483   : > { %v4219_v17 = vunpack.c.l.b16 %v7705_v30  ;;  %v3135_v42 = vsel %vm1176_vm8, %v10494_v29, %v3134_v9  ;;  %v7960_v24 = vadd.f32 %v10490_v40, %v10486_v10  ;;  %v7963_v0 = vadd.f32 %v10500_v55, %v10496_v31 }
 0x484   : > { %v4034_v14 = vmax.f32 %v4032_v39, %v4033_v45  ;;  %v4040_v34 = vrot.slane %v4039_v57, 2  ;;  %v4046_v37 = vmax.f32 %v4044_v3, %v4045_v12  ;;  %v3294_v13 = vcombine.high %v3135_v42, %v3135_v42 }
 0x485   : > { %v4242_v19 = vsel %vm4241_vm13, %v4219_v17, %v4240_v44  ;;  %v3301_v26 = vrot.slane %v3135_v42, %v10465_v52  ;;  %v3033_v53 = vadd.f32 %v7960_v24, %v10437_v22  ;;  %v3036_v4 = vadd.f32 %v7963_v0, %v10441_v21 }
 0x486   : > { %v4035_v29 = vrot.slane %v4034_v14, 1  ;;  %v4041_v33 = vmax.f32 %v4039_v57, %v4040_v34  ;;  %v4047_v50 = vrot.slane %v4046_v37, 2  ;;  %v3308_v10 = vrot.slane %v3294_v13, %v10465_v52  ;;  %v4265_v13 = vld [vmem:[#allocation2] sm:$0xf] }
 0x487   : > { %v3309_v40 = vcombine.high %v3301_v26, %v3301_v26  ;;  %v3317_v31 = vrot.slane %v3301_v26, %v10465_v52  ;;  %v3098_v55 = vadd.f32 %v10457_v35, %v3033_v53  ;;  %v3101_v15 = vadd.f32 %v10461_v7, %v3036_v4 }
 0x488   : > { %v4036_v47 = vmax.f32 %v4034_v14, %v4035_v29  ;;  %v4042_v11 = vrot.slane %v4041_v33, 1  ;;  %v4048_v8 = vmax.f32 %v4046_v37, %v4047_v50  ;;  %v3310_v56 = vcombine.high %v3308_v10, %v3308_v10 }
 0x489   : > { %v3324_v22 = vrot.slane %v3308_v10, %v10465_v52  ;;  %v3331_v21 = vrot.slane %v3309_v40, %v10465_v52  ;;  %v3339_v5 = vcombine.high %v3317_v31, %v3317_v31  ;;  %v3116_v41 = vmax.f32 %v3098_v55, 0.0 }
 0x48a   : > { %v4043_v23 = vmax.f32 %v4041_v33, %v4042_v11  ;;  %v4049_v2 = vrot.slane %v4048_v8, 1  ;;  %v7706_v1 = vpack.c.bf16 %v4036_v47, %v4036_v47  ;;  %v3338_v16 = vrot.slane %v3310_v56, %v10465_v52 }
 0x48b   : > { %v3341_v59 = vcombine.high %v3331_v21, %v3331_v21  ;;  %v3698_v51 = vcombine.low %v3317_v31, %v3331_v21  ;;  %v3712_v35 = vrot.slane %v3339_v5, %v10465_v52  ;;  %v3136_v7 = vrot.slane %v3116_v41, 7 }
 0x48c   : > { %v4050_v62 = vmax.f32 %v4048_v8, %v4049_v2  ;;  %v7707_v61 = vpack.c.bf16 %v4043_v23, %v4043_v23  ;;  %v4220_v25 = vunpack.c.l.b16 %v7706_v1  ;;  %v3735_v54 = vrot.slane %v3338_v16, %v10465_v52 }
 0x48d   : > { %v3705_v60 = vrot.slane %v3698_v51, %v10465_v52  ;;  %v3721_v18 = vcombine.low %v3341_v59, %v3324_v22  ;;  %v7457_v58 = vcombine.high %v3324_v22, %v3338_v16  ;;  %v3137_v39 = vsel %vm1176_vm8, %v3134_v9, %v3136_v7 }
 0x48e   : > { %v7708_v27 = vpack.c.bf16 %v4050_v62, %v4050_v62  ;;  %v4221_v30 = vunpack.c.l.b16 %v7707_v61  ;;  %v4244_v48 = vsel %vm11034_vm14, %v4220_v25, %v4242_v19  ;;  %v3343_v3 = vcombine.high %v3137_v39, %v3137_v39 }
 0x48f   : > { %v3713_v44 = vcombine.low %v3705_v60, %v3712_v35  ;;  %v3728_v45 = vrot.slane %v3721_v18, %v10465_v52  ;;  %v3350_v57 = vrot.slane %v3137_v39, %v10465_v52  ;;  %v3751_v12 = vrot.slane %v7457_v58, %v10465_v52 }
 0x490   : > { %v10582_v17 = vunpack.c.l.b16 %v7708_v27  ;;  %v4246_v42 = vsel %vm4245_vm2, %v4221_v30, %v4244_v48  ;;  %v3357_v24 = vrot.slane %v3343_v3, %v10465_v52  ;;  %v3117_v0 = vmax.f32 %v3101_v15, 0.0 }
 0x491   : > { %v4259_v9 = vpack.c.b16 %v4246_v42, %v4246_v42  ;;  %v3720_v14 = vrot.slane %v3713_v44, %v10465_v52  ;;  %v3736_v34 = vcombine.low %v3728_v45, %v3735_v54  ;;  %v3358_v37 = vcombine.high %v3350_v57, %v3350_v57 }
 0x492   : > { %v3359_v19 = vcombine.high %v3357_v24, %v3357_v24  ;;  %v3366_v26 = vrot.slane %v3350_v57, %v10465_v52  ;;  %v3373_v53 = vrot.slane %v3357_v24, %v10465_v52  ;;  %v10589_v4 = vrot.slane %v3117_v0, 7 }
 0x493   : > { %v4266_v29 = vsel %vm10002_vm3, %v4259_v9, %v4265_v13  ;;  %v3743_v33 = vrot.slane %v3736_v34, %v10465_v52  ;;  %v4051_v50 = vsel %vm3994_vm6, %v3720_v14, -inf  ;;  %v3380_v10 = vrot.slane %v3358_v37, %v10465_v52 }
 0x494   : > { %4267 = vst [vmem:[#allocation2] sm:$0xf] %v4266_v29  ;;  %v4052_v40 = vrot.slane %v4051_v50, 4  ;;  %v3387_v31 = vrot.slane %v3359_v19, %v10465_v52  ;;  %v3388_v55 = vcombine.high %v3366_v26, %v3366_v26  ;;  %v3389_v15 = vcombine.high %v3373_v53, %v3373_v53 }
 0x495   : > { %v4058_v47 = vsel %vm3994_vm6, %v3743_v33, -inf  ;;  %v3390_v11 = vcombine.high %v3380_v10, %v3380_v10  ;;  %v3758_v8 = vrot.slane %v3366_v26, %v10465_v52  ;;  %v3139_v32 = vsel %vm1176_vm8, %v3136_v7, %v10589_v4 }
 0x496   : > { %v4053_v56 = vmax.f32 %v4051_v50, %v4052_v40  ;;  %v4059_v22 = vrot.slane %v4058_v47, 4  ;;  %v3767_v21 = vcombine.low %v3380_v10, %v3388_v55  ;;  %v3790_v5 = vcombine.low %v3373_v53, %v3387_v31 }
 0x497   : > { %v3759_v41 = vcombine.low %v3751_v12, %v3758_v8  ;;  %v3781_v23 = vrot.slane %v3390_v11, %v10465_v52  ;;  %v3804_v2 = vrot.slane %v3389_v15, %v10465_v52  ;;  %v3391_v1 = vcombine.high %v3387_v31, %v3387_v31 }
 0x498   : > { %v4054_v16 = vrot.slane %v4053_v56, 2  ;;  %v4060_v59 = vmax.f32 %v4058_v47, %v4059_v22  ;;  %v3774_v51 = vrot.slane %v3767_v21, %v10465_v52  ;;  %v3797_v35 = vrot.slane %v3790_v5, %v10465_v52 }
 0x499   : > { %vm4247_vm3 = vcmask 1041409   ;;  %v3766_v62 = vrot.slane %v3759_v41, %v10465_v52  ;;  %v3392_v7 = vcombine.high %v3139_v32, %v3139_v32  ;;  %v3399_v61 = vrot.slane %v3139_v32, %v10465_v52 }
 0x49a   : > { %v7966_v25 = vadd.f32 %v10519_v38, %v10515_v49  ;;  %v4055_v54 = vmax.f32 %v4053_v56, %v4054_v16  ;;  %v4061_v60 = vrot.slane %v4060_v59, 2  ;;  %v3782_v18 = vcombine.low %v3774_v51, %v3781_v23 }
 0x49b   : > { %v3805_v58 = vcombine.low %v3797_v35, %v3804_v2  ;;  %v4065_v39 = vsel %vm3994_vm6, %v3766_v62, -inf  ;;  %v3406_v27 = vrot.slane %v3392_v7, %v10465_v52  ;;  %v3407_v30 = vcombine.high %v3399_v61, %v3399_v61 }
 0x49c   : > { %v3415_v48 = vrot.slane %v3399_v61, %v10465_v52  ;;  %v4056_v3 = vrot.slane %v4055_v54, 1  ;;  %v4062_v44 = vmax.f32 %v4060_v59, %v4061_v60  ;;  %v3789_v45 = vrot.slane %v3782_v18, %v10465_v52 }
 0x49d   : > { %v3812_v57 = vrot.slane %v3805_v58, %v10465_v52  ;;  %v4066_v12 = vrot.slane %v4065_v39, 4  ;;  %v3408_v42 = vcombine.high %v3406_v27, %v3406_v27  ;;  %v3422_v49 = vrot.slane %v3406_v27, %v10465_v52 }
 0x49e   : > { %v3429_v38 = vrot.slane %v3407_v30, %v10465_v52  ;;  %v4057_v24 = vmax.f32 %v4055_v54, %v4056_v3  ;;  %v4063_v0 = vrot.slane %v4062_v44, 1  ;;  %v4072_v9 = vsel %vm3994_vm6, %v3789_v45, -inf }
 0x49f   : > { %v4079_v14 = vsel %vm3994_vm6, %v3812_v57, -inf  ;;  %v4067_v34 = vmax.f32 %v4065_v39, %v4066_v12  ;;  %v4073_v37 = vrot.slane %v4072_v9, 4  ;;  %v3436_v19 = vrot.slane %v3408_v42, %v10465_v52 }
 0x4a0   : > { %v4080_v13 = vrot.slane %v4079_v14, 4  ;;  %v4064_v26 = vmax.f32 %v4062_v44, %v4063_v0  ;;  %v7709_v53 = vpack.c.bf16 %v4057_v24, %v4057_v24  ;;  %v3438_v29 = vcombine.high %v3422_v49, %v3422_v49 }
 0x4a1   : > { %v3813_v33 = vcombine.low %v3391_v1, %v3415_v48  ;;  %v4068_v50 = vrot.slane %v4067_v34, 2  ;;  %v4074_v10 = vmax.f32 %v4072_v9, %v4073_v37  ;;  %v3440_v31 = vcombine.high %v3436_v19, %v3436_v19 }
 0x4a2   : > { %v4081_v40 = vmax.f32 %v4079_v14, %v4080_v13  ;;  %v7710_v55 = vpack.c.bf16 %v4064_v26, %v4064_v26  ;;  %v4223_v15 = vunpack.c.l.b16 %v7709_v53  ;;  %v3827_v11 = vrot.slane %v3429_v38, %v10465_v52 }
 0x4a3   : > { %v3820_v47 = vrot.slane %v3813_v33, %v10465_v52  ;;  %v4069_v8 = vmax.f32 %v4067_v34, %v4068_v50  ;;  %v4075_v32 = vrot.slane %v4074_v10, 2  ;;  %v7458_v22 = vcombine.high %v3415_v48, %v3429_v38 }
 0x4a4   : > { %v4082_v56 = vrot.slane %v4081_v40, 2  ;;  %v4224_v21 = vunpack.c.l.b16 %v7710_v55  ;;  %v4248_v5 = vsel %vm4247_vm3, %v4223_v15, %v10582_v17  ;;  %v3850_v23 = vrot.slane %v3422_v49, %v10465_v52 }
 0x4a5   : > { %v3828_v41 = vcombine.low %v3820_v47, %v3827_v11  ;;  %v4070_v2 = vrot.slane %v4069_v8, 1  ;;  %v4076_v1 = vmax.f32 %v4074_v10, %v4075_v32  ;;  %v3843_v59 = vrot.slane %v7458_v22, %v10465_v52 }
 0x4a6   : > { %v4083_v16 = vmax.f32 %v4081_v40, %v4082_v56  ;;  %v4249_v51 = vsel %vm4235_vm5, %v4224_v21, %v4248_v5  ;;  %v3859_v62 = vcombine.low %v3436_v19, %v3438_v29  ;;  %v3873_v7 = vrot.slane %v3440_v31, %v10465_v52 }
 0x4a7   : > { %v3835_v35 = vrot.slane %v3828_v41, %v10465_v52  ;;  %v4071_v61 = vmax.f32 %v4069_v8, %v4070_v2  ;;  %v4077_v54 = vrot.slane %v4076_v1, 1  ;;  %v3851_v18 = vcombine.low %v3843_v59, %v3850_v23 }
 0x4a8   : > { %v4084_v60 = vrot.slane %v4083_v16, 1  ;;  %v3866_v17 = vrot.slane %v3859_v62, %v10465_v52  ;;  %v3041_v39 = vadd.f32 %v7966_v25, %v10447_v36  ;;  %v7969_v27 = vadd.f32 %v10528_v20, %v10523_v28 }
 0x4a9   : > { %v4086_v58 = vsel %vm3994_vm6, %v3835_v35, -inf  ;;  %v4078_v30 = vmax.f32 %v4076_v1, %v4077_v54  ;;  %v7711_v3 = vpack.c.bf16 %v4071_v61, %v4071_v61  ;;  %v3858_v44 = vrot.slane %v3851_v18, %v10465_v52 }
 0x4aa   : > { %v4085_v48 = vmax.f32 %v4083_v16, %v4084_v60  ;;  %v3874_v45 = vcombine.low %v3866_v17, %v3873_v7  ;;  %v4087_v57 = vrot.slane %v4086_v58, 4  ;;  %v3106_v12 = vadd.f32 %v10472_v46, %v3041_v39 }
 0x4ab   : > { %v3044_v42 = vadd.f32 %v7969_v27, %v10451_v63  ;;  %v7712_v49 = vpack.c.bf16 %v4078_v30, %v4078_v30  ;;  %v4225_v24 = vunpack.c.l.b16 %v7711_v3  ;;  %v4093_v0 = vsel %vm3994_vm6, %v3858_v44, -inf }
 0x4ac   : > { %v7713_v38 = vpack.c.bf16 %v4085_v48, %v4085_v48  ;;  %v3881_v36 = vrot.slane %v3874_v45, %v10465_v52  ;;  %v4088_v25 = vmax.f32 %v4086_v58, %v4087_v57  ;;  %v4094_v28 = vrot.slane %v4093_v0, 4 }
 0x4ad   : > { %v3118_v20 = vmax.f32 %v3106_v12, 0.0  ;;  %v4226_v9 = vunpack.c.l.b16 %v7712_v49  ;;  %v4250_v34 = vsel %vm4237_vm7, %v4225_v24, %v4249_v51  ;;  %v3109_v37 = vadd.f32 %v10481_v43, %v3044_v42 }
 0x4ae   : > { %v4227_v14 = vunpack.c.l.b16 %v7713_v38  ;;  %v4089_v13 = vrot.slane %v4088_v25, 2  ;;  %v4095_v46 = vmax.f32 %v4093_v0, %v4094_v28  ;;  %v4100_v63 = vsel %vm3994_vm6, %v3881_v36, -inf }
 0x4af   : > { %v3140_v19 = vrot.slane %v3118_v20, 7  ;;  %v4251_v26 = vsel %vm1179_vm10, %v4226_v9, %v4250_v34  ;;  %v3119_v53 = vmax.f32 %v3109_v37, 0.0  ;;  %v9457_v40 = vmov 0.0  }
 0x4b0   : > { %v4252_v29 = vsel %vm4241_vm13, %v4227_v14, %v4251_v26  ;;  %v4090_v33 = vmax.f32 %v4088_v25, %v4089_v13  ;;  %v4096_v50 = vrot.slane %v4095_v46, 2  ;;  %8236 = vmatprep.subr.bf16.mxu0 %v9457_v40  ;;  %v4101_v31 = vrot.slane %v4100_v63, 4 }
 0x4b1   : > { %v3141_v10 = vsel %vm1176_vm8, %v10589_v4, %v3140_v19  ;;  %v3142_v15 = vrot.slane %v3119_v53, 7 }
 0x4b2   : > { %v3441_v43 = vcombine.high %v3141_v10, %v3141_v10  ;;  %v3448_v55 = vrot.slane %v3141_v10, %v10465_v52  ;;  %v4091_v47 = vrot.slane %v4090_v33, 1  ;;  %v4097_v11 = vmax.f32 %v4095_v46, %v4096_v50 }
 0x4b3   : > { %v3143_v5 = vsel %vm1176_vm8, %v3140_v19, %v3142_v15  ;;  %v4102_v4 = vmax.f32 %v4100_v63, %v4101_v31 }
 0x4b4   : > { %v3455_v8 = vrot.slane %v3441_v43, %v10465_v52  ;;  %v3456_v32 = vcombine.high %v3448_v55, %v3448_v55  ;;  %v3464_v56 = vrot.slane %v3448_v55, %v10465_v52  ;;  %v4092_v22 = vmax.f32 %v4090_v33, %v4091_v47 }
 0x4b5   : > { %v4098_v21 = vrot.slane %v4097_v11, 1  ;;  %v3496_v59 = vrot.slane %v3143_v5, %v10465_v52  ;;  %v4103_v18 = vrot.slane %v4102_v4, 2 }
 0x4b6   : > { %v3457_v41 = vcombine.high %v3455_v8, %v3455_v8  ;;  %v3478_v23 = vrot.slane %v3456_v32, %v10465_v52  ;;  %v7714_v1 = vpack.c.bf16 %v4092_v22, %v4092_v22  ;;  %v3486_v16 = vcombine.high %v3464_v56, %v3464_v56 }
 0x4b7   : > { %v4099_v2 = vmax.f32 %v4097_v11, %v4098_v21  ;;  %v3471_v51 = vrot.slane %v3455_v8, %v10465_v52  ;;  %v3497_v60 = vcombine.high %v3496_v59, %v3496_v59  ;;  %v3504_v3 = vrot.slane %v3496_v59, %v10465_v52 }
 0x4b8   : > { %v3485_v35 = vrot.slane %v3457_v41, %v10465_v52  ;;  %v3488_v62 = vcombine.high %v3478_v23, %v3478_v23  ;;  %v3882_v7 = vcombine.low %v3464_v56, %v3478_v23  ;;  %v4228_v54 = vunpack.c.l.b16 %v7714_v1 }
 0x4b9   : > { %v7715_v61 = vpack.c.bf16 %v4099_v2, %v4099_v2  ;;  %v3896_v58 = vrot.slane %v3486_v16, %v10465_v52  ;;  %v3511_v12 = vrot.slane %v3497_v60, %v10465_v52  ;;  %v3512_v49 = vcombine.high %v3504_v3, %v3504_v3 }
 0x4ba   : > { %v3889_v17 = vrot.slane %v3882_v7, %v10465_v52  ;;  %v3905_v39 = vcombine.low %v3488_v62, %v3471_v51  ;;  %v4253_v30 = vsel %vm11034_vm14, %v4228_v54, %v4252_v29  ;;  %v7459_v48 = vcombine.high %v3471_v51, %v3485_v35 }
 0x4bb   : > { %v4229_v27 = vunpack.c.l.b16 %v7715_v61  ;;  %v3919_v57 = vrot.slane %v3485_v35, %v10465_v52  ;;  %v3942_v24 = vrot.slane %v3504_v3, %v10465_v52  ;;  %v4104_v0 = vmax.f32 %v4102_v4, %v4103_v18 }
 0x4bc   : > { %v3897_v44 = vcombine.low %v3889_v17, %v3896_v58  ;;  %v3912_v45 = vrot.slane %v3905_v39, %v10465_v52  ;;  %v3935_v38 = vrot.slane %v7459_v48, %v10465_v52  ;;  %v3513_v20 = vcombine.high %v3511_v12, %v3511_v12 }
 0x4bd   : > { %v4254_v42 = vsel %vm4245_vm2, %v4229_v27, %v4253_v30  ;;  %v3951_v14 = vcombine.low %v3511_v12, %v3512_v49  ;;  %v4105_v26 = vrot.slane %v4104_v0, 1  ;;  %vm4270_vm2 = vsmask.f32 2304 }
 0x4be   : > { %v4260_v36 = vpack.c.b16 %v4254_v42, %v4254_v42  ;;  %v3904_v25 = vrot.slane %v3897_v44, %v10465_v52  ;;  %v3920_v28 = vcombine.low %v3912_v45, %v3919_v57  ;;  %v3943_v9 = vcombine.low %v3935_v38, %v3942_v24  ;;  %vm4271_vm14 = vmand %vm3994_vm6, %vm4270_vm2  ;;  %v4272_v38 = vld [vmem:[#allocation2 + $0x10] sm:$0x7]  ;;  %v4281_v24 = vld [vmem:[#allocation2] sm:$0xf] }
 0x4bf   : > { %v3958_v63 = vrot.slane %v3951_v14, %v10465_v52  ;;  %v3965_v19 = vrot.slane %v3513_v20, %v10465_v52  ;;  %v4106_v11 = vmax.f32 %v4104_v0, %v4105_v26 }
 0x4c0   : > { %4268 = vst [vmem:[#allocation2 + $0x8] sm:$0xf] %v4260_v36  ;;  %v3927_v34 = vrot.slane %v3920_v28, %v10465_v52  ;;  %v4107_v37 = vsel %vm3994_vm6, %v3904_v25, -inf  ;;  %v3950_v46 = vrot.slane %v3943_v9, %v10465_v52  ;;  %v4284_v25 = vld [vmem:[#allocation2] sm:$0xe] }
 0x4c1   : > { %v4108_v13 = vrot.slane %v4107_v37, 4  ;;  %v3966_v50 = vcombine.low %v3958_v63, %v3965_v19  ;;  %v7716_v2 = vpack.c.bf16 %v4106_v11, %v4106_v11 }
 0x4c2   : > { %v4114_v53 = vsel %vm3994_vm6, %v3927_v34, -inf  ;;  %v4121_v10 = vsel %vm3994_vm6, %v3950_v46, -inf }
 0x4c3   : > { %v4109_v29 = vmax.f32 %v4107_v37, %v4108_v13  ;;  %v4115_v33 = vrot.slane %v4114_v53, 4  ;;  %v4122_v31 = vrot.slane %v4121_v10, 4  ;;  %v3973_v15 = vrot.slane %v3966_v50, %v10465_v52 }
 0x4c4   : > { %v4230_v54 = vunpack.c.l.b16 %v7716_v2 }
 0x4c5   : > { %v4110_v43 = vrot.slane %v4109_v29, 2  ;;  %v4116_v55 = vmax.f32 %v4114_v53, %v4115_v33  ;;  %v4123_v47 = vmax.f32 %v4121_v10, %v4122_v31  ;;  %v4128_v56 = vsel %vm3994_vm6, %v3973_v15, -inf }
 0x4c6   : > { %v4129_v21 = vrot.slane %v4128_v56, 4 }
 0x4c7   : > { %v4111_v8 = vmax.f32 %v4109_v29, %v4110_v43  ;;  %v4117_v32 = vrot.slane %v4116_v55, 2  ;;  %v4124_v22 = vrot.slane %v4123_v47, 2  ;;  %v10679_v42 = vld [vmem:[#allocation2 + $0x8] sm:$0xf]  ;;  %v4286_v43 = vld [vmem:[#allocation2] sm:$0xc] }
 0x4c8   : > { %v4130_v23 = vmax.f32 %v4128_v56, %v4129_v21  ;;  %v7480_v36 = vcombine.low %v4281_v24, %v10679_v42  ;;  %v7482_v28 = vcombine.low %v4284_v25, %v10679_v42  ;;  %v10689_v11 = vcombine.low %v4286_v43, %v10679_v42  ;;  %v8792_v56 = vld [vmem:[#allocation8 + $0x148] sm:$0xff]   ;;  %v8809_v24 = vld [vmem:[#allocation8 + $0x170] sm:$0xff]   ;;  %v8812_v25 = vld [vmem:[#allocation8 + $0x178] sm:$0xff]  }
 0x4c9   : > { %v4112_v5 = vrot.slane %v4111_v8, 1  ;;  %v4118_v4 = vmax.f32 %v4116_v55, %v4117_v32  ;;  %v4125_v41 = vmax.f32 %v4123_v47, %v4124_v22  ;;  %v8788_v55 = vld [vmem:[#allocation8 + $0x100] sm:$0xff]   ;;  %v8823_v43 = vld [vmem:[#allocation11 + $0x50] sm:$0xff]  }
 0x4ca   : > { %v4131_v51 = vrot.slane %v4130_v23, 2  ;;  %v4301_v20 = vshll.u32 %v7480_v36, 16  ;;  %v4322_v9 = vshrl.u32 %v7482_v28, 16  ;;  %v4325_v14 = vshll.u32 %v7482_v28, 16 }
 0x4cb   : > { %v4113_v1 = vmax.f32 %v4111_v8, %v4112_v5  ;;  %v4119_v16 = vrot.slane %v4118_v4, 1  ;;  %v4126_v59 = vrot.slane %v4125_v41, 1  ;;  %v4299_v13 = vshrl.u32 %v7480_v36, 16 }
 0x4cc   : > { %v4132_v61 = vmax.f32 %v4130_v23, %v4131_v51  ;;  %v4303_v37 = vrot.slane %v4301_v20, 1  ;;  %v4324_v19 = vrot.slane %v4322_v9, 1  ;;  %v4327_v53 = vrot.slane %v4325_v14, 2  ;;  %v8793_v23 = vld [vmem:[#allocation8 + $0x108] sm:$0xff]   ;;  %v8813_v20 = vld [vmem:[#allocation8 + $0x138] sm:$0xff]  }
 0x4cd   : > { %v4120_v35 = vmax.f32 %v4118_v4, %v4119_v16  ;;  %v7717_v62 = vpack.c.bf16 %v4113_v1, %v4113_v1  ;;  %v4127_v7 = vmax.f32 %v4125_v41, %v4126_v59  ;;  %v4314_v5 = vrot.slane %v7482_v28, 1  ;;  %v8791_v4 = vld [vmem:[#allocation8 + $0x180] sm:$0xff]   ;;  %v8795_v59 = vld [vmem:[#allocation8 + $0x150] sm:$0xff]   ;;  %v4288_v14 = vld [vmem:[#allocation2] sm:$0x8] }
 0x4ce   : > { %v4133_v17 = vrot.slane %v4132_v61, 1  ;;  %v4304_v10 = vor.u32 %v4303_v37, %v4299_v13  ;;  %v4328_v22 = vor.u32 %v4327_v53, %v4324_v19  ;;  %v4350_v2 = vshrl.u32 %v10689_v11, 16  ;;  %v8811_v28 = vld [vmem:[#allocation8 + $0x1b0] sm:$0xff]   ;;  %v8817_v53 = vld [vmem:[#allocation11 + $0x40] sm:$0xff]  }
 0x4cf   : > { %v7718_v60 = vpack.c.bf16 %v4120_v35, %v4120_v35  ;;  %v4231_v18 = vunpack.c.l.b16 %v7717_v62  ;;  %v7719_v58 = vpack.c.bf16 %v4127_v7, %v4127_v7  ;;  %v4353_v1 = vshll.u32 %v10689_v11, 16  ;;  %v8794_v35 = vld [vmem:[#allocation8 + $0x188] sm:$0xff]   ;;  %v8796_v62 = vld [vmem:[#allocation8 + $0x110] sm:$0xff]  }
 0x4d0   : > { %v4134_v30 = vmax.f32 %v4132_v61, %v4133_v17  ;;  %v4352_v7 = vrot.slane %v4350_v2, 2  ;;  %v7486_v37 = vcombine.low %v4288_v14, %v10679_v42  ;;  %v4342_v13 = vrot.slane %v10689_v11, 2  ;;  %v8816_v42 = vld [vmem:[#allocation11 + $0x80] sm:$0xff]   ;;  %v8837_v2 = vld [vmem:[#allocation11 + $0x30] sm:$0xff]  }
 0x4d1   : > { %v4232_v39 = vunpack.c.l.b16 %v7718_v60  ;;  %v4255_v27 = vsel %vm4247_vm3, %v4231_v18, %v4230_v54  ;;  %v4233_v48 = vunpack.c.l.b16 %v7719_v58  ;;  %vm4276_vm3 = vsmask.f32 7946  ;;  %v8800_v18 = vld [vmem:[#allocation8 + $0x158] sm:$0xff]   ;;  %v8827_v11 = vld [vmem:[#allocation11 + $0xa0] sm:$0xff]  }
 0x4d2   : > { %v7720_v44 = vpack.c.bf16 %v4134_v30, %v4134_v30  ;;  %vm4277_vm15 = vmand %vm4235_vm5, %vm4276_vm3  ;;  %v4355_v61 = vrot.slane %v4353_v1, 3  ;;  %v8841_v1 = vld [vmem:[#allocation11 + $0x78] sm:$0xff]  }
 0x4d3   : > { %v4256_v3 = vsel %vm4235_vm5, %v4232_v39, %v4255_v27  ;;  %v8799_v39 = vld [vmem:[#allocation8 + $0x190] sm:$0xff]  }
 0x4d4   : > { %v4257_v45 = vsel %vm4237_vm7, %v4233_v48, %v4256_v3  ;;  %v4234_v57 = vunpack.c.l.b16 %v7720_v44  ;;  %v4356_v27 = vor.u32 %v4355_v61, %v4352_v7  ;;  %v8801_v48 = vld [vmem:[#allocation8 + $0x118] sm:$0xff]   ;;  %v8803_v3 = vld [vmem:[#allocation8 + $0x160] sm:$0xff]  }
 0x4d6   : > { %v4258_v12 = vsel %vm1179_vm10, %v4234_v57, %v4257_v45  ;;  %v8802_v45 = vld [vmem:[#allocation8 + $0x198] sm:$0xff]   ;;  %v8804_v57 = vld [vmem:[#allocation8 + $0x120] sm:$0xff]  }
 0x4d7   : > { %v4261_v49 = vpack.c.b16 %v4258_v12, %v4258_v12  ;;  %v8806_v12 = vld [vmem:[#allocation8 + $0x168] sm:$0xff]  }
 0x4d9   : > { %v4273_v0 = vsel %vm4271_vm14, %v4261_v49, %v4272_v38  ;;  %v8805_v49 = vld [vmem:[#allocation8 + $0x1a0] sm:$0xff]   ;;  %v8807_v38 = vld [vmem:[#allocation8 + $0x128] sm:$0xff]  }
 0x4da   : > { %4274 = vst [vmem:[#allocation2 + $0x10] sm:$0x7] %v4273_v0  ;;  %v8808_v0 = vld [vmem:[#allocation8 + $0x1a8] sm:$0xff]  }
 0x4e1   : > { %v8786_v34 = vld [vmem:[#allocation2 + $0x10] ss:$0 sps:$4 sm:$0x11]   ;;  %v4278_v26 = vld [vmem:[#allocation2 + $0x10] sm:$0x4] }
 0x4e2   : > { %v10684_v46 = vld [vmem:[#allocation2 + $0x10] ss:$0 sps:$4 sm:$0x33]   ;;  %v4306_v63 = vshll.u32 %v8786_v34, 16  ;;  %v4279_v50 = vsel %vm4277_vm15, 0, %v4278_v26  ;;  %v4315_v32 = vrot.slane %v8786_v34, 1 }
 0x4e3   : > { %v4330_v29 = vshrl.u32 %v10684_v46, 16  ;;  %v4333_v33 = vshll.u32 %v10684_v46, 16  ;;  %4280 = vst [vmem:[#allocation2 + $0x10] sm:$0x4] %v4279_v50  ;;  %vm9458_vm15 = vmmov 0   ;;  %v4343_v9 = vrot.slane %v10684_v46, 2 }
 0x4e4   : > { %v4308_v31 = vrot.slane %v4306_v63, 1  ;;  %v4316_v16 = vsel %vm1519_vm9, %v4314_v5, %v4315_v32  ;;  %v10696_v51 = vld [vmem:[#allocation2 + $0x10] ss:$0 sps:$4 sm:$0x77]   ;;  %v8814_v34 = vld [vmem:[#allocation8 + $0x1b8] sm:$0xff]   ;;  %v4370_v26 = vrot.slane %v7486_v37, 3 }
 0x4e5   : > { %v4332_v15 = vrot.slane %v4330_v29, 1  ;;  %v4335_v47 = vrot.slane %v4333_v33, 2  ;;  %v4358_v54 = vshrl.u32 %v10696_v51, 16  ;;  %v4361_v60 = vshll.u32 %v10696_v51, 16  ;;  %v8818_v29 = vld [vmem:[#allocation11 + $0x88] sm:$0xff]   ;;  %v8819_v33 = vld [vmem:[#allocation11] sm:$0xff]  }
 0x4e6   : > { %v4309_v8 = vsel %vm1433_vm11, %v4304_v10, %v4308_v31  ;;  %v4371_v63 = vrot.slane %v10696_v51, 3  ;;  %v4344_v19 = vsel %vm1623_vm1, %v4342_v13, %v4343_v9  ;;  %v8820_v50 = vld [vmem:[#allocation11 + $0x48] sm:$0xff]   ;;  %v8821_v10 = vld [vmem:[#allocation11 + $0x90] sm:$0xff]   ;;  %v8829_v32 = vld [vmem:[#allocation11 + $0x60] sm:$0xff]   ;;  %vm11107_vm1 = vcmask 1043456  }
 0x4e7   : > { %4861 = vmatprep.mubr.bf16.mxu1 %v4309_v8  ;;  %v4336_v21 = vor.u32 %v4335_v47, %v4332_v15  ;;  %v4360_v17 = vrot.slane %v4358_v54, 2  ;;  %v4363_v58 = vrot.slane %v4361_v60, 3  ;;  %v8822_v31 = vld [vmem:[#allocation11 + $0x8] sm:$0xff]   ;;  %v8825_v15 = vld [vmem:[#allocation11 + $0x10] sm:$0xff]   ;;  %v8826_v47 = vld [vmem:[#allocation11 + $0x58] sm:$0xff]  }
 0x4e8   : > { %4862 = vmatmul.mubr.bf16.vlgmr.msra.gmra.mrb[64].mxu1 %v7480_v36  ;;  %v8810_v36 = vld [vmem:[#allocation8 + $0x130] sm:$0xff]   ;;  %v4372_v46 = vsel %vm1727_vm0, %v4370_v26, %v4371_v63  ;;  %v8828_v8 = vld [vmem:[#allocation11 + $0x18] sm:$0xff]   ;;  %vm11110_vm0 = vcmask 1046534  }
 0x4e9   : > { %8055 = vmatpush3.bf16.msra.mxu1 %v8788_v55  ;;  %v4337_v41 = vsel %vm1551_vm12, %v4328_v22, %v4336_v21  ;;  %v4364_v30 = vor.u32 %v4363_v58, %v4360_v17  ;;  %v8824_v55 = vld [vmem:[#allocation11 + $0x98] sm:$0xff]   ;;  %v8831_v22 = vld [vmem:[#allocation11 + $0x20] sm:$0xff]   ;;  %v8832_v21 = vld [vmem:[#allocation11 + $0x68] sm:$0xff]  }
 0x4ea   : > { %4902 = vmatprep.mubr.bf16.mxu0 %v4337_v41  ;;  %8056 = vmatprep.subr.bf16.mxu1 %v8792_v56  ;;  %v8830_v56 = vld [vmem:[#allocation11 + $0xa8] sm:$0xff]   ;;  %v8833_v5 = vld [vmem:[#allocation11 + $0xb0] sm:$0xff]   ;;  %v7487_v51 = vld [vmem:[#allocation9] ss:$0 sm:$0xff] }
 0x4eb   : > { %4903 = vmatmul.mubr.bf16.vlgmr.msra.gmra.mrb[64].mxu0 %v4316_v16  ;;  %v4365_v44 = vsel %vm1655_vm4, %v4356_v27, %v4364_v30  ;;  %v8835_v41 = vld [vmem:[#allocation11 + $0x70] sm:$0xff]   ;;  %v8842_v16 = vld [vmem:[#allocation11 + $0x38] sm:$0xff]   ;;  %vm5355_vm4 = vsmask.f32 7950 }
 0x4ec   : > { %8237 = vmatpush3.bf16.msra.mxu0 %v8791_v4  ;;  %8252 = vmatprep.mubr.msk.bf16.mxu0 %vm9458_vm15, %v9457_v40  ;;  %v8834_v4 = vld [vmem:[#allocation11 + $0x28] sm:$0xff]  }
 0x4ed   : > { %8057 = vmatpush3.bf16.msra.mxu1 %v8793_v23  ;;  %8238 = vmatprep.subr.bf16.mxu0 %v9457_v40  ;;  %v8836_v23 = vld [vmem:[#allocation11 + $0xb8] sm:$0xff]  }
 0x4ee   : > { %8058 = vmatprep.subr.bf16.mxu1 %v8795_v59  ;;  %4943 = vmatprep.mubr.bf16.mxu1 %v4365_v44 }
 0x4f0   : > { %8239 = vmatpush3.bf16.msra.mxu0 %v8794_v35 }
 0x4f1   : > { %8059 = vmatpush3.bf16.msra.mxu1 %v8796_v62  ;;  %8240 = vmatprep.subr.bf16.mxu0 %v9457_v40 }
 0x4f2   : > { %8060 = vmatprep.subr.bf16.mxu1 %v8800_v18 }
 0x4f4   : > { %8241 = vmatpush3.bf16.msra.mxu0 %v8799_v39 }
 0x4f5   : > { %8061 = vmatpush3.bf16.msra.mxu1 %v8801_v48  ;;  %8242 = vmatprep.subr.bf16.mxu0 %v9457_v40 }
 0x4f6   : > { %8062 = vmatprep.subr.bf16.mxu1 %v8803_v3 }
 0x4f8   : > { %8243 = vmatpush3.bf16.msra.mxu0 %v8802_v45 }
 0x4f9   : > { %8063 = vmatpush3.bf16.msra.mxu1 %v8804_v57  ;;  %8244 = vmatprep.subr.bf16.mxu0 %v9457_v40 }
 0x4fa   : > { %8064 = vmatprep.subr.bf16.mxu1 %v8806_v12 }
 0x4fc   : > { %8245 = vmatpush3.bf16.msra.mxu0 %v8805_v49 }
 0x4fd   : > { %8065 = vmatpush3.bf16.msra.mxu1 %v8807_v38  ;;  %8246 = vmatprep.subr.bf16.mxu0 %v9457_v40 }
 0x4fe   : > { %8066 = vmatprep.subr.bf16.mxu1 %v8809_v24 }
 0x500   : > { %8247 = vmatpush3.bf16.msra.mxu0 %v8808_v0 }
 0x501   : > { %8067 = vmatpush3.bf16.msra.mxu1 %v8810_v36  ;;  %8248 = vmatprep.subr.bf16.mxu0 %v9457_v40 }
 0x502   : > { %8068 = vmatprep.subr.bf16.mxu1 %v8812_v25 }
 0x504   : > { %8249 = vmatpush3.bf16.msra.mxu0 %v8811_v28 }
 0x505   : > { %8069 = vmatpush3.bf16.msra.mxu1 %v8813_v20  ;;  %8250 = vmatprep.subr.bf16.mxu0 %v9457_v40 }
 0x506   : > { %8085 = vmatprep.subr.bf16.mxu1 %v8817_v53 }
 0x508   : > { %8251 = vmatpush3.bf16.msra.mxu0 %v8814_v34  ;;  %4944 = vmatmul.mubr.bf16.vlgmr.msra.gmra.mrb[68].mxu1 %v4344_v19 }
 0x509   : > { %8256 = vmatprep.subr.bf16.mxu0 %v9457_v40  ;;  %8086 = vmatpush3.bf16.msra.mxu1 %v8819_v33 }
 0x50a   : > { %8087 = vmatprep.subr.bf16.mxu1 %v8820_v50 }
 0x50b   : > { %8253 = vmatmul.mubr.bf16.vlgmr.msra.gmra.mrb[68].mxu0 %v4372_v46 }
 0x50c   : > { %8272 = vmatprep.mubr.msk.bf16.mxu0 %vm9458_vm15, %v9457_v40  ;;  %8257 = vmatpush3.bf16.msra.mxu0 %v8816_v42 }
 0x50d   : > { %8258 = vmatprep.subr.bf16.mxu0 %v9457_v40  ;;  %8088 = vmatpush3.bf16.msra.mxu1 %v8822_v31 }
 0x50e   : > { %8089 = vmatprep.subr.bf16.mxu1 %v8823_v43 }
 0x510   : > { %8259 = vmatpush3.bf16.msra.mxu0 %v8818_v29 }
 0x511   : > { %8260 = vmatprep.subr.bf16.mxu0 %v9457_v40  ;;  %8090 = vmatpush3.bf16.msra.mxu1 %v8825_v15 }
 0x512   : > { %8091 = vmatprep.subr.bf16.mxu1 %v8826_v47 }
 0x514   : > { %8261 = vmatpush3.bf16.msra.mxu0 %v8821_v10 }
 0x515   : > { %8262 = vmatprep.subr.bf16.mxu0 %v9457_v40  ;;  %8092 = vmatpush3.bf16.msra.mxu1 %v8828_v8 }
 0x516   : > { %8093 = vmatprep.subr.bf16.mxu1 %v8829_v32 }
 0x518   : > { %8263 = vmatpush3.bf16.msra.mxu0 %v8824_v55 }
 0x519   : > { %8264 = vmatprep.subr.bf16.mxu0 %v9457_v40  ;;  %8094 = vmatpush3.bf16.msra.mxu1 %v8831_v22 }
 0x51a   : > { %8095 = vmatprep.subr.bf16.mxu1 %v8832_v21 }
 0x51c   : > { %8265 = vmatpush3.bf16.msra.mxu0 %v8827_v11 }
 0x51d   : > { %8266 = vmatprep.subr.bf16.mxu0 %v9457_v40  ;;  %8096 = vmatpush3.bf16.msra.mxu1 %v8834_v4 }
 0x51e   : > { %8097 = vmatprep.subr.bf16.mxu1 %v8835_v41 }
 0x520   : > { %8267 = vmatpush3.bf16.msra.mxu0 %v8830_v56 }
 0x521   : > { %8268 = vmatprep.subr.bf16.mxu0 %v9457_v40  ;;  %8098 = vmatpush3.bf16.msra.mxu1 %v8837_v2 }
 0x522   : > { %8099 = vmatprep.subr.bf16.mxu1 %v8841_v1 }
 0x524   : > { %8269 = vmatpush3.bf16.msra.mxu0 %v8833_v5 }
 0x525   : > { %8270 = vmatprep.subr.bf16.mxu0 %v9457_v40  ;;  %8100 = vmatpush3.bf16.msra.mxu1 %v8842_v16 }
 0x528   : > { %8271 = vmatpush3.bf16.msra.mxu0 %v8836_v23 }
 0x529   : > { %8276 = vmatprep.subr.bf16.mxu0 %v9457_v40 }
 0x5bb   : > { %v8026_v59 = vpop.f32.mrb[64].mxu1 }
 0x5bc   : > { %v8027_v35 = vpop.f32.mrb[65].mxu1 }
 0x5bd   : > { %v8028_v62 = vadd.f32 %v8027_v35, %v8026_v59  ;;  %v8029_v7 = vpop.f32.mrb[66].mxu1 }
 0x5be   : > { %v8048_v61 = vpop.f32.mrb[64].mxu0  ;;  %v8030_v54 = vpop.f32.mrb[67].mxu1 }
 0x5bf   : > { %v4864_v60 = vadd.f32 %v8028_v62, %v7487_v51  ;;  %v8031_v18 = vadd.f32 %v8030_v54, %v8029_v7  ;;  %v8049_v17 = vpop.f32.mrb[65].mxu0 }
 0x5c0   : > { %v8050_v58 = vadd.f32 %v8049_v17, %v8048_v61  ;;  %v8051_v39 = vpop.f32.mrb[66].mxu0 }
 0x5c1   : > { %v4867_v27 = vadd.f32 %v8031_v18, %v7487_v51  ;;  %v8052_v30 = vpop.f32.mrb[67].mxu0 }
 0x5c2   : > { %v4905_v48 = vadd.f32 %v8050_v58, %v4864_v60  ;;  %v8053_v3 = vadd.f32 %v8052_v30, %v8051_v39 }
 0x5c4   : > { %v4908_v44 = vadd.f32 %v8053_v3, %v4867_v27 }
 0x5db   : > { %v8070_v45 = vpop.f32.mrb[68].mxu1 }
 0x5dc   : > { %v8071_v57 = vpop.f32.mrb[69].mxu1 }
 0x5dd   : > { %v8072_v12 = vadd.f32 %v8071_v57, %v8070_v45  ;;  %v8073_v49 = vpop.f32.mrb[70].mxu1 }
 0x5de   : > { %v4986_v38 = vpop.f32.mrb[68].mxu0  ;;  %v8074_v24 = vpop.f32.mrb[71].mxu1 }
 0x5df   : > { %v4946_v0 = vadd.f32 %v8072_v12, %v4905_v48  ;;  %v8075_v36 = vadd.f32 %v8074_v24, %v8073_v49  ;;  %v8254_v25 = vpop.f32.mrb[69].mxu0 }
 0x5e0   : > { %v4989_v28 = vpop.f32.mrb[70].mxu0 }
 0x5e1   : > { %v4987_v20 = vadd.f32 %v4986_v38, %v4946_v0  ;;  %v4949_v9 = vadd.f32 %v8075_v36, %v4908_v44  ;;  %v8255_v14 = vpop.f32.mrb[71].mxu0 }
 0x5e3   : > { %v4993_v34 = vmax.f32 %v4987_v20, 0.0  ;;  %v4990_v37 = vadd.f32 %v4989_v28, %v4949_v9 }
 0x5e5   : > { %v4997_v13 = vrot.slane %v4993_v34, 7  ;;  %v4994_v63 = vmax.f32 %v4990_v37, 0.0 }
 0x5e7   : > { %v5002_v19 = vsel %vm1176_vm8, 0.0, %v4997_v13  ;;  %v4998_v26 = vrot.slane %v4994_v63, 7 }
 0x5e8   : > { %v5006_v46 = vcombine.high %v5002_v19, %v5002_v19  ;;  %v5013_v42 = vrot.slane %v5002_v19, %v10465_v52 }
 0x5e9   : > { %v4999_v53 = vsel %vm1176_vm8, %v4997_v13, %v4998_v26  ;;  %v5003_v29 = vsel %vm1176_vm8, %v4998_v26, 0.0  ;;  %vm5349_vm8 = vsmask.f32 3330 }
 0x5ea   : > { %v5020_v33 = vrot.slane %v5006_v46, %v10465_v52  ;;  %v5021_v50 = vcombine.high %v5013_v42, %v5013_v42  ;;  %v5029_v10 = vrot.slane %v5013_v42, %v10465_v52  ;;  %v5055_v31 = vcombine.high %v4999_v53, %v4999_v53  ;;  %vm10774_vm12 = vmand %vm11107_vm1, %vm5349_vm8 }
 0x5eb   : > { %v5062_v43 = vrot.slane %v4999_v53, %v10465_v52  ;;  %v5110_v55 = vrot.slane %v5003_v29, %v10465_v52 }
 0x5ec   : > { %v5022_v15 = vcombine.high %v5020_v33, %v5020_v33  ;;  %v5036_v47 = vrot.slane %v5020_v33, %v10465_v52  ;;  %v5043_v11 = vrot.slane %v5021_v50, %v10465_v52  ;;  %v5051_v8 = vcombine.high %v5029_v10, %v5029_v10 }
 0x5ed   : > { %v5069_v32 = vrot.slane %v5055_v31, %v10465_v52  ;;  %v5070_v56 = vcombine.high %v5062_v43, %v5062_v43  ;;  %v5078_v22 = vrot.slane %v5062_v43, %v10465_v52  ;;  %v5111_v21 = vcombine.high %v5110_v55, %v5110_v55 }
 0x5ee   : > { %v5050_v5 = vrot.slane %v5022_v15, %v10465_v52  ;;  %v5053_v4 = vcombine.high %v5043_v11, %v5043_v11  ;;  %v5126_v41 = vcombine.low %v5029_v10, %v5043_v11  ;;  %v5140_v23 = vrot.slane %v5051_v8, %v10465_v52 }
 0x5ef   : > { %v5071_v2 = vcombine.high %v5069_v32, %v5069_v32  ;;  %v5085_v1 = vrot.slane %v5069_v32, %v10465_v52  ;;  %v5092_v16 = vrot.slane %v5070_v56, %v10465_v52  ;;  %v5100_v59 = vcombine.high %v5078_v22, %v5078_v22 }
 0x5f0   : > { %v5133_v51 = vrot.slane %v5126_v41, %v10465_v52  ;;  %v5149_v35 = vcombine.low %v5053_v4, %v5036_v47  ;;  %v5163_v62 = vrot.slane %v5050_v5, %v10465_v52  ;;  %v7544_v7 = vcombine.high %v5036_v47, %v5050_v5 }
 0x5f1   : > { %v5099_v61 = vrot.slane %v5071_v2, %v10465_v52  ;;  %v5101_v54 = vcombine.high %v5085_v1, %v5085_v1  ;;  %v5102_v60 = vcombine.high %v5092_v16, %v5092_v16  ;;  %v5118_v18 = vrot.slane %v5110_v55, %v10465_v52 }
 0x5f2   : > { %v5141_v17 = vcombine.low %v5133_v51, %v5140_v23  ;;  %v5156_v58 = vrot.slane %v5149_v35, %v10465_v52  ;;  %v5179_v39 = vrot.slane %v7544_v7, %v10465_v52  ;;  %v5125_v27 = vrot.slane %v5111_v21, %v10465_v52 }
 0x5f3   : > { %v5103_v30 = vcombine.high %v5099_v61, %v5099_v61  ;;  %v5186_v48 = vrot.slane %v5078_v22, %v10465_v52  ;;  %v5195_v3 = vcombine.low %v5092_v16, %v5100_v59  ;;  %v5209_v44 = vrot.slane %v5102_v60, %v10465_v52 }
 0x5f4   : > { %v5148_v45 = vrot.slane %v5141_v17, %v10465_v52  ;;  %v5164_v57 = vcombine.low %v5156_v58, %v5163_v62  ;;  %v5218_v12 = vcombine.low %v5085_v1, %v5099_v61  ;;  %v5232_v24 = vrot.slane %v5101_v54, %v10465_v52 }
 0x5f5   : > { %v5187_v49 = vcombine.low %v5179_v39, %v5186_v48  ;;  %v5202_v38 = vrot.slane %v5195_v3, %v10465_v52  ;;  %v5241_v0 = vcombine.low %v5103_v30, %v5118_v18  ;;  %v5255_v20 = vrot.slane %v5125_v27, %v10465_v52 }
 0x5f6   : > { %v5171_v36 = vrot.slane %v5164_v57, %v10465_v52  ;;  %v5270_v25 = vsel %vm3994_vm6, %v5148_v45, -inf  ;;  %v5225_v28 = vrot.slane %v5218_v12, %v10465_v52 }
 0x5f7   : > { %v5271_v9 = vrot.slane %v5270_v25, 4  ;;  %v5194_v14 = vrot.slane %v5187_v49, %v10465_v52  ;;  %v5210_v34 = vcombine.low %v5202_v38, %v5209_v44  ;;  %v5248_v37 = vrot.slane %v5241_v0, %v10465_v52 }
 0x5f8   : > { %v5277_v13 = vsel %vm3994_vm6, %v5171_v36, -inf  ;;  %v5233_v63 = vcombine.low %v5225_v28, %v5232_v24 }
 0x5f9   : > { %v5272_v19 = vmax.f32 %v5270_v25, %v5271_v9  ;;  %v5278_v26 = vrot.slane %v5277_v13, 4  ;;  %v5217_v46 = vrot.slane %v5210_v34, %v10465_v52  ;;  %v5256_v42 = vcombine.low %v5248_v37, %v5255_v20 }
 0x5fa   : > { %v5240_v53 = vrot.slane %v5233_v63, %v10465_v52  ;;  %v5284_v29 = vsel %vm3994_vm6, %v5194_v14, -inf }
 0x5fb   : > { %v5273_v33 = vrot.slane %v5272_v19, 2  ;;  %v5279_v50 = vmax.f32 %v5277_v13, %v5278_v26  ;;  %v5263_v10 = vrot.slane %v5256_v42, %v10465_v52  ;;  %v5285_v31 = vrot.slane %v5284_v29, 4 }
 0x5fc   : > { %v5291_v43 = vsel %vm3994_vm6, %v5217_v46, -inf  ;;  %v5298_v55 = vsel %vm3994_vm6, %v5240_v53, -inf }
 0x5fd   : > { %v5274_v15 = vmax.f32 %v5272_v19, %v5273_v33  ;;  %v5280_v47 = vrot.slane %v5279_v50, 2  ;;  %v5286_v11 = vmax.f32 %v5284_v29, %v5285_v31  ;;  %v5292_v8 = vrot.slane %v5291_v43, 4  ;;  %v5351_v19 = vld [vmem:[#allocation2] sm:$0xf] }
 0x5fe   : > { %v5299_v32 = vrot.slane %v5298_v55, 4  ;;  %v5305_v56 = vsel %vm3994_vm6, %v5263_v10, -inf  ;;  %vm10782_vm6 = vmand %vm4237_vm7, %vm5355_vm4  ;;  %v8839_v29 = vld [vmem:[#allocation2 + $0x10] ss:$0 sps:$4 sm:$0x11]  }
 0x5ff   : > { %v5275_v22 = vrot.slane %v5274_v15, 1  ;;  %v5281_v21 = vmax.f32 %v5279_v50, %v5280_v47  ;;  %v5287_v5 = vrot.slane %v5286_v11, 2  ;;  %v5293_v4 = vmax.f32 %v5291_v43, %v5292_v8  ;;  %v5361_v50 = vld [vmem:[#allocation2 + $0x8] sm:$0xf] }
 0x600   : > { %v5300_v41 = vmax.f32 %v5298_v55, %v5299_v32  ;;  %v5306_v23 = vrot.slane %v5305_v56, 4 }
 0x601   : > { %v5276_v2 = vmax.f32 %v5274_v15, %v5275_v22  ;;  %v5282_v52 = vrot.slane %v5281_v21, 1  ;;  %v5288_v1 = vmax.f32 %v5286_v11, %v5287_v5  ;;  %v5294_v16 = vrot.slane %v5293_v4, 2 }
 0x602   : > { %v5301_v59 = vrot.slane %v5300_v41, 2  ;;  %v5307_v51 = vmax.f32 %v5305_v56, %v5306_v23  ;;  %v5390_v15 = vrot.slane %v8839_v29, 1  ;;  %v5381_v11 = vshll.u32 %v8839_v29, 16  ;;  %v8845_v23 = vld [vmem:[#allocation14 + $0x88] sm:$0xff]  }
 0x603   : > { %v5283_v35 = vmax.f32 %v5281_v21, %v5282_v52  ;;  %v7721_v62 = vpack.c.bf16 %v5276_v2, %v5276_v2  ;;  %v5289_v7 = vrot.slane %v5288_v1, 1  ;;  %v5295_v61 = vmax.f32 %v5293_v4, %v5294_v16  ;;  %v8843_v4 = vld [vmem:[#allocation14 + $0x80] sm:$0xff]   ;;  %v8847_v52 = vld [vmem:[#allocation14 + $0x48] sm:$0xff]  }
 0x604   : > { %v5302_v54 = vmax.f32 %v5300_v41, %v5301_v59  ;;  %v5308_v60 = vrot.slane %v5307_v51, 2  ;;  %v5383_v21 = vrot.slane %v5381_v11, 1  ;;  %v8844_v41 = vld [vmem:[#allocation14 + $0x40] sm:$0xff]   ;;  %v8849_v16 = vld [vmem:[#allocation14 + $0x8] sm:$0xff]   ;;  %v8850_v59 = vld [vmem:[#allocation14 + $0x50] sm:$0xff]  }
 0x605   : > { %v7722_v18 = vpack.c.bf16 %v5283_v35, %v5283_v35  ;;  %v5290_v17 = vmax.f32 %v5288_v1, %v5289_v7  ;;  %v5296_v58 = vrot.slane %v5295_v61, 1  ;;  %v5336_v30 = vunpack.c.l.b16 %v7721_v62  ;;  %v8846_v2 = vld [vmem:[#allocation14] sm:$0xff]   ;;  %8116 = vmatprep.subr.bf16.mxu1 %v8844_v41  ;;  %v8848_v1 = vld [vmem:[#allocation14 + $0x90] sm:$0xff]   ;;  %v8853_v62 = vld [vmem:[#allocation14 + $0x58] sm:$0xff]  }
 0x606   : > { %v5303_v39 = vrot.slane %v5302_v54, 1  ;;  %v5309_v27 = vmax.f32 %v5307_v51, %v5308_v60  ;;  %v8851_v51 = vld [vmem:[#allocation14 + $0x98] sm:$0xff]   ;;  %v8852_v35 = vld [vmem:[#allocation14 + $0x10] sm:$0xff]   ;;  %v8854_v7 = vld [vmem:[#allocation14 + $0xa0] sm:$0xff]  }
 0x607   : > { %v5337_v48 = vunpack.c.l.b16 %v7722_v18  ;;  %v5297_v3 = vmax.f32 %v5295_v61, %v5296_v58  ;;  %v7723_v44 = vpack.c.bf16 %v5290_v17, %v5290_v17  ;;  %v8855_v61 = vld [vmem:[#allocation14 + $0x18] sm:$0xff]   ;;  %v8857_v60 = vld [vmem:[#allocation14 + $0xa8] sm:$0xff]   ;;  %v8858_v18 = vld [vmem:[#allocation14 + $0x20] sm:$0xff]  }
 0x608   : > { %v5304_v45 = vmax.f32 %v5302_v54, %v5303_v39  ;;  %v5310_v57 = vrot.slane %v5309_v27, 1  ;;  %v8856_v54 = vld [vmem:[#allocation14 + $0x60] sm:$0xff]   ;;  %v8859_v17 = vld [vmem:[#allocation14 + $0x68] sm:$0xff]   ;;  %v8860_v58 = vld [vmem:[#allocation14 + $0xb0] sm:$0xff]  }
 0x609   : > { %v5342_v12 = vsel %vm4235_vm5, %v5337_v48, %v5336_v30  ;;  %v7724_v49 = vpack.c.bf16 %v5297_v3, %v5297_v3  ;;  %v5338_v38 = vunpack.c.l.b16 %v7723_v44  ;;  %v8861_v39 = vld [vmem:[#allocation14 + $0x28] sm:$0xff]   ;;  %v8863_v30 = vld [vmem:[#allocation14 + $0xb8] sm:$0xff]   ;;  %v8864_v48 = vld [vmem:[#allocation14 + $0x30] sm:$0xff]  }
 0x60a   : > { %v5311_v24 = vmax.f32 %v5309_v27, %v5310_v57  ;;  %v7725_v0 = vpack.c.bf16 %v5304_v45, %v5304_v45  ;;  %v8862_v27 = vld [vmem:[#allocation14 + $0x70] sm:$0xff]   ;;  %v8868_v3 = vld [vmem:[#allocation14 + $0x78] sm:$0xff]  }
 0x60b   : > { %v5339_v36 = vunpack.c.l.b16 %v7724_v49  ;;  %v5343_v25 = vsel %vm4237_vm7, %v5338_v38, %v5342_v12  ;;  %v8869_v44 = vld [vmem:[#allocation14 + $0x38] sm:$0xff]  }
 0x60c   : > { %v7726_v28 = vpack.c.bf16 %v5311_v24, %v5311_v24  ;;  %v5340_v20 = vunpack.c.l.b16 %v7725_v0  ;;  %v7554_v24 = vld [vmem:[#allocation12] ss:$0 sm:$0xff] }
 0x60d   : > { %v5344_v9 = vsel %vm1179_vm10, %v5339_v36, %v5343_v25  ;;  %vm6672_vm10 = vcmp.lt.s32.totalorder %v10455_v6, 6  ;;  %v8939_v6 = vld [vmem:[%s11113_s29 + $0x38] sm:$0xff]  }
 0x60e   : > { %v5341_v14 = vunpack.c.l.b16 %v7726_v28  ;;  %v5345_v34 = vsel %vm4241_vm13, %v5340_v20, %v5344_v9 }
 0x610   : > { %v5346_v13 = vsel %vm11110_vm0, %v5341_v14, %v5345_v34 }
 0x611   : > { %v5347_v63 = vpack.c.b16 %v5346_v13, %v5346_v13 }
 0x613   : > { %v5352_v26 = vsel %vm10774_vm12, %v5347_v63, %v5351_v19 }
 0x614   : > { %5353 = vst [vmem:[#allocation2] sm:$0xf] %v5352_v26 }
 0x61b   : > { %v5357_v42 = vld [vmem:[#allocation2] sm:$0x8] }
 0x61c   : > { %v5358_v53 = vsel %vm10782_vm6, 0, %v5357_v42 }
 0x61d   : > { %5359 = vst [vmem:[#allocation2] sm:$0x8] %v5358_v53 }
 0x624   : > { %v5360_v33 = vld [vmem:[#allocation2] sm:$0xf] }
 0x625   : > { %v5363_v10 = vld [vmem:[#allocation2] sm:$0xe]  ;;  %v7551_v31 = vcombine.low %v5360_v33, %v5361_v50 }
 0x626   : > { %v7553_v43 = vcombine.low %v5363_v10, %v5361_v50  ;;  %v5685_v42 = vld [vmem:[#allocation2] sm:$0xf]  ;;  %v8866_v50 = vld [vmem:[#allocation2 + $0x10] ss:$0 sps:$4 sm:$0x11]  }
 0x627   : > { %v5376_v47 = vshll.u32 %v7551_v31, 16  ;;  %v5374_v32 = vshrl.u32 %v7551_v31, 16  ;;  %v5721_v11 = vrot.slane %v8866_v50, 1 }
 0x628   : > { %v5389_v55 = vrot.slane %v7553_v43, 1 }
 0x629   : > { %v5378_v56 = vrot.slane %v5376_v47, 1 }
 0x62a   : > { %v5391_v8 = vsel %vm1519_vm9, %v5389_v55, %v5390_v15 }
 0x62b   : > { %8273 = vmatmul.mubr.bf16.vlgmr.msra.gmra.mrb[72].mxu0 %v5391_v8  ;;  %v5379_v22 = vor.u32 %v5378_v56, %v5374_v32  ;;  %v5712_v32 = vshll.u32 %v8866_v50, 16 }
 0x62c   : > { %8292 = vmatprep.mubr.msk.bf16.mxu0 %vm9458_vm15, %v9457_v40  ;;  %8277 = vmatpush3.bf16.msra.mxu0 %v8843_v4 }
 0x62d   : > { %v5384_v5 = vsel %vm1433_vm11, %v5379_v22, %v5383_v21  ;;  %8278 = vmatprep.subr.bf16.mxu0 %v9457_v40  ;;  %v5714_v4 = vrot.slane %v5712_v32, 1 }
 0x62e   : > { %5624 = vmatprep.mubr.bf16.mxu1 %v5384_v5 }
 0x62f   : > { %5625 = vmatmul.mubr.bf16.vlgmr.msra.gmra.mrb[72].mxu1 %v7551_v31  ;;  %v5692_v31 = vld [vmem:[#allocation2 + $0x8] sm:$0xf] }
 0x630   : > { %8279 = vmatpush3.bf16.msra.mxu0 %v8845_v23  ;;  %8117 = vmatpush3.bf16.msra.mxu1 %v8846_v2  ;;  %v8870_v23 = vld [vmem:[#allocation17 + $0x80] sm:$0xff]  }
 0x631   : > { %8280 = vmatprep.subr.bf16.mxu0 %v9457_v40  ;;  %8118 = vmatprep.subr.bf16.mxu1 %v8847_v52  ;;  %v8871_v2 = vld [vmem:[#allocation17 + $0x40] sm:$0xff]   ;;  %v8872_v52 = vld [vmem:[#allocation17 + $0x88] sm:$0xff]  }
 0x634   : > { %8281 = vmatpush3.bf16.msra.mxu0 %v8848_v1  ;;  %8119 = vmatpush3.bf16.msra.mxu1 %v8849_v16  ;;  %v8873_v1 = vld [vmem:[#allocation17] sm:$0xff]   ;;  %v8874_v16 = vld [vmem:[#allocation17 + $0x48] sm:$0xff]  }
 0x635   : > { %8282 = vmatprep.subr.bf16.mxu0 %v9457_v40  ;;  %8120 = vmatprep.subr.bf16.mxu1 %v8850_v59  ;;  %v8875_v59 = vld [vmem:[#allocation17 + $0x90] sm:$0xff]  }
 0x638   : > { %8283 = vmatpush3.bf16.msra.mxu0 %v8851_v51  ;;  %8121 = vmatpush3.bf16.msra.mxu1 %v8852_v35  ;;  %v8876_v51 = vld [vmem:[#allocation17 + $0x8] sm:$0xff]   ;;  %v8877_v35 = vld [vmem:[#allocation17 + $0x50] sm:$0xff]  }
 0x639   : > { %8284 = vmatprep.subr.bf16.mxu0 %v9457_v40  ;;  %8122 = vmatprep.subr.bf16.mxu1 %v8853_v62  ;;  %v8878_v62 = vld [vmem:[#allocation17 + $0x98] sm:$0xff]  }
 0x63c   : > { %8285 = vmatpush3.bf16.msra.mxu0 %v8854_v7  ;;  %8123 = vmatpush3.bf16.msra.mxu1 %v8855_v61  ;;  %v8879_v7 = vld [vmem:[#allocation17 + $0x10] sm:$0xff]   ;;  %v8880_v61 = vld [vmem:[#allocation17 + $0x58] sm:$0xff]  }
 0x63d   : > { %8286 = vmatprep.subr.bf16.mxu0 %v9457_v40  ;;  %8124 = vmatprep.subr.bf16.mxu1 %v8856_v54  ;;  %v8881_v54 = vld [vmem:[#allocation17 + $0xa0] sm:$0xff]  }
 0x640   : > { %8287 = vmatpush3.bf16.msra.mxu0 %v8857_v60  ;;  %8125 = vmatpush3.bf16.msra.mxu1 %v8858_v18  ;;  %v8882_v60 = vld [vmem:[#allocation17 + $0x18] sm:$0xff]   ;;  %v8883_v18 = vld [vmem:[#allocation17 + $0x60] sm:$0xff]  }
 0x641   : > { %8288 = vmatprep.subr.bf16.mxu0 %v9457_v40  ;;  %8126 = vmatprep.subr.bf16.mxu1 %v8859_v17  ;;  %v8884_v17 = vld [vmem:[#allocation17 + $0xa8] sm:$0xff]  }
 0x644   : > { %8289 = vmatpush3.bf16.msra.mxu0 %v8860_v58  ;;  %8127 = vmatpush3.bf16.msra.mxu1 %v8861_v39  ;;  %v8885_v58 = vld [vmem:[#allocation17 + $0x20] sm:$0xff]   ;;  %v8886_v39 = vld [vmem:[#allocation17 + $0x68] sm:$0xff]  }
 0x645   : > { %8290 = vmatprep.subr.bf16.mxu0 %v9457_v40  ;;  %8128 = vmatprep.subr.bf16.mxu1 %v8862_v27  ;;  %v8887_v27 = vld [vmem:[#allocation17 + $0xb0] sm:$0xff]  }
 0x648   : > { %8291 = vmatpush3.bf16.msra.mxu0 %v8863_v30  ;;  %8129 = vmatpush3.bf16.msra.mxu1 %v8864_v48  ;;  %v8888_v30 = vld [vmem:[#allocation17 + $0x28] sm:$0xff]   ;;  %v8889_v48 = vld [vmem:[#allocation17 + $0x70] sm:$0xff]  }
 0x649   : > { %8296 = vmatprep.subr.bf16.mxu0 %v9457_v40  ;;  %8130 = vmatprep.subr.bf16.mxu1 %v8868_v3  ;;  %v8890_v3 = vld [vmem:[#allocation17 + $0xb8] sm:$0xff]  }
 0x64c   : > { %8131 = vmatpush3.bf16.msra.mxu1 %v8869_v44  ;;  %v8891_v44 = vld [vmem:[#allocation17 + $0x30] sm:$0xff]  }
 0x64d   : > { %8147 = vmatprep.subr.bf16.mxu1 %v8871_v2 }
 0x6fe   : > { %v5666_v45 = vpop.f32.mrb[72].mxu0 }
 0x6ff   : > { %v8274_v57 = vpop.f32.mrb[73].mxu0 }
 0x700   : > { %v5669_v12 = vpop.f32.mrb[74].mxu0  ;;  %v8896_v57 = vld [vmem:[#allocation17 + $0x38] sm:$0xff]  }
 0x701   : > { %v8275_v49 = vpop.f32.mrb[75].mxu0 }
 0x702   : > { %v8101_v38 = vpop.f32.mrb[72].mxu1 }
 0x703   : > { %v8102_v0 = vpop.f32.mrb[73].mxu1 }
 0x704   : > { %v8103_v36 = vadd.f32 %v8102_v0, %v8101_v38  ;;  %v8104_v25 = vpop.f32.mrb[74].mxu1 }
 0x705   : > { %v8105_v28 = vpop.f32.mrb[75].mxu1 }
 0x706   : > { %v5627_v20 = vadd.f32 %v8103_v36, %v7554_v24  ;;  %v7583_v36 = vld [vmem:[#allocation15] ss:$0 sm:$0xff] }
 0x708   : > { %v5667_v9 = vadd.f32 %v5666_v45, %v5627_v20  ;;  %v8895_v45 = vld [vmem:[#allocation17 + $0x78] sm:$0xff]  }
 0x70a   : > { %v5672_v14 = vmax.f32 %v5667_v9, 0.0 }
 0x70c   : > { %v7727_v34 = vpack.c.bf16 %v5672_v14, %v5672_v14 }
 0x70e   : > { %v5678_v13 = vshrl.u32 %v7727_v34, 16  ;;  %v5681_v19 = vshll.u32 %v7727_v34, 16 }
 0x710   : > { %v5680_v63 = vrot.slane %v5678_v13, 7 }
 0x712   : > { %v5683_v26 = vor.u32 %v5681_v19, %v5680_v63 }
 0x714   : > { %v5686_v53 = vsel %vm10774_vm12, %v5683_v26, %v5685_v42 }
 0x715   : > { %5687 = vst [vmem:[#allocation2] sm:$0xf] %v5686_v53 }
 0x71c   : > { %v5688_v29 = vld [vmem:[#allocation2] sm:$0x8] }
 0x71d   : > { %v5689_v33 = vsel %vm10782_vm6, 0, %v5688_v29 }
 0x71e   : > { %5690 = vst [vmem:[#allocation2] sm:$0x8] %v5689_v33 }
 0x725   : > { %v5691_v10 = vld [vmem:[#allocation2] sm:$0xf] }
 0x726   : > { %v5694_v43 = vld [vmem:[#allocation2] sm:$0xe]  ;;  %v7580_v55 = vcombine.low %v5691_v10, %v5692_v31 }
 0x727   : > { %v7582_v15 = vcombine.low %v5694_v43, %v5692_v31  ;;  %v6016_v29 = vld [vmem:[#allocation2] sm:$0xf]  ;;  %v8893_v31 = vld [vmem:[#allocation2 + $0x10] ss:$0 sps:$4 sm:$0x11]  }
 0x728   : > { %v5707_v8 = vshll.u32 %v7580_v55, 16  ;;  %v5705_v22 = vshrl.u32 %v7580_v55, 16  ;;  %v6052_v32 = vrot.slane %v8893_v31, 1 }
 0x729   : > { %v5720_v47 = vrot.slane %v7582_v15, 1 }
 0x72a   : > { %v5709_v21 = vrot.slane %v5707_v8, 1 }
 0x72b   : > { %v5722_v56 = vsel %vm1519_vm9, %v5720_v47, %v5721_v11 }
 0x72c   : > { %8293 = vmatmul.mubr.bf16.vlgmr.msra.gmra.mrb[76].mxu0 %v5722_v56  ;;  %v5710_v5 = vor.u32 %v5709_v21, %v5705_v22  ;;  %v6043_v22 = vshll.u32 %v8893_v31, 16 }
 0x72d   : > { %8312 = vmatprep.mubr.msk.bf16.mxu0 %vm9458_vm15, %v9457_v40  ;;  %8297 = vmatpush3.bf16.msra.mxu0 %v8870_v23 }
 0x72e   : > { %v5715_v41 = vsel %vm1433_vm11, %v5710_v5, %v5714_v4  ;;  %8298 = vmatprep.subr.bf16.mxu0 %v9457_v40  ;;  %v6045_v23 = vrot.slane %v6043_v22, 1 }
 0x72f   : > { %5955 = vmatprep.mubr.bf16.mxu1 %v5715_v41 }
 0x730   : > { %5956 = vmatmul.mubr.bf16.vlgmr.msra.gmra.mrb[76].mxu1 %v7580_v55  ;;  %v6023_v55 = vld [vmem:[#allocation2 + $0x8] sm:$0xf] }
 0x731   : > { %8299 = vmatpush3.bf16.msra.mxu0 %v8872_v52  ;;  %8148 = vmatpush3.bf16.msra.mxu1 %v8873_v1  ;;  %v8897_v52 = vld [vmem:[#allocation20 + $0x80] sm:$0xff]  }
 0x732   : > { %8300 = vmatprep.subr.bf16.mxu0 %v9457_v40  ;;  %8149 = vmatprep.subr.bf16.mxu1 %v8874_v16  ;;  %v8898_v1 = vld [vmem:[#allocation20 + $0x40] sm:$0xff]   ;;  %v8899_v16 = vld [vmem:[#allocation20 + $0x88] sm:$0xff]  }
 0x735   : > { %8301 = vmatpush3.bf16.msra.mxu0 %v8875_v59  ;;  %8150 = vmatpush3.bf16.msra.mxu1 %v8876_v51  ;;  %v8900_v59 = vld [vmem:[#allocation20] sm:$0xff]   ;;  %v8901_v51 = vld [vmem:[#allocation20 + $0x48] sm:$0xff]  }
 0x736   : > { %8302 = vmatprep.subr.bf16.mxu0 %v9457_v40  ;;  %8151 = vmatprep.subr.bf16.mxu1 %v8877_v35  ;;  %v8902_v35 = vld [vmem:[#allocation20 + $0x90] sm:$0xff]  }
 0x739   : > { %8303 = vmatpush3.bf16.msra.mxu0 %v8878_v62  ;;  %8152 = vmatpush3.bf16.msra.mxu1 %v8879_v7  ;;  %v8903_v62 = vld [vmem:[#allocation20 + $0x8] sm:$0xff]   ;;  %v8904_v7 = vld [vmem:[#allocation20 + $0x50] sm:$0xff]  }
 0x73a   : > { %8304 = vmatprep.subr.bf16.mxu0 %v9457_v40  ;;  %8153 = vmatprep.subr.bf16.mxu1 %v8880_v61  ;;  %v8905_v61 = vld [vmem:[#allocation20 + $0x98] sm:$0xff]  }
 0x73d   : > { %8305 = vmatpush3.bf16.msra.mxu0 %v8881_v54  ;;  %8154 = vmatpush3.bf16.msra.mxu1 %v8882_v60  ;;  %v8906_v54 = vld [vmem:[#allocation20 + $0x10] sm:$0xff]   ;;  %v8907_v60 = vld [vmem:[#allocation20 + $0x58] sm:$0xff]  }
 0x73e   : > { %8306 = vmatprep.subr.bf16.mxu0 %v9457_v40  ;;  %8155 = vmatprep.subr.bf16.mxu1 %v8883_v18  ;;  %v8908_v18 = vld [vmem:[#allocation20 + $0xa0] sm:$0xff]  }
 0x741   : > { %8307 = vmatpush3.bf16.msra.mxu0 %v8884_v17  ;;  %8156 = vmatpush3.bf16.msra.mxu1 %v8885_v58  ;;  %v8909_v17 = vld [vmem:[#allocation20 + $0x18] sm:$0xff]   ;;  %v8910_v58 = vld [vmem:[#allocation20 + $0x60] sm:$0xff]  }
 0x742   : > { %8308 = vmatprep.subr.bf16.mxu0 %v9457_v40  ;;  %8157 = vmatprep.subr.bf16.mxu1 %v8886_v39  ;;  %v8911_v39 = vld [vmem:[#allocation20 + $0xa8] sm:$0xff]  }
 0x745   : > { %8309 = vmatpush3.bf16.msra.mxu0 %v8887_v27  ;;  %8158 = vmatpush3.bf16.msra.mxu1 %v8888_v30  ;;  %v8912_v27 = vld [vmem:[#allocation20 + $0x20] sm:$0xff]   ;;  %v8913_v30 = vld [vmem:[#allocation20 + $0x68] sm:$0xff]  }
 0x746   : > { %8310 = vmatprep.subr.bf16.mxu0 %v9457_v40  ;;  %8159 = vmatprep.subr.bf16.mxu1 %v8889_v48  ;;  %v8914_v48 = vld [vmem:[#allocation20 + $0xb0] sm:$0xff]  }
 0x749   : > { %8311 = vmatpush3.bf16.msra.mxu0 %v8890_v3  ;;  %8160 = vmatpush3.bf16.msra.mxu1 %v8891_v44  ;;  %v8915_v3 = vld [vmem:[#allocation20 + $0x28] sm:$0xff]   ;;  %v8916_v44 = vld [vmem:[#allocation20 + $0x70] sm:$0xff]  }
 0x74a   : > { %8316 = vmatprep.subr.bf16.mxu0 %v9457_v40  ;;  %8161 = vmatprep.subr.bf16.mxu1 %v8895_v45  ;;  %v8917_v45 = vld [vmem:[#allocation20 + $0xb8] sm:$0xff]  }
 0x74d   : > { %8162 = vmatpush3.bf16.msra.mxu1 %v8896_v57  ;;  %v8918_v57 = vld [vmem:[#allocation20 + $0x30] sm:$0xff]  }
 0x74e   : > { %8178 = vmatprep.subr.bf16.mxu1 %v8898_v1  ;;  %v8925_v1 = vld [vmem:[%s11004_s14 + $0x8] sm:$0xff]  }
 0x7ff   : > { %v5997_v12 = vpop.f32.mrb[76].mxu0 }
 0x800   : > { %v8294_v49 = vpop.f32.mrb[77].mxu0 }
 0x801   : > { %v6000_v38 = vpop.f32.mrb[78].mxu0  ;;  %v8923_v49 = vld [vmem:[#allocation20 + $0x38] sm:$0xff]  }
 0x802   : > { %v8295_v24 = vpop.f32.mrb[79].mxu0 }
 0x803   : > { %v8132_v0 = vpop.f32.mrb[76].mxu1 }
 0x804   : > { %v8133_v25 = vpop.f32.mrb[77].mxu1 }
 0x805   : > { %v8134_v28 = vadd.f32 %v8133_v25, %v8132_v0  ;;  %v8135_v20 = vpop.f32.mrb[78].mxu1 }
 0x806   : > { %v8136_v9 = vpop.f32.mrb[79].mxu1 }
 0x807   : > { %v5958_v14 = vadd.f32 %v8134_v28, %v7583_v36  ;;  %v7612_v28 = vld [vmem:[#allocation18] ss:$0 sm:$0xff] }
 0x809   : > { %v5998_v34 = vadd.f32 %v5997_v12, %v5958_v14  ;;  %v8922_v12 = vld [vmem:[#allocation20 + $0x78] sm:$0xff]  }
 0x80b   : > { %v6003_v13 = vmax.f32 %v5998_v34, 0.0 }
 0x80d   : > { %v7728_v63 = vpack.c.bf16 %v6003_v13, %v6003_v13 }
 0x80f   : > { %v6009_v19 = vshrl.u32 %v7728_v63, 16  ;;  %v6012_v42 = vshll.u32 %v7728_v63, 16 }
 0x811   : > { %v6011_v26 = vrot.slane %v6009_v19, 7 }
 0x813   : > { %v6014_v53 = vor.u32 %v6012_v42, %v6011_v26 }
 0x815   : > { %v6017_v33 = vsel %vm10774_vm12, %v6014_v53, %v6016_v29 }
 0x816   : > { %6018 = vst [vmem:[#allocation2] sm:$0xf] %v6017_v33 }
 0x81d   : > { %v6019_v50 = vld [vmem:[#allocation2] sm:$0x8] }
 0x81e   : > { %v6020_v10 = vsel %vm10782_vm6, 0, %v6019_v50 }
 0x81f   : > { %6021 = vst [vmem:[#allocation2] sm:$0x8] %v6020_v10 }
 0x826   : > { %v6022_v43 = vld [vmem:[#allocation2] sm:$0xf] }
 0x827   : > { %v6025_v15 = vld [vmem:[#allocation2] sm:$0xe]  ;;  %v7609_v47 = vcombine.low %v6022_v43, %v6023_v55 }
 0x828   : > { %v7611_v11 = vcombine.low %v6025_v15, %v6023_v55  ;;  %v6347_v50 = vld [vmem:[#allocation2] sm:$0xf]  ;;  %v8920_v55 = vld [vmem:[#allocation2 + $0x10] ss:$0 sps:$4 sm:$0x11]  }
 0x829   : > { %v6038_v56 = vshll.u32 %v7609_v47, 16  ;;  %v6036_v5 = vshrl.u32 %v7609_v47, 16  ;;  %v6383_v22 = vrot.slane %v8920_v55, 1 }
 0x82a   : > { %v6051_v8 = vrot.slane %v7611_v11, 1 }
 0x82b   : > { %v6040_v4 = vrot.slane %v6038_v56, 1 }
 0x82c   : > { %v6053_v21 = vsel %vm1519_vm9, %v6051_v8, %v6052_v32 }
 0x82d   : > { %8313 = vmatmul.mubr.bf16.vlgmr.msra.gmra.mrb[80].mxu0 %v6053_v21  ;;  %v6041_v41 = vor.u32 %v6040_v4, %v6036_v5  ;;  %v6374_v5 = vshll.u32 %v8920_v55, 16 }
 0x82e   : > { %8332 = vmatprep.mubr.msk.bf16.mxu0 %vm9458_vm15, %v9457_v40  ;;  %8317 = vmatpush3.bf16.msra.mxu0 %v8897_v52  ;;  %v8924_v52 = vld [vmem:[%s11004_s14] sm:$0xff]  }
 0x82f   : > { %v6046_v2 = vsel %vm1433_vm11, %v6041_v41, %v6045_v23  ;;  %8318 = vmatprep.subr.bf16.mxu0 %v9457_v40 }
 0x830   : > { %6286 = vmatprep.mubr.bf16.mxu1 %v6046_v2  ;;  %v6376_v2 = vrot.slane %v6374_v5, 1 }
 0x831   : > { %6287 = vmatmul.mubr.bf16.vlgmr.msra.gmra.mrb[80].mxu1 %v7609_v47  ;;  %v6354_v47 = vld [vmem:[#allocation2 + $0x8] sm:$0xf] }
 0x832   : > { %8319 = vmatpush3.bf16.msra.mxu0 %v8899_v16  ;;  %8179 = vmatpush3.bf16.msra.mxu1 %v8900_v59  ;;  %v8926_v16 = vld [vmem:[%s11004_s14 + $0x10] sm:$0xff]   ;;  %v8927_v59 = vld [vmem:[%s11004_s14 + $0x18] sm:$0xff]  }
 0x833   : > { %8320 = vmatprep.subr.bf16.mxu0 %v9457_v40  ;;  %8180 = vmatprep.subr.bf16.mxu1 %v8901_v51  ;;  %v8928_v51 = vld [vmem:[%s11004_s14 + $0x20] sm:$0xff]  }
 0x836   : > { %8321 = vmatpush3.bf16.msra.mxu0 %v8902_v35  ;;  %8181 = vmatpush3.bf16.msra.mxu1 %v8903_v62  ;;  %v8929_v35 = vld [vmem:[%s11004_s14 + $0x28] sm:$0xff]   ;;  %v8930_v62 = vld [vmem:[%s11004_s14 + $0x30] sm:$0xff]  }
 0x837   : > { %8322 = vmatprep.subr.bf16.mxu0 %v9457_v40  ;;  %8182 = vmatprep.subr.bf16.mxu1 %v8904_v7  ;;  %v8931_v7 = vld [vmem:[%s11004_s14 + $0x38] sm:$0xff]  }
 0x83a   : > { %8323 = vmatpush3.bf16.msra.mxu0 %v8905_v61  ;;  %8183 = vmatpush3.bf16.msra.mxu1 %v8906_v54  ;;  %v8932_v61 = vld [vmem:[%s11113_s29] sm:$0xff]   ;;  %v8933_v54 = vld [vmem:[%s11113_s29 + $0x8] sm:$0xff]  }
 0x83b   : > { %8324 = vmatprep.subr.bf16.mxu0 %v9457_v40  ;;  %8184 = vmatprep.subr.bf16.mxu1 %v8907_v60  ;;  %v8934_v60 = vld [vmem:[%s11113_s29 + $0x10] sm:$0xff]  }
 0x83e   : > { %8325 = vmatpush3.bf16.msra.mxu0 %v8908_v18  ;;  %8185 = vmatpush3.bf16.msra.mxu1 %v8909_v17  ;;  %v8935_v18 = vld [vmem:[%s11113_s29 + $0x18] sm:$0xff]   ;;  %v8936_v17 = vld [vmem:[%s11113_s29 + $0x20] sm:$0xff]  }
 0x83f   : > { %8326 = vmatprep.subr.bf16.mxu0 %v9457_v40  ;;  %8186 = vmatprep.subr.bf16.mxu1 %v8910_v58  ;;  %v8937_v58 = vld [vmem:[%s11113_s29 + $0x28] sm:$0xff]  }
 0x842   : > { %8327 = vmatpush3.bf16.msra.mxu0 %v8911_v39  ;;  %8187 = vmatpush3.bf16.msra.mxu1 %v8912_v27 }
 0x843   : > { %8328 = vmatprep.subr.bf16.mxu0 %v9457_v40  ;;  %8188 = vmatprep.subr.bf16.mxu1 %v8913_v30 }
 0x846   : > { %8329 = vmatpush3.bf16.msra.mxu0 %v8914_v48  ;;  %8189 = vmatpush3.bf16.msra.mxu1 %v8915_v3 }
 0x847   : > { %8330 = vmatprep.subr.bf16.mxu0 %v9457_v40  ;;  %8190 = vmatprep.subr.bf16.mxu1 %v8916_v44  ;;  %v7641_v44 = vld [vmem:[#allocation21] ss:$0 sm:$0xff] }
 0x84a   : > { %8331 = vmatpush3.bf16.msra.mxu0 %v8917_v45  ;;  %8191 = vmatpush3.bf16.msra.mxu1 %v8918_v57 }
 0x84b   : > { %8356 = vmatprep.subr.bf16.mxu0 %v9457_v40  ;;  %8192 = vmatprep.subr.bf16.mxu1 %v8922_v12 }
 0x84e   : > { %8193 = vmatpush3.bf16.msra.mxu1 %v8923_v49 }
 0x84f   : > { %8336 = vmatprep.subr.bf16.mxu1 %v9457_v40 }
 0x900   : > { %v6328_v38 = vpop.f32.mrb[80].mxu0 }
 0x901   : > { %v8314_v24 = vpop.f32.mrb[81].mxu0 }
 0x902   : > { %v6331_v0 = vpop.f32.mrb[82].mxu0 }
 0x903   : > { %v8315_v36 = vpop.f32.mrb[83].mxu0 }
 0x904   : > { %v8163_v25 = vpop.f32.mrb[80].mxu1 }
 0x905   : > { %v8164_v20 = vpop.f32.mrb[81].mxu1 }
 0x906   : > { %v8165_v9 = vadd.f32 %v8164_v20, %v8163_v25  ;;  %v8166_v14 = vpop.f32.mrb[82].mxu1 }
 0x907   : > { %v8167_v34 = vpop.f32.mrb[83].mxu1 }
 0x908   : > { %v6289_v13 = vadd.f32 %v8165_v9, %v7612_v28 }
 0x90a   : > { %v6329_v63 = vadd.f32 %v6328_v38, %v6289_v13 }
 0x90c   : > { %v6334_v19 = vmax.f32 %v6329_v63, 0.0 }
 0x90e   : > { %v7729_v26 = vpack.c.bf16 %v6334_v19, %v6334_v19  ;;  %v8938_v19 = vld [vmem:[%s11113_s29 + $0x30] sm:$0xff]  }
 0x910   : > { %v6340_v42 = vshrl.u32 %v7729_v26, 16  ;;  %v6343_v29 = vshll.u32 %v7729_v26, 16  ;;  %v8940_v26 = vld [vmem:[%s11114_s5] sm:$0xff]  }
 0x912   : > { %v6342_v53 = vrot.slane %v6340_v42, 7  ;;  %v8941_v42 = vld [vmem:[%s11114_s5 + $0x8] sm:$0xff]  }
 0x914   : > { %v6345_v33 = vor.u32 %v6343_v29, %v6342_v53  ;;  %v8942_v53 = vld [vmem:[%s11114_s5 + $0x10] sm:$0xff]   ;;  %v8943_v29 = vld [vmem:[%s11114_s5 + $0x18] sm:$0xff]  }
 0x916   : > { %v6348_v10 = vsel %vm10774_vm12, %v6345_v33, %v6347_v50  ;;  %v8944_v33 = vld [vmem:[%s11114_s5 + $0x20] sm:$0xff]   ;;  %v8945_v50 = vld [vmem:[%s11114_s5 + $0x28] sm:$0xff]  }
 0x917   : > { %6349 = vst [vmem:[#allocation2] sm:$0xf] %v6348_v10  ;;  %v6700_v10 = vld [vmem:[#allocation23] sm:$0x1] }
 0x91e   : > { %v6350_v31 = vld [vmem:[#allocation2] sm:$0x8] }
 0x91f   : > { %v6351_v43 = vsel %vm10782_vm6, 0, %v6350_v31 }
 0x920   : > { %6352 = vst [vmem:[#allocation2] sm:$0x8] %v6351_v43 }
 0x927   : > { %v6353_v15 = vld [vmem:[#allocation2] sm:$0xf] }
 0x928   : > { %v6356_v11 = vld [vmem:[#allocation2] sm:$0xe]  ;;  %v7638_v8 = vcombine.low %v6353_v15, %v6354_v47 }
 0x929   : > { %v7640_v32 = vcombine.low %v6356_v11, %v6354_v47 }
 0x92a   : > { %v6369_v21 = vshll.u32 %v7638_v8, 16  ;;  %v6367_v37 = vshrl.u32 %v7638_v8, 16 }
 0x92b   : > { %v6382_v56 = vrot.slane %v7640_v32, 1  ;;  %v8946_v32 = vld [vmem:[%s11114_s5 + $0x30] sm:$0xff]  }
 0x92c   : > { %v6371_v41 = vrot.slane %v6369_v21, 1 }
 0x92d   : > { %v6384_v4 = vsel %vm1519_vm9, %v6382_v56, %v6383_v22  ;;  %v8947_v56 = vld [vmem:[%s11114_s5 + $0x38] sm:$0xff]   ;;  %v6807_v22 = vld [vmem:[#allocation24] sm:$0x1] }
 0x92e   : > { %8333 = vmatmul.mubr.bf16.vlgmr.msra.gmra.mrb[84].mxu0 %v6384_v4  ;;  %v6372_v23 = vor.u32 %v6371_v41, %v6367_v37 }
 0x92f   : > { %8372 = vmatprep.mubr.msk.bf16.mxu0 %vm9458_vm15, %v9457_v40  ;;  %8357 = vmatpush3.bf16.msra.mxu0 %v8932_v61 }
 0x930   : > { %v6377_v46 = vsel %vm1433_vm11, %v6372_v23, %v6376_v2  ;;  %8358 = vmatprep.subr.bf16.mxu0 %v9457_v40 }
 0x931   : > { %6617 = vmatprep.mubr.bf16.mxu1 %v6377_v46 }
 0x932   : > { %6618 = vmatmul.mubr.bf16.vlgmr.msra.gmra.mrb[84].mxu1 %v7638_v8 }
 0x933   : > { %8352 = vmatprep.mubr.msk.bf16.mxu1 %vm9458_vm15, %v9457_v40  ;;  %8337 = vmatpush3.bf16.msra.mxu1 %v8924_v52 }
 0x934   : > { %8338 = vmatprep.subr.bf16.mxu1 %v9457_v40  ;;  %8359 = vmatpush3.bf16.msra.mxu0 %v8933_v54 }
 0x935   : > { %8360 = vmatprep.subr.bf16.mxu0 %v9457_v40 }
 0x937   : > { %8339 = vmatpush3.bf16.msra.mxu1 %v8925_v1 }
 0x938   : > { %8340 = vmatprep.subr.bf16.mxu1 %v9457_v40  ;;  %8361 = vmatpush3.bf16.msra.mxu0 %v8934_v60 }
 0x939   : > { %8362 = vmatprep.subr.bf16.mxu0 %v9457_v40 }
 0x93b   : > { %8341 = vmatpush3.bf16.msra.mxu1 %v8926_v16 }
 0x93c   : > { %8342 = vmatprep.subr.bf16.mxu1 %v9457_v40  ;;  %8363 = vmatpush3.bf16.msra.mxu0 %v8935_v18 }
 0x93d   : > { %8364 = vmatprep.subr.bf16.mxu0 %v9457_v40 }
 0x93f   : > { %8343 = vmatpush3.bf16.msra.mxu1 %v8927_v59 }
 0x940   : > { %8344 = vmatprep.subr.bf16.mxu1 %v9457_v40  ;;  %8365 = vmatpush3.bf16.msra.mxu0 %v8936_v17 }
 0x941   : > { %8366 = vmatprep.subr.bf16.mxu0 %v9457_v40 }
 0x943   : > { %8345 = vmatpush3.bf16.msra.mxu1 %v8928_v51 }
 0x944   : > { %8346 = vmatprep.subr.bf16.mxu1 %v9457_v40  ;;  %8367 = vmatpush3.bf16.msra.mxu0 %v8937_v58 }
 0x945   : > { %8368 = vmatprep.subr.bf16.mxu0 %v9457_v40 }
 0x947   : > { %8347 = vmatpush3.bf16.msra.mxu1 %v8929_v35 }
 0x948   : > { %8348 = vmatprep.subr.bf16.mxu1 %v9457_v40  ;;  %8369 = vmatpush3.bf16.msra.mxu0 %v8938_v19 }
 0x949   : > { %8370 = vmatprep.subr.bf16.mxu0 %v9457_v40 }
 0x94b   : > { %8349 = vmatpush3.bf16.msra.mxu1 %v8930_v62 }
 0x94c   : > { %8350 = vmatprep.subr.bf16.mxu1 %v9457_v40  ;;  %8371 = vmatpush3.bf16.msra.mxu0 %v8939_v6 }
 0x94f   : > { %8351 = vmatpush3.bf16.msra.mxu1 %v8931_v7 }
 0x950   : > { %8376 = vmatprep.subr.bf16.mxu1 %v9457_v40 }
 0xa01   : > { %v6660_v39 = vpop.f32.mrb[84].mxu0 }
 0xa02   : > { %v8334_v27 = vpop.f32.mrb[85].mxu0 }
 0xa03   : > { %v6663_v30 = vpop.f32.mrb[86].mxu0 }
 0xa04   : > { %v8335_v48 = vpop.f32.mrb[87].mxu0 }
 0xa05   : > { %v8194_v3 = vpop.f32.mrb[84].mxu1 }
 0xa06   : > { %v8195_v45 = vpop.f32.mrb[85].mxu1 }
 0xa07   : > { %v8196_v57 = vadd.f32 %v8195_v45, %v8194_v3  ;;  %v8197_v12 = vpop.f32.mrb[86].mxu1 }
 0xa08   : > { %v8198_v49 = vpop.f32.mrb[87].mxu1 }
 0xa09   : > { %v6620_v38 = vadd.f32 %v8196_v57, %v7641_v44 }
 0xa0b   : > { %v6661_v24 = vadd.f32 %v6660_v39, %v6620_v38 }
 0xa0d   : > { %v6667_v0 = vmax.f32 %v6661_v24, 0.0 }
 0xa0f   : > { %v6674_v36 = vsel %vm6672_vm10, %v6667_v0, 0.0 }
 0xa10   : > { %v6676_v25 = vmax.f32 %v6674_v36, 0.0 }
 0xa12   : > { %v6677_v28 = vrot.slane %v6676_v25, 4 }
 0xa14   : > { %v6678_v20 = vmax.f32 %v6676_v25, %v6677_v28 }
 0xa16   : > { %v6679_v9 = vrot.slane %v6678_v20, 2 }
 0xa18   : > { %v6680_v14 = vmax.f32 %v6678_v20, %v6679_v9 }
 0xa1a   : > { %v6681_v34 = vrot.slane %v6680_v14, 1 }
 0xa1c   : > { %v6682_v13 = vmax.f32 %v6680_v14, %v6681_v34 }
 0xa1e   : > { %v6683_v63 = vpack.c.bf16 %v6682_v13, %v6682_v13 }
 0xa20   : > { %8353 = vmatmul.mubr.bf16.vlgmr.msra.gmra.mrb[88].mxu1 %v6683_v63 }
 0xa21   : > { %8392 = vmatprep.mubr.msk.bf16.mxu1 %vm9458_vm15, %v9457_v40  ;;  %8377 = vmatpush3.bf16.msra.mxu1 %v8940_v26 }
 0xa22   : > { %8378 = vmatprep.subr.bf16.mxu1 %v9457_v40 }
 0xa25   : > { %8379 = vmatpush3.bf16.msra.mxu1 %v8941_v42 }
 0xa26   : > { %8380 = vmatprep.subr.bf16.mxu1 %v9457_v40 }
 0xa29   : > { %8381 = vmatpush3.bf16.msra.mxu1 %v8942_v53 }
 0xa2a   : > { %8382 = vmatprep.subr.bf16.mxu1 %v9457_v40 }
 0xa2d   : > { %8383 = vmatpush3.bf16.msra.mxu1 %v8943_v29 }
 0xa2e   : > { %8384 = vmatprep.subr.bf16.mxu1 %v9457_v40 }
 0xa31   : > { %8385 = vmatpush3.bf16.msra.mxu1 %v8944_v33 }
 0xa32   : > { %8386 = vmatprep.subr.bf16.mxu1 %v9457_v40 }
 0xa35   : > { %8387 = vmatpush3.bf16.msra.mxu1 %v8945_v50 }
 0xa36   : > { %8388 = vmatprep.subr.bf16.mxu1 %v9457_v40 }
 0xa39   : > { %8389 = vmatpush3.bf16.msra.mxu1 %v8946_v32 }
 0xa3a   : > { %8390 = vmatprep.subr.bf16.mxu1 %v9457_v40  ;;  %v6914_v40 = vld [vmem:[%s11116_s7] sm:$0x1] }
 0xa3d   : > { %8391 = vmatpush3.bf16.msra.mxu1 %v8947_v56 }
 0xaf3   : > { %v6783_v31 = vpop.f32.mrb[88].mxu1 }
 0xaf4   : > { %v6784_v43 = vadd.f32 %v6783_v31, %v6700_v10  ;;  %v8354_v55 = vpop.f32.mrb[89].mxu1 }
 0xaf5   : > { %v6786_v15 = vpop.f32.mrb[90].mxu1 }
 0xaf6   : > { %v6789_v47 = vmax.f32 %v6784_v43, 0.0  ;;  %v8355_v11 = vpop.f32.mrb[91].mxu1 }
 0xaf8   : > { %v6790_v8 = vpack.c.bf16 %v6789_v47, %v6789_v47 }
 0xafa   : > { %8373 = vmatmul.mubr.bf16.vlgmr.msra.gmra.mrb[88].mxu0 %v6790_v8 }
 0xbcd   : > { %v6890_v21 = vpop.f32.mrb[88].mxu0 }
 0xbce   : > { %v6891_v5 = vadd.f32 %v6890_v21, %v6807_v22  ;;  %v8374_v4 = vpop.f32.mrb[89].mxu0 }
 0xbcf   : > { %v6893_v37 = vpop.f32.mrb[90].mxu0 }
 0xbd0   : > { %v6896_v41 = vmax.f32 %v6891_v5, 0.0  ;;  %v8375_v23 = vpop.f32.mrb[91].mxu0 }
 0xbd2   : > { %v6897_v2 = vpack.c.bf16 %v6896_v41, %v6896_v41 }
 0xbd4   : > { %8393 = vmatmul.mubr.bf16.vlgmr.msra.gmra.mrb[92].mxu1 %v6897_v2 }
 0xca7   : > { %v6997_v46 = vpop.f32.mrb[92].mxu1 }
 0xca8   : > { %v6998_v52 = vadd.f32 %v6997_v46, %v6914_v40  ;;  %v8394_v1 = vpop.f32.mrb[93].mxu1 }
 0xca9   : > { %v7000_v16 = vpop.f32.mrb[94].mxu1 }
 0xcaa   : > { %7003 = vst [vmem:[%s812_s11] sm:$0x1] %v6998_v52  ;;  %v8395_v59 = vpop.f32.mrb[95].mxu1 }
 0xcab   : > { %9353 = shalt.err (!%p9350_p1)
}
 0xcac   : > { %s9354_s4 = scalar_lea.hbm %s10948_s26, 16  ;;  %s9358_s24 = scalar_lea.hbm %s11119_s18, 32 }
 0xcad   : > { %p9355_p6 = scmp.ne.s32.totalorder %s10948_s26, %s9354_s4  ;;  %p9359_p10 = scmp.lt.u32.totalorder %s10948_s26, %s11119_s18 }
 0xcae   : > { %p9360_p0 = scmp.lt.u32.totalorder %s9358_s24, %s9354_s4  ;;  %p9362_p3 = scmp.lt.u32.totalorder %s9354_s4, %s10948_s26 }
 0xcaf   : > { %p9356_p9 = pnand %p9355_p6, %p11120_p4 }
 0xcb0   : > { %p9361_p2 = por %p9360_p0, %p9359_p10 }
 0xcb1   : > { %p9357_p5 = pneg %p9356_p9 }
 0xcb2   : > { %p9363_p12 = por %p9362_p3, %p9361_p2 }
 0xcb4   : > { %p9364_p7 = pnand %p9363_p12, %p9357_p5 }
 0xcb6   : > { %9367 = shalt.err (!%p9364_p7)
}
 0xcb7   : > { %8452 = dma.vmem_to_hbm [thread:$0]  (%p11120_p4), %s10950_s21, 16, %s10948_s26, %s7005_s16  }
 0xcb8 PF: > { %s11121_s11 = sld [smem:[#allocation39_spill]]  ;;  %s11122_s20 = sld [smem:[#allocation36_spill]] }
 0xcb9   : > { %s11123_s19 = sld [smem:[#allocation43_spill]] }
 0xcbe   : > { %p8529_p8 = scmp.ge.s32.totalorder %s11121_s11, 2  ;;  %s7029_s23 = sand.u32 1, %s11122_s20  }
 0xcbf   : > { %p11124_p11 = scmp.ne.s32.totalorder %s11123_s19, 0  ;;  %s7030_s2 = scalar_lea.sflag [#allocation5], %s7029_s23 }
 0xcc1   : > { %p8498_p13 = pnand %p8529_p8, %p11124_p11 }
 0xcc3   : > { %9417 = dma.done.wait (!%p8498_p13), %s7030_s2, 16  }
 0xcc4   : > { %9419 = vsyncadd (!%p8498_p13), %s7030_s2, 4294967280  ;;  %s11125_s24 = sld [smem:[#allocation40_spill]]  ;;  %s11126_s22 = sld [smem:[#allocation37_spill]] }
 0xcc5   : > { %s11127_s9 = sld [smem:[#allocation38_spill]]  ;;  %s11128_s23 = sld [smem:[#allocation41_spill]] }
 0xcca   : > { %p38_p1 = scmp.ge.s32.totalorder %s11125_s24, 4   ;;  %11129 = sst [smem:[#allocation36_spill]] %s11126_s22 }
 0xccb   : > { %s11130_s22 = smov %s11127_s9 }
 0xccc   :  { %40 = sbr.rel (!%p38_p1) target bundleno = 26 (0x1a), region = 192 }
 0xcd3   :  { %7034 = vsyncpa [#allocation4], 1 }
 0xcd4   :  { %7036 = vsyncpa [#allocation4 + $0x1], 1 }
 0xcd5   :  { %7037 = vsyncpa [#allocation7], 1 }
 0xcd6   :  { %7038 = vsyncpa [#allocation10], 1 }
 0xcd7   :  { %7039 = vsyncpa [#allocation13], 1 }
 0xcd8   :  { %7040 = vsyncpa [#allocation16], 1 }
 0xcd9   :  { %7041 = vsyncpa [#allocation19], 1 }
 0xcda   :  { %7042 = vsyncpa [#allocation22], 1 }
 0xcdb   :  { %7043 = vsyncpa [#allocation25], 1 }
 0xcdc   :  { %7044 = vsyncpa [#allocation5], 1 }
 0xcdd   :  { %7046 = vsyncpa [#allocation5 + $0x1], 1 }

</bundles_post_ra>
